<compile_context>
chip_gen: v5e
topology: v5e:2x2
jax: 0.10.0
libtpu: 0.0.40
codegen_flags: <defaults>
</compile_context>

<pallas_src>
import jax
import jax.numpy as jnp
import numpy as np
from jax import lax
from jax.experimental import pallas as pl
from jax.experimental.pallas import tpu as pltpu

LANES = 128          # output-lane padding for every GEMM N dim
SUBLANE_PACK = 16    # bf16 sublane packing multiple for M padding
TILE_M_MAX = 512     # max rows per grid step (>=512 keeps the MXU fed on v6e/v7x)

# Double-buffered working set at the largest tile (512 x 256 bf16 patches x 4,
# plus the 512 x 128 output tile and the small resident weights/bias) is
# ~2.6 MiB — far under v7x's 64 MiB physical VMEM; 32 MiB scoped is ample.
VMEM_LIMIT_BYTES = 32 * 1024 * 1024


def _round_up(x, m):
    return ((x + m - 1) // m) * m


# ----------------------------------------------------------------------------
# One-time parameter preparation (hoisted out of the forward hot path)
# ----------------------------------------------------------------------------
def prepare_params(p):
    def conv_w(w_oihw):
        cout, cin, kh, kw = w_oihw.shape
        k = kh * kw * cin
        k_pad = _round_up(k, LANES)
        m = jnp.transpose(w_oihw, (2, 3, 1, 0)).reshape(k, cout)   # (ki,kj,c) x cout
        return jnp.pad(m, ((0, k_pad - k), (0, LANES - cout))).astype(jnp.bfloat16)

    def bias(b):
        return jnp.pad(b.reshape(1, -1),
                       ((0, 0), (0, LANES - b.shape[0]))).astype(jnp.float32)

    # fc1: PyTorch flattens the conv2 output in (c, h, w) order; the kernel
    # flattens the lane-padded NHWC output in (h, w, c_pad) order.  Permute the
    # weight's input axis once instead of transposing the activation per call.
    w1 = p["fc1_w"].reshape(120, 16, 5, 5)           # (out, c, h, w)
    w1 = jnp.transpose(w1, (2, 3, 1, 0))             # (h, w, c, out)
    w1 = jnp.pad(w1, ((0, 0), (0, 0), (0, LANES - 16), (0, LANES - 120)))
    w1 = w1.reshape(5 * 5 * LANES, LANES).astype(jnp.bfloat16)     # (3200, 128)

    w2 = jnp.pad(p["fc2_w"].T, ((0, LANES - 120), (0, LANES - 84))).astype(jnp.bfloat16)
    w3 = jnp.pad(p["fc3_w"].T, ((0, LANES - 84), (0, LANES - 10))).astype(jnp.bfloat16)

    return {
        "c1_w": conv_w(p["conv1_w"]), "c1_b": bias(p["conv1_b"]),
        "c2_w": conv_w(p["conv2_w"]), "c2_b": bias(p["conv2_b"]),
        "fc1_w": w1, "fc1_b": bias(p["fc1_b"]),
        "fc2_w": w2, "fc2_b": bias(p["fc2_b"]),
        "fc3_w": w3, "fc3_b": bias(p["fc3_b"]),
    }


# ----------------------------------------------------------------------------
# Kernel 1/2: conv (as 4 pool-position GEMMs) + max-pool + bias + ReLU, fused
# ----------------------------------------------------------------------------
def _conv_pool_kernel(p0_ref, p1_ref, p2_ref, p3_ref, w_ref, b_ref, o_ref):
    w = w_ref[...]
    y = jnp.dot(p0_ref[...], w, preferred_element_type=jnp.float32)
    y = jnp.maximum(y, jnp.dot(p1_ref[...], w, preferred_element_type=jnp.float32))
    y = jnp.maximum(y, jnp.dot(p2_ref[...], w, preferred_element_type=jnp.float32))
    y = jnp.maximum(y, jnp.dot(p3_ref[...], w, preferred_element_type=jnp.float32))
    # maxpool(relu(conv + b)) == relu(max(conv) + b): shared bias, monotone relu.
    o_ref[...] = jnp.maximum(y + b_ref[...], 0.0).astype(o_ref.dtype)


def conv_relu_pool(x_nhwc, w_mat, b_row, *, kh, kw, cin):
    """VALID conv (stride 1) + bias + ReLU + 2x2/2 max-pool in one pallas_call.

    `x_nhwc` may carry zero-padded lanes beyond `cin`; only [:cin] is read.
    Returns (N, Hp, Wp, 128) bf16 with real channels in lanes [:cout].
    """
    n, h, w, _ = x_nhwc.shape
    hp, wp = (h - kh + 1) // 2, (w - kw + 1) // 2
    k = kh * kw * cin
    k_pad = w_mat.shape[0]
    mq = n * hp * wp
    tile_m = min(TILE_M_MAX, _round_up(mq, SUBLANE_PACK))
    mq_pad = _round_up(mq, tile_m)
    grid_m = mq_pad // tile_m

    # im2col: one (mq_pad, k_pad) bf16 patch matrix per 2x2 pool position.
    mats = []
    for di in range(2):
        for dj in range(2):
            cols = []
            for ki in range(kh):
                for kj in range(kw):
                    sl = x_nhwc[:, di + ki::2, dj + kj::2, :cin][:, :hp, :wp, :]
                    cols.append(sl)
            pm = jnp.stack(cols, axis=3).reshape(mq, k).astype(jnp.bfloat16)
            mats.append(jnp.pad(pm, ((0, mq_pad - mq), (0, k_pad - k))))

    flops = 2 * 4 * mq_pad * k_pad * LANES
    bytes_accessed = (4 * mq_pad * k_pad * 2 + k_pad * LANES * 2
                      + LANES * 4 + mq_pad * LANES * 2)
    m_spec = pl.BlockSpec((tile_m, k_pad), lambda i: (i, 0))

    y = pl.pallas_call(
        _conv_pool_kernel,
        out_shape=jax.ShapeDtypeStruct((mq_pad, LANES), jnp.bfloat16),
        grid=(grid_m,),
        in_specs=[m_spec, m_spec, m_spec, m_spec,
                  pl.BlockSpec((k_pad, LANES), lambda i: (0, 0)),
                  pl.BlockSpec((1, LANES), lambda i: (0, 0))],
        out_specs=pl.BlockSpec((tile_m, LANES), lambda i: (i, 0)),
        compiler_params=pltpu.CompilerParams(
            dimension_semantics=("parallel",),
            vmem_limit_bytes=VMEM_LIMIT_BYTES),
        cost_estimate=pl.CostEstimate(flops=flops, transcendentals=0,
                                      bytes_accessed=bytes_accessed),
    )(*mats, w_mat, b_row)
    return y[:mq].reshape(n, hp, wp, LANES)


# ----------------------------------------------------------------------------
# Kernel 3: fused FC head  fc1 -> relu -> fc2 -> relu -> fc3
# ----------------------------------------------------------------------------
def _fc_head_kernel(x_ref, w1_ref, b1_ref, w2_ref, b2_ref, w3_ref, b3_ref, o_ref):
    h = jnp.dot(x_ref[...], w1_ref[...], preferred_element_type=jnp.float32)
    h = jnp.maximum(h + b1_ref[...], 0.0)
    h = jnp.dot(h.astype(jnp.bfloat16), w2_ref[...],
                preferred_element_type=jnp.float32)
    h = jnp.maximum(h + b2_ref[...], 0.0)
    h = jnp.dot(h.astype(jnp.bfloat16), w3_ref[...],
                preferred_element_type=jnp.float32)
    o_ref[...] = (h + b3_ref[...]).astype(o_ref.dtype)


def fc_head(x_flat, prepped, *, n_out=10):
    bsz, k1 = x_flat.shape
    assert k1 == prepped["fc1_w"].shape[0]
    tile_b = min(TILE_M_MAX, _round_up(bsz, SUBLANE_PACK))
    b_pad = _round_up(bsz, tile_b)
    x = jnp.pad(x_flat.astype(jnp.bfloat16), ((0, b_pad - bsz), (0, 0)))

    flops = 2 * b_pad * (k1 + 2 * LANES) * LANES
    bytes_accessed = (b_pad * k1 * 2 + (k1 + 2 * LANES) * LANES * 2
                      + 3 * LANES * 4 + b_pad * LANES * 4)

    def full(shape):
        return pl.BlockSpec(shape, lambda i: (0, 0))

    out = pl.pallas_call(
        _fc_head_kernel,
        out_shape=jax.ShapeDtypeStruct((b_pad, LANES), jnp.float32),
        grid=(b_pad // tile_b,),
        in_specs=[pl.BlockSpec((tile_b, k1), lambda i: (i, 0)),
                  full((k1, LANES)), full((1, LANES)),
                  full((LANES, LANES)), full((1, LANES)),
                  full((LANES, LANES)), full((1, LANES))],
        out_specs=pl.BlockSpec((tile_b, LANES), lambda i: (i, 0)),
        compiler_params=pltpu.CompilerParams(
            dimension_semantics=("parallel",),
            vmem_limit_bytes=VMEM_LIMIT_BYTES),
        cost_estimate=pl.CostEstimate(flops=flops, transcendentals=0,
                                      bytes_accessed=bytes_accessed),
    )(x, prepped["fc1_w"], prepped["fc1_b"], prepped["fc2_w"], prepped["fc2_b"],
      prepped["fc3_w"], prepped["fc3_b"])
    return out[:bsz, :n_out]


# ----------------------------------------------------------------------------
# Full forward pass (matches Net.forward)
# ----------------------------------------------------------------------------
def net_forward(x_nchw, prepped):
    x = jnp.transpose(x_nchw, (0, 2, 3, 1))                              # NCHW -> NHWC
    x = conv_relu_pool(x, prepped["c1_w"], prepped["c1_b"], kh=5, kw=5, cin=3)
    x = conv_relu_pool(x, prepped["c2_w"], prepped["c2_b"], kh=5, kw=5, cin=6)
    # fc1's weight is pre-permuted to the lane-padded (h, w, c) order, so the
    # NHWC conv2 output flattens directly (no transpose / channel slice / pad).
    x = x.reshape(x.shape[0], 5 * 5 * LANES)
    return fc_head(x, prepped)


# ----------------------------------------------------------------------------
# Pure-JAX reference (same bf16 operand / f32 accumulation quantization points)
# ----------------------------------------------------------------------------
def reference_forward(x_nchw, p):
    bf16, f32 = jnp.bfloat16, jnp.float32

    def conv(x, w, b):
        y = lax.conv_general_dilated(
            x.astype(bf16), w.astype(bf16), (1, 1), "VALID",
            dimension_numbers=("NCHW", "OIHW", "NCHW"),
            preferred_element_type=f32)
        return jnp.maximum(y + b[None, :, None, None], 0.0)

    def pool(x):
        return lax.reduce_window(x, -jnp.inf, lax.max,
                                 (1, 1, 2, 2), (1, 1, 2, 2), "VALID")

    def fc(x, w, b, relu):
        y = jnp.dot(x.astype(bf16), w.T.astype(bf16),
                    preferred_element_type=f32) + b
        return jnp.maximum(y, 0.0) if relu else y

    x = pool(conv(x_nchw, p["conv1_w"], p["conv1_b"]))
    x = pool(conv(x, p["conv2_w"], p["conv2_b"]))
    x = x.reshape(x.shape[0], 16 * 5 * 5)
    x = fc(x, p["fc1_w"], p["fc1_b"], True)
    x = fc(x, p["fc2_w"], p["fc2_b"], True)
    return fc(x, p["fc3_w"], p["fc3_b"], False)


# ----------------------------------------------------------------------------
# Deterministic parameter init (PyTorch default: U[-1/sqrt(fan_in), 1/sqrt(fan_in)])
# ----------------------------------------------------------------------------
def init_params(key):
    def unif(k, shape, fan_in):
        bound = 1.0 / np.sqrt(fan_in)
        return jax.random.uniform(k, shape, jnp.float32, -bound, bound)

    ks = jax.random.split(key, 10)
    return {
        "conv1_w": unif(ks[0], (6, 3, 5, 5), 3 * 5 * 5),
        "conv1_b": unif(ks[1], (6,), 3 * 5 * 5),
        "conv2_w": unif(ks[2], (16, 6, 5, 5), 6 * 5 * 5),
        "conv2_b": unif(ks[3], (16,), 6 * 5 * 5),
        "fc1_w": unif(ks[4], (120, 400), 400),
        "fc1_b": unif(ks[5], (120,), 400),
        "fc2_w": unif(ks[6], (84, 120), 120),
        "fc2_b": unif(ks[7], (84,), 120),
        "fc3_w": unif(ks[8], (10, 84), 84),
        "fc3_b": unif(ks[9], (10,), 84),
    }


if __name__ == "__main__":
    key = jax.random.PRNGKey(0)
    k_x, k_p = jax.random.split(key)
    # fc1 expects 16*5*5 features -> 32x32 spatial input (CIFAR-like), batch=2
    x = jax.random.uniform(k_x, (2, 3, 32, 32), jnp.float32)
    params = init_params(k_p)
    prepped = jax.block_until_ready(prepare_params(params))   # one-time, off hot path

    out = jax.jit(net_forward)(x, prepped)
    out = jax.block_until_ready(out)
    assert out.shape == (2, 10), out.shape

    ref = jax.block_until_ready(reference_forward(x, params))
    np.testing.assert_allclose(np.asarray(out), np.asarray(ref),
                               rtol=2e-2, atol=2e-2)
    print("KERNEL_OK")
</pallas_src>

<mosaic_0001>
module attributes {stable_mosaic.version = 11 : i64} {
  func.func @_conv_pool_kernel(%arg0: i32, %arg1: memref<400x128xbf16, #tpu.memory_space<vmem>>, %arg2: memref<400x128xbf16, #tpu.memory_space<vmem>>, %arg3: memref<400x128xbf16, #tpu.memory_space<vmem>>, %arg4: memref<400x128xbf16, #tpu.memory_space<vmem>>, %arg5: memref<128x128xbf16, #tpu.memory_space<vmem>>, %arg6: memref<1x128xf32, #tpu.memory_space<vmem>>, %arg7: memref<400x128xbf16, #tpu.memory_space<vmem>>) attributes {dimension_semantics = [#tpu.dimension_semantics<parallel>], iteration_bounds = array<i64: 1>, scalar_prefetch = 0 : i64, scratch_operands = 0 : i64, tpu.core_type = #tpu.core_type<tc>, window_params = [{transform_indices = @transform_0, window_bounds = array<i64: 400, 128>}, {transform_indices = @transform_1, window_bounds = array<i64: 400, 128>}, {transform_indices = @transform_2, window_bounds = array<i64: 400, 128>}, {transform_indices = @transform_3, window_bounds = array<i64: 400, 128>}, {pipeline_mode = #tpu.pipeline_mode<synchronous>, transform_indices = @transform_4, window_bounds = array<i64: 128, 128>}, {pipeline_mode = #tpu.pipeline_mode<synchronous>, transform_indices = @transform_5, window_bounds = array<i64: 1, 128>}, {transform_indices = @transform_6, window_bounds = array<i64: 400, 128>}]} {
    %c0 = arith.constant 0 : index
    %c0_0 = arith.constant 0 : index
    %0 = vector.load %arg5[%c0, %c0_0] : memref<128x128xbf16, #tpu.memory_space<vmem>>, vector<128x128xbf16>
    %c0_1 = arith.constant 0 : index
    %c0_2 = arith.constant 0 : index
    %1 = vector.load %arg1[%c0_1, %c0_2] : memref<400x128xbf16, #tpu.memory_space<vmem>>, vector<400x128xbf16>
    %cst = arith.constant dense<0.000000e+00> : vector<400x128xf32>
    %2 = tpu.matmul %1, %0, %cst {dimension_numbers = #tpu.dot_dimension_numbers<[1], [0], [0], [1], [0, 0, 1, 1], [], []>} : vector<400x128xbf16>, vector<128x128xbf16>, vector<400x128xf32> -> vector<400x128xf32>
    %c0_3 = arith.constant 0 : index
    %c0_4 = arith.constant 0 : index
    %3 = vector.load %arg2[%c0_3, %c0_4] : memref<400x128xbf16, #tpu.memory_space<vmem>>, vector<400x128xbf16>
    %cst_5 = arith.constant dense<0.000000e+00> : vector<400x128xf32>
    %4 = tpu.matmul %3, %0, %cst_5 {dimension_numbers = #tpu.dot_dimension_numbers<[1], [0], [0], [1], [0, 0, 1, 1], [], []>} : vector<400x128xbf16>, vector<128x128xbf16>, vector<400x128xf32> -> vector<400x128xf32>
    %5 = arith.maximumf %2, %4 : vector<400x128xf32>
    %c0_6 = arith.constant 0 : index
    %c0_7 = arith.constant 0 : index
    %6 = vector.load %arg3[%c0_6, %c0_7] : memref<400x128xbf16, #tpu.memory_space<vmem>>, vector<400x128xbf16>
    %cst_8 = arith.constant dense<0.000000e+00> : vector<400x128xf32>
    %7 = tpu.matmul %6, %0, %cst_8 {dimension_numbers = #tpu.dot_dimension_numbers<[1], [0], [0], [1], [0, 0, 1, 1], [], []>} : vector<400x128xbf16>, vector<128x128xbf16>, vector<400x128xf32> -> vector<400x128xf32>
    %8 = arith.maximumf %5, %7 : vector<400x128xf32>
    %c0_9 = arith.constant 0 : index
    %c0_10 = arith.constant 0 : index
    %9 = vector.load %arg4[%c0_9, %c0_10] : memref<400x128xbf16, #tpu.memory_space<vmem>>, vector<400x128xbf16>
    %cst_11 = arith.constant dense<0.000000e+00> : vector<400x128xf32>
    %10 = tpu.matmul %9, %0, %cst_11 {dimension_numbers = #tpu.dot_dimension_numbers<[1], [0], [0], [1], [0, 0, 1, 1], [], []>} : vector<400x128xbf16>, vector<128x128xbf16>, vector<400x128xf32> -> vector<400x128xf32>
    %11 = arith.maximumf %8, %10 : vector<400x128xf32>
    %c0_12 = arith.constant 0 : index
    %c0_13 = arith.constant 0 : index
    %12 = vector.load %arg6[%c0_12, %c0_13] : memref<1x128xf32, #tpu.memory_space<vmem>>, vector<1x128xf32>
    %13 = vector.broadcast %12 : vector<1x128xf32> to vector<400x128xf32>
    %14 = arith.addf %11, %13 : vector<400x128xf32>
    %cst_14 = arith.constant 0.000000e+00 : f32
    %15 = vector.broadcast %cst_14 : f32 to vector<400x128xf32>
    %16 = arith.maximumf %14, %15 : vector<400x128xf32>
    %17 = arith.truncf %16 : vector<400x128xf32> to vector<400x128xbf16>
    %c0_15 = arith.constant 0 : index
    %c0_16 = arith.constant 0 : index
    %18 = vector.load %arg7[%c0_15, %c0_16] : memref<400x128xbf16, #tpu.memory_space<vmem>>, vector<400x128xbf16>
    tpu.vector_store %arg7[%c0_15, %c0_16], %17 {strides = array<i32>} : memref<400x128xbf16, #tpu.memory_space<vmem>>, vector<400x128xbf16>,
    return
  }
  func.func @transform_0(%arg0: i32) -> (i32, i32) {
    %c0_i32 = arith.constant 0 : i32
    %c0_i32_0 = arith.constant 0 : i32
    return %arg0, %c0_i32 : i32, i32
  }
  func.func @transform_1(%arg0: i32) -> (i32, i32) {
    %c0_i32 = arith.constant 0 : i32
    %c0_i32_0 = arith.constant 0 : i32
    return %arg0, %c0_i32 : i32, i32
  }
  func.func @transform_2(%arg0: i32) -> (i32, i32) {
    %c0_i32 = arith.constant 0 : i32
    %c0_i32_0 = arith.constant 0 : i32
    return %arg0, %c0_i32 : i32, i32
  }
  func.func @transform_3(%arg0: i32) -> (i32, i32) {
    %c0_i32 = arith.constant 0 : i32
    %c0_i32_0 = arith.constant 0 : i32
    return %arg0, %c0_i32 : i32, i32
  }
  func.func @transform_4(%arg0: i32) -> (i32, i32) {
    %c0_i32 = arith.constant 0 : i32
    %c0_i32_0 = arith.constant 0 : i32
    %c0_i32_1 = arith.constant 0 : i32
    return %c0_i32, %c0_i32_0 : i32, i32
  }
  func.func @transform_5(%arg0: i32) -> (i32, i32) {
    %c0_i32 = arith.constant 0 : i32
    %c0_i32_0 = arith.constant 0 : i32
    %c0_i32_1 = arith.constant 0 : i32
    return %c0_i32, %c0_i32_0 : i32, i32
  }
  func.func @transform_6(%arg0: i32) -> (i32, i32) {
    %c0_i32 = arith.constant 0 : i32
    %c0_i32_0 = arith.constant 0 : i32
    return %arg0, %c0_i32 : i32, i32
  }
}

module attributes {stable_mosaic.version = 11 : i64} {
  func.func @_conv_pool_kernel(%arg0: i32, %arg1: memref<64x256xbf16, #tpu.memory_space<vmem>>, %arg2: memref<64x256xbf16, #tpu.memory_space<vmem>>, %arg3: memref<64x256xbf16, #tpu.memory_space<vmem>>, %arg4: memref<64x256xbf16, #tpu.memory_space<vmem>>, %arg5: memref<256x128xbf16, #tpu.memory_space<vmem>>, %arg6: memref<1x128xf32, #tpu.memory_space<vmem>>, %arg7: memref<64x128xbf16, #tpu.memory_space<vmem>>) attributes {dimension_semantics = [#tpu.dimension_semantics<parallel>], iteration_bounds = array<i64: 1>, scalar_prefetch = 0 : i64, scratch_operands = 0 : i64, tpu.core_type = #tpu.core_type<tc>, window_params = [{transform_indices = @transform_0, window_bounds = array<i64: 64, 256>}, {transform_indices = @transform_1, window_bounds = array<i64: 64, 256>}, {transform_indices = @transform_2, window_bounds = array<i64: 64, 256>}, {transform_indices = @transform_3, window_bounds = array<i64: 64, 256>}, {pipeline_mode = #tpu.pipeline_mode<synchronous>, transform_indices = @transform_4, window_bounds = array<i64: 256, 128>}, {pipeline_mode = #tpu.pipeline_mode<synchronous>, transform_indices = @transform_5, window_bounds = array<i64: 1, 128>}, {transform_indices = @transform_6, window_bounds = array<i64: 64, 128>}]} {
    %c0 = arith.constant 0 : index
    %c0_0 = arith.constant 0 : index
    %0 = vector.load %arg5[%c0, %c0_0] : memref<256x128xbf16, #tpu.memory_space<vmem>>, vector<256x128xbf16>
    %c0_1 = arith.constant 0 : index
    %c0_2 = arith.constant 0 : index
    %1 = vector.load %arg1[%c0_1, %c0_2] : memref<64x256xbf16, #tpu.memory_space<vmem>>, vector<64x256xbf16>
    %cst = arith.constant dense<0.000000e+00> : vector<64x128xf32>
    %2 = tpu.matmul %1, %0, %cst {dimension_numbers = #tpu.dot_dimension_numbers<[1], [0], [0], [1], [0, 0, 1, 1], [], []>} : vector<64x256xbf16>, vector<256x128xbf16>, vector<64x128xf32> -> vector<64x128xf32>
    %c0_3 = arith.constant 0 : index
    %c0_4 = arith.constant 0 : index
    %3 = vector.load %arg2[%c0_3, %c0_4] : memref<64x256xbf16, #tpu.memory_space<vmem>>, vector<64x256xbf16>
    %cst_5 = arith.constant dense<0.000000e+00> : vector<64x128xf32>
    %4 = tpu.matmul %3, %0, %cst_5 {dimension_numbers = #tpu.dot_dimension_numbers<[1], [0], [0], [1], [0, 0, 1, 1], [], []>} : vector<64x256xbf16>, vector<256x128xbf16>, vector<64x128xf32> -> vector<64x128xf32>
    %5 = arith.maximumf %2, %4 : vector<64x128xf32>
    %c0_6 = arith.constant 0 : index
    %c0_7 = arith.constant 0 : index
    %6 = vector.load %arg3[%c0_6, %c0_7] : memref<64x256xbf16, #tpu.memory_space<vmem>>, vector<64x256xbf16>
    %cst_8 = arith.constant dense<0.000000e+00> : vector<64x128xf32>
    %7 = tpu.matmul %6, %0, %cst_8 {dimension_numbers = #tpu.dot_dimension_numbers<[1], [0], [0], [1], [0, 0, 1, 1], [], []>} : vector<64x256xbf16>, vector<256x128xbf16>, vector<64x128xf32> -> vector<64x128xf32>
    %8 = arith.maximumf %5, %7 : vector<64x128xf32>
    %c0_9 = arith.constant 0 : index
    %c0_10 = arith.constant 0 : index
    %9 = vector.load %arg4[%c0_9, %c0_10] : memref<64x256xbf16, #tpu.memory_space<vmem>>, vector<64x256xbf16>
    %cst_11 = arith.constant dense<0.000000e+00> : vector<64x128xf32>
    %10 = tpu.matmul %9, %0, %cst_11 {dimension_numbers = #tpu.dot_dimension_numbers<[1], [0], [0], [1], [0, 0, 1, 1], [], []>} : vector<64x256xbf16>, vector<256x128xbf16>, vector<64x128xf32> -> vector<64x128xf32>
    %11 = arith.maximumf %8, %10 : vector<64x128xf32>
    %c0_12 = arith.constant 0 : index
    %c0_13 = arith.constant 0 : index
    %12 = vector.load %arg6[%c0_12, %c0_13] : memref<1x128xf32, #tpu.memory_space<vmem>>, vector<1x128xf32>
    %13 = vector.broadcast %12 : vector<1x128xf32> to vector<64x128xf32>
    %14 = arith.addf %11, %13 : vector<64x128xf32>
    %cst_14 = arith.constant 0.000000e+00 : f32
    %15 = vector.broadcast %cst_14 : f32 to vector<64x128xf32>
    %16 = arith.maximumf %14, %15 : vector<64x128xf32>
    %17 = arith.truncf %16 : vector<64x128xf32> to vector<64x128xbf16>
    %c0_15 = arith.constant 0 : index
    %c0_16 = arith.constant 0 : index
    %18 = vector.load %arg7[%c0_15, %c0_16] : memref<64x128xbf16, #tpu.memory_space<vmem>>, vector<64x128xbf16>
    tpu.vector_store %arg7[%c0_15, %c0_16], %17 {strides = array<i32>} : memref<64x128xbf16, #tpu.memory_space<vmem>>, vector<64x128xbf16>,
    return
  }
  func.func @transform_0(%arg0: i32) -> (i32, i32) {
    %c0_i32 = arith.constant 0 : i32
    %c0_i32_0 = arith.constant 0 : i32
    return %arg0, %c0_i32 : i32, i32
  }
  func.func @transform_1(%arg0: i32) -> (i32, i32) {
    %c0_i32 = arith.constant 0 : i32
    %c0_i32_0 = arith.constant 0 : i32
    return %arg0, %c0_i32 : i32, i32
  }
  func.func @transform_2(%arg0: i32) -> (i32, i32) {
    %c0_i32 = arith.constant 0 : i32
    %c0_i32_0 = arith.constant 0 : i32
    return %arg0, %c0_i32 : i32, i32
  }
  func.func @transform_3(%arg0: i32) -> (i32, i32) {
    %c0_i32 = arith.constant 0 : i32
    %c0_i32_0 = arith.constant 0 : i32
    return %arg0, %c0_i32 : i32, i32
  }
  func.func @transform_4(%arg0: i32) -> (i32, i32) {
    %c0_i32 = arith.constant 0 : i32
    %c0_i32_0 = arith.constant 0 : i32
    %c0_i32_1 = arith.constant 0 : i32
    return %c0_i32, %c0_i32_0 : i32, i32
  }
  func.func @transform_5(%arg0: i32) -> (i32, i32) {
    %c0_i32 = arith.constant 0 : i32
    %c0_i32_0 = arith.constant 0 : i32
    %c0_i32_1 = arith.constant 0 : i32
    return %c0_i32, %c0_i32_0 : i32, i32
  }
  func.func @transform_6(%arg0: i32) -> (i32, i32) {
    %c0_i32 = arith.constant 0 : i32
    %c0_i32_0 = arith.constant 0 : i32
    return %arg0, %c0_i32 : i32, i32
  }
}

module attributes {stable_mosaic.version = 11 : i64} {
  func.func @_fc_head_kernel(%arg0: i32, %arg1: memref<16x3200xbf16, #tpu.memory_space<vmem>>, %arg2: memref<3200x128xbf16, #tpu.memory_space<vmem>>, %arg3: memref<1x128xf32, #tpu.memory_space<vmem>>, %arg4: memref<128x128xbf16, #tpu.memory_space<vmem>>, %arg5: memref<1x128xf32, #tpu.memory_space<vmem>>, %arg6: memref<128x128xbf16, #tpu.memory_space<vmem>>, %arg7: memref<1x128xf32, #tpu.memory_space<vmem>>, %arg8: memref<16x128xf32, #tpu.memory_space<vmem>>) attributes {dimension_semantics = [#tpu.dimension_semantics<parallel>], iteration_bounds = array<i64: 1>, scalar_prefetch = 0 : i64, scratch_operands = 0 : i64, tpu.core_type = #tpu.core_type<tc>, window_params = [{transform_indices = @transform_0, window_bounds = array<i64: 16, 3200>}, {pipeline_mode = #tpu.pipeline_mode<synchronous>, transform_indices = @transform_1, window_bounds = array<i64: 3200, 128>}, {pipeline_mode = #tpu.pipeline_mode<synchronous>, transform_indices = @transform_2, window_bounds = array<i64: 1, 128>}, {pipeline_mode = #tpu.pipeline_mode<synchronous>, transform_indices = @transform_3, window_bounds = array<i64: 128, 128>}, {pipeline_mode = #tpu.pipeline_mode<synchronous>, transform_indices = @transform_4, window_bounds = array<i64: 1, 128>}, {pipeline_mode = #tpu.pipeline_mode<synchronous>, transform_indices = @transform_5, window_bounds = array<i64: 128, 128>}, {pipeline_mode = #tpu.pipeline_mode<synchronous>, transform_indices = @transform_6, window_bounds = array<i64: 1, 128>}, {transform_indices = @transform_7, window_bounds = array<i64: 16, 128>}]} {
    %c0 = arith.constant 0 : index
    %c0_0 = arith.constant 0 : index
    %0 = vector.load %arg1[%c0, %c0_0] : memref<16x3200xbf16, #tpu.memory_space<vmem>>, vector<16x3200xbf16>
    %c0_1 = arith.constant 0 : index
    %c0_2 = arith.constant 0 : index
    %1 = vector.load %arg2[%c0_1, %c0_2] : memref<3200x128xbf16, #tpu.memory_space<vmem>>, vector<3200x128xbf16>
    %cst = arith.constant dense<0.000000e+00> : vector<16x128xf32>
    %2 = tpu.matmul %0, %1, %cst {dimension_numbers = #tpu.dot_dimension_numbers<[1], [0], [0], [1], [0, 0, 1, 1], [], []>} : vector<16x3200xbf16>, vector<3200x128xbf16>, vector<16x128xf32> -> vector<16x128xf32>
    %c0_3 = arith.constant 0 : index
    %c0_4 = arith.constant 0 : index
    %3 = vector.load %arg3[%c0_3, %c0_4] : memref<1x128xf32, #tpu.memory_space<vmem>>, vector<1x128xf32>
    %4 = vector.broadcast %3 : vector<1x128xf32> to vector<16x128xf32>
    %5 = arith.addf %2, %4 : vector<16x128xf32>
    %cst_5 = arith.constant 0.000000e+00 : f32
    %6 = vector.broadcast %cst_5 : f32 to vector<16x128xf32>
    %7 = arith.maximumf %5, %6 : vector<16x128xf32>
    %8 = arith.truncf %7 : vector<16x128xf32> to vector<16x128xbf16>
    %c0_6 = arith.constant 0 : index
    %c0_7 = arith.constant 0 : index
    %9 = vector.load %arg4[%c0_6, %c0_7] : memref<128x128xbf16, #tpu.memory_space<vmem>>, vector<128x128xbf16>
    %cst_8 = arith.constant dense<0.000000e+00> : vector<16x128xf32>
    %10 = tpu.matmul %8, %9, %cst_8 {dimension_numbers = #tpu.dot_dimension_numbers<[1], [0], [0], [1], [0, 0, 1, 1], [], []>} : vector<16x128xbf16>, vector<128x128xbf16>, vector<16x128xf32> -> vector<16x128xf32>
    %c0_9 = arith.constant 0 : index
    %c0_10 = arith.constant 0 : index
    %11 = vector.load %arg5[%c0_9, %c0_10] : memref<1x128xf32, #tpu.memory_space<vmem>>, vector<1x128xf32>
    %12 = vector.broadcast %11 : vector<1x128xf32> to vector<16x128xf32>
    %13 = arith.addf %10, %12 : vector<16x128xf32>
    %cst_11 = arith.constant 0.000000e+00 : f32
    %14 = vector.broadcast %cst_11 : f32 to vector<16x128xf32>
    %15 = arith.maximumf %13, %14 : vector<16x128xf32>
    %16 = arith.truncf %15 : vector<16x128xf32> to vector<16x128xbf16>
    %c0_12 = arith.constant 0 : index
    %c0_13 = arith.constant 0 : index
    %17 = vector.load %arg6[%c0_12, %c0_13] : memref<128x128xbf16, #tpu.memory_space<vmem>>, vector<128x128xbf16>
    %cst_14 = arith.constant dense<0.000000e+00> : vector<16x128xf32>
    %18 = tpu.matmul %16, %17, %cst_14 {dimension_numbers = #tpu.dot_dimension_numbers<[1], [0], [0], [1], [0, 0, 1, 1], [], []>} : vector<16x128xbf16>, vector<128x128xbf16>, vector<16x128xf32> -> vector<16x128xf32>
    %c0_15 = arith.constant 0 : index
    %c0_16 = arith.constant 0 : index
    %19 = vector.load %arg7[%c0_15, %c0_16] : memref<1x128xf32, #tpu.memory_space<vmem>>, vector<1x128xf32>
    %20 = vector.broadcast %19 : vector<1x128xf32> to vector<16x128xf32>
    %21 = arith.addf %18, %20 : vector<16x128xf32>
    %c0_17 = arith.constant 0 : index
    %c0_18 = arith.constant 0 : index
    %22 = vector.load %arg8[%c0_17, %c0_18] : memref<16x128xf32, #tpu.memory_space<vmem>>, vector<16x128xf32>
    tpu.vector_store %arg8[%c0_17, %c0_18], %21 {strides = array<i32>} : memref<16x128xf32, #tpu.memory_space<vmem>>, vector<16x128xf32>,
    return
  }
  func.func @transform_0(%arg0: i32) -> (i32, i32) {
    %c0_i32 = arith.constant 0 : i32
    %c0_i32_0 = arith.constant 0 : i32
    return %arg0, %c0_i32 : i32, i32
  }
  func.func @transform_1(%arg0: i32) -> (i32, i32) {
    %c0_i32 = arith.constant 0 : i32
    %c0_i32_0 = arith.constant 0 : i32
    %c0_i32_1 = arith.constant 0 : i32
    return %c0_i32, %c0_i32_0 : i32, i32
  }
  func.func @transform_2(%arg0: i32) -> (i32, i32) {
    %c0_i32 = arith.constant 0 : i32
    %c0_i32_0 = arith.constant 0 : i32
    %c0_i32_1 = arith.constant 0 : i32
    return %c0_i32, %c0_i32_0 : i32, i32
  }
  func.func @transform_3(%arg0: i32) -> (i32, i32) {
    %c0_i32 = arith.constant 0 : i32
    %c0_i32_0 = arith.constant 0 : i32
    %c0_i32_1 = arith.constant 0 : i32
    return %c0_i32, %c0_i32_0 : i32, i32
  }
  func.func @transform_4(%arg0: i32) -> (i32, i32) {
    %c0_i32 = arith.constant 0 : i32
    %c0_i32_0 = arith.constant 0 : i32
    %c0_i32_1 = arith.constant 0 : i32
    return %c0_i32, %c0_i32_0 : i32, i32
  }
  func.func @transform_5(%arg0: i32) -> (i32, i32) {
    %c0_i32 = arith.constant 0 : i32
    %c0_i32_0 = arith.constant 0 : i32
    %c0_i32_1 = arith.constant 0 : i32
    return %c0_i32, %c0_i32_0 : i32, i32
  }
  func.func @transform_6(%arg0: i32) -> (i32, i32) {
    %c0_i32 = arith.constant 0 : i32
    %c0_i32_0 = arith.constant 0 : i32
    %c0_i32_1 = arith.constant 0 : i32
    return %c0_i32, %c0_i32_0 : i32, i32
  }
  func.func @transform_7(%arg0: i32) -> (i32, i32) {
    %c0_i32 = arith.constant 0 : i32
    %c0_i32_0 = arith.constant 0 : i32
    return %arg0, %c0_i32 : i32, i32
  }
}

</mosaic_0001>

<bundles_post_ra>
// kernel: net_forward.3
= control target key start
LH: loop header
LB: loop body
LE: loop exit
PB: predicated region body
PF: predicated region fallthrough
CT: control target
= control target key end

     0   :  { %s2966_s4 = inlined_call_operand.vmem [shape: bf16[128,128], index: 4, kind: input, shape index: {}]   ;;  %s2967_s0 = inlined_call_operand.vmem [shape: bf16[400,128], index: 0, kind: input, shape index: {}]   ;;  %s2968_s1 = inlined_call_operand.vmem [shape: bf16[400,128], index: 1, kind: input, shape index: {}]   ;;  %s2969_s2 = inlined_call_operand.vmem [shape: bf16[400,128], index: 2, kind: input, shape index: {}]   ;;  %s2970_s3 = inlined_call_operand.vmem [shape: bf16[400,128], index: 3, kind: input, shape index: {}]   ;;  %s2971_s5 = inlined_call_operand.vmem [shape: f32[1,128], index: 5, kind: input, shape index: {}]   ;;  %s2972_s6 = inlined_call_operand.vmem [shape: bf16[400,128], index: 6, kind: output, shape index: {}]  }
   0x1   :  { %v2220_v0 = vld [vmem:[%s2966_s4 + $0x38] sm:$0xff]  ;;  %v2219_v1 = vld [vmem:[%s2966_s4 + $0x30] sm:$0xff]  ;;  %v2218_v2 = vld [vmem:[%s2966_s4 + $0x28] sm:$0xff] }
   0x2   :  { %287 = vmatpush.bf16.msra.mxu0 %v2220_v0  ;;  %621 = vmatpush.bf16.msra.mxu1 %v2220_v0  ;;  %v2217_v3 = vld [vmem:[%s2966_s4 + $0x20] sm:$0xff]  ;;  %v2216_v4 = vld [vmem:[%s2966_s4 + $0x18] sm:$0xff]  ;;  %v2215_v5 = vld [vmem:[%s2966_s4 + $0x10] sm:$0xff] }
   0x3   :  { %1005 = vmatpush.bf16.msra.mxu2 %v2220_v0  ;;  %1389 = vmatpush.bf16.msra.mxu3 %v2220_v0  ;;  %v2214_v6 = vld [vmem:[%s2966_s4 + $0x8] sm:$0xff]  ;;  %v2213_v7 = vld [vmem:[%s2966_s4] sm:$0xff]  ;;  %v2223_v16 = vld [vmem:[%s2967_s0 + $0x10] sm:$0xff] }
   0x4   :  { %v2221_v8 = vld [vmem:[%s2967_s0] sm:$0xff]  ;;  %v2222_v12 = vld [vmem:[%s2967_s0 + $0x8] sm:$0xff]  ;;  %v2248_v17 = vld [vmem:[%s2968_s1 + $0x10] sm:$0xff] }
   0x5   :  { %v2246_v9 = vld [vmem:[%s2968_s1] sm:$0xff]  ;;  %v2247_v13 = vld [vmem:[%s2968_s1 + $0x8] sm:$0xff]  ;;  %v2273_v18 = vld [vmem:[%s2969_s2 + $0x10] sm:$0xff] }
   0x6   :  { %288 = vmatpush.bf16.msra.mxu0 %v2219_v1  ;;  %622 = vmatpush.bf16.msra.mxu1 %v2219_v1  ;;  %v2271_v10 = vld [vmem:[%s2969_s2] sm:$0xff]  ;;  %v2272_v14 = vld [vmem:[%s2969_s2 + $0x8] sm:$0xff]  ;;  %v2298_v19 = vld [vmem:[%s2970_s3 + $0x10] sm:$0xff] }
   0x7   :  { %1006 = vmatpush.bf16.msra.mxu2 %v2219_v1  ;;  %1390 = vmatpush.bf16.msra.mxu3 %v2219_v1  ;;  %v2296_v11 = vld [vmem:[%s2970_s3] sm:$0xff]  ;;  %v2297_v15 = vld [vmem:[%s2970_s3 + $0x8] sm:$0xff]  ;;  %v2224_v20 = vld [vmem:[%s2967_s0 + $0x18] sm:$0xff] }
   0x8   :  { %v2249_v21 = vld [vmem:[%s2968_s1 + $0x18] sm:$0xff]  ;;  %v2225_v24 = vld [vmem:[%s2967_s0 + $0x20] sm:$0xff]  ;;  %v2226_v28 = vld [vmem:[%s2967_s0 + $0x28] sm:$0xff] }
   0x9   :  { %v2274_v22 = vld [vmem:[%s2969_s2 + $0x18] sm:$0xff]  ;;  %v2250_v25 = vld [vmem:[%s2968_s1 + $0x20] sm:$0xff]  ;;  %v2251_v29 = vld [vmem:[%s2968_s1 + $0x28] sm:$0xff] }
   0xa   :  { %289 = vmatpush.bf16.msra.mxu0 %v2218_v2  ;;  %623 = vmatpush.bf16.msra.mxu1 %v2218_v2  ;;  %v2299_v23 = vld [vmem:[%s2970_s3 + $0x18] sm:$0xff]  ;;  %v2275_v26 = vld [vmem:[%s2969_s2 + $0x20] sm:$0xff]  ;;  %v2276_v30 = vld [vmem:[%s2969_s2 + $0x28] sm:$0xff] }
   0xb   :  { %1007 = vmatpush.bf16.msra.mxu2 %v2218_v2  ;;  %1391 = vmatpush.bf16.msra.mxu3 %v2218_v2  ;;  %v2300_v27 = vld [vmem:[%s2970_s3 + $0x20] sm:$0xff]  ;;  %v2301_v31 = vld [vmem:[%s2970_s3 + $0x28] sm:$0xff]  ;;  %v2227_v32 = vld [vmem:[%s2967_s0 + $0x30] sm:$0xff] }
   0xc   :  { %v2252_v33 = vld [vmem:[%s2968_s1 + $0x30] sm:$0xff]  ;;  %v2228_v36 = vld [vmem:[%s2967_s0 + $0x38] sm:$0xff]  ;;  %v2229_v40 = vld [vmem:[%s2967_s0 + $0x40] sm:$0xff] }
   0xd   :  { %v2277_v34 = vld [vmem:[%s2969_s2 + $0x30] sm:$0xff]  ;;  %v2253_v37 = vld [vmem:[%s2968_s1 + $0x38] sm:$0xff]  ;;  %v2254_v41 = vld [vmem:[%s2968_s1 + $0x40] sm:$0xff] }
   0xe   :  { %290 = vmatpush.bf16.msra.mxu0 %v2217_v3  ;;  %624 = vmatpush.bf16.msra.mxu1 %v2217_v3  ;;  %v2302_v35 = vld [vmem:[%s2970_s3 + $0x30] sm:$0xff]  ;;  %v2278_v38 = vld [vmem:[%s2969_s2 + $0x38] sm:$0xff]  ;;  %v2279_v44 = vld [vmem:[%s2969_s2 + $0x40] sm:$0xff] }
   0xf   :  { %1008 = vmatpush.bf16.msra.mxu2 %v2217_v3  ;;  %1392 = vmatpush.bf16.msra.mxu3 %v2217_v3  ;;  %v2303_v39 = vld [vmem:[%s2970_s3 + $0x38] sm:$0xff]  ;;  %v2304_v45 = vld [vmem:[%s2970_s3 + $0x40] sm:$0xff]  ;;  %v2230_v57 = vld [vmem:[%s2967_s0 + $0x48] sm:$0xff] }
  0x10   :  { %v2642_v53 = vld [vmem:[%s2971_s5] ss:$0 sm:$0xff]  ;;  %v2255_v58 = vld [vmem:[%s2968_s1 + $0x48] sm:$0xff] }
  0x11   :  { %v2280_v62 = vld [vmem:[%s2969_s2 + $0x48] sm:$0xff] }
  0x12   :  { %291 = vmatpush.bf16.msra.mxu0 %v2216_v4  ;;  %625 = vmatpush.bf16.msra.mxu1 %v2216_v4  ;;  %v2305_v63 = vld [vmem:[%s2970_s3 + $0x48] sm:$0xff] }
  0x13   :  { %1009 = vmatpush.bf16.msra.mxu2 %v2216_v4  ;;  %1393 = vmatpush.bf16.msra.mxu3 %v2216_v4 }
  0x16   :  { %292 = vmatpush.bf16.msra.mxu0 %v2215_v5  ;;  %626 = vmatpush.bf16.msra.mxu1 %v2215_v5 }
  0x17   :  { %1010 = vmatpush.bf16.msra.mxu2 %v2215_v5  ;;  %1394 = vmatpush.bf16.msra.mxu3 %v2215_v5 }
  0x1a   :  { %293 = vmatpush.bf16.msra.mxu0 %v2214_v6  ;;  %627 = vmatpush.bf16.msra.mxu1 %v2214_v6 }
  0x1b   :  { %1011 = vmatpush.bf16.msra.mxu2 %v2214_v6  ;;  %1395 = vmatpush.bf16.msra.mxu3 %v2214_v6 }
  0x1e   :  { %294 = vmatpush.bf16.msra.mxu0 %v2213_v7  ;;  %628 = vmatpush.bf16.msra.mxu1 %v2213_v7 }
  0x1f   :  { %1012 = vmatpush.bf16.msra.mxu2 %v2213_v7  ;;  %1396 = vmatpush.bf16.msra.mxu3 %v2213_v7 }
  0x21   :  { %295 = vmatmul.bf16.vlgmr.msra.gmra.mxu0 %v2221_v8  ;;  %629 = vmatmul.bf16.vlgmr.msra.gmra.mxu1 %v2246_v9 }
  0x22   :  { %1013 = vmatmul.bf16.vlgmr.msra.gmra.mxu2 %v2271_v10  ;;  %1397 = vmatmul.bf16.vlgmr.msra.gmra.mxu3 %v2296_v11 }
  0x31   :  { %300 = vmatmul.bf16.gmra.mxu0 %v2222_v12  ;;  %634 = vmatmul.bf16.gmra.mxu1 %v2247_v13 }
  0x32   :  { %1018 = vmatmul.bf16.gmra.mxu2 %v2272_v14  ;;  %1402 = vmatmul.bf16.gmra.mxu3 %v2297_v15 }
  0x41   :  { %305 = vmatmul.bf16.gmra.mxu0 %v2223_v16  ;;  %639 = vmatmul.bf16.gmra.mxu1 %v2248_v17  ;;  %v2231_v16 = vld [vmem:[%s2967_s0 + $0x50] sm:$0xff] }
  0x42   :  { %1023 = vmatmul.bf16.gmra.mxu2 %v2273_v18  ;;  %1407 = vmatmul.bf16.gmra.mxu3 %v2298_v19  ;;  %v2256_v17 = vld [vmem:[%s2968_s1 + $0x50] sm:$0xff] }
  0x51   :  { %310 = vmatmul.bf16.gmra.mxu0 %v2224_v20  ;;  %644 = vmatmul.bf16.gmra.mxu1 %v2249_v21  ;;  %v2281_v21 = vld [vmem:[%s2969_s2 + $0x50] sm:$0xff] }
  0x52   :  { %1028 = vmatmul.bf16.gmra.mxu2 %v2274_v22  ;;  %1412 = vmatmul.bf16.gmra.mxu3 %v2299_v23  ;;  %v2306_v22 = vld [vmem:[%s2970_s3 + $0x50] sm:$0xff] }
  0x61   :  { %315 = vmatmul.bf16.gmra.mxu0 %v2225_v24  ;;  %649 = vmatmul.bf16.gmra.mxu1 %v2250_v25 }
  0x62   :  { %1033 = vmatmul.bf16.gmra.mxu2 %v2275_v26  ;;  %1417 = vmatmul.bf16.gmra.mxu3 %v2300_v27 }
  0x71   :  { %320 = vmatmul.bf16.gmra.mxu0 %v2226_v28  ;;  %654 = vmatmul.bf16.gmra.mxu1 %v2251_v29 }
  0x72   :  { %1038 = vmatmul.bf16.gmra.mxu2 %v2276_v30  ;;  %1422 = vmatmul.bf16.gmra.mxu3 %v2301_v31 }
  0x81   :  { %325 = vmatmul.bf16.gmra.mxu0 %v2227_v32  ;;  %659 = vmatmul.bf16.gmra.mxu1 %v2252_v33 }
  0x82   :  { %1043 = vmatmul.bf16.gmra.mxu2 %v2277_v34  ;;  %1427 = vmatmul.bf16.gmra.mxu3 %v2302_v35 }
  0x91   :  { %330 = vmatmul.bf16.gmra.mxu0 %v2228_v36  ;;  %664 = vmatmul.bf16.gmra.mxu1 %v2253_v37 }
  0x92   :  { %1048 = vmatmul.bf16.gmra.mxu2 %v2278_v38  ;;  %1432 = vmatmul.bf16.gmra.mxu3 %v2303_v39  ;;  %v2232_v39 = vld [vmem:[%s2967_s0 + $0x58] sm:$0xff] }
  0x9e   :  { %v296_v42 = vpop.f32.mrf.mxu0  ;;  %v630_v43 = vpop.f32.mrf.mxu1 }
  0x9f   :  { %v755_v46 = vmax.f32 %v296_v42, %v630_v43 }
  0xa1   :  { %335 = vmatmul.bf16.gmra.mxu0 %v2229_v40  ;;  %669 = vmatmul.bf16.gmra.mxu1 %v2254_v41  ;;  %v2257_v40 = vld [vmem:[%s2968_s1 + $0x58] sm:$0xff] }
  0xa2   :  { %1053 = vmatmul.bf16.gmra.mxu2 %v2279_v44  ;;  %1437 = vmatmul.bf16.gmra.mxu3 %v2304_v45  ;;  %v2282_v44 = vld [vmem:[%s2969_s2 + $0x58] sm:$0xff] }
  0xa3   :  { %v2307_v45 = vld [vmem:[%s2970_s3 + $0x58] sm:$0xff] }
  0xa5   :  { %v1014_v47 = vpop.f32.mrf.mxu2  ;;  %v1398_v48 = vpop.f32.mrf.mxu3 }
  0xa6   :  { %v298_v49 = vpop.f32.mrf.mxu0  ;;  %v632_v50 = vpop.f32.mrf.mxu1  ;;  %v1139_v51 = vmax.f32 %v755_v46, %v1014_v47 }
  0xa7   :  { %v756_v54 = vmax.f32 %v298_v49, %v632_v50 }
  0xa8   :  { %v1523_v52 = vmax.f32 %v1139_v51, %v1398_v48 }
  0xaa   :  { %v1577_v0 = vadd.f32 %v2642_v53, %v1523_v52 }
  0xac   :  { %v1627_v3 = vmax.f32 %v1577_v0, 0.0  ;;  %v2258_v0 = vld [vmem:[%s2968_s1 + $0x60] sm:$0xff] }
  0xad   :  { %v1016_v55 = vpop.f32.mrf.mxu2  ;;  %v1400_v56 = vpop.f32.mrf.mxu3 }
  0xae   :  { %v1140_v59 = vmax.f32 %v756_v54, %v1016_v55  ;;  %v301_v60 = vpop.f32.mrf.mxu0  ;;  %v635_v61 = vpop.f32.mrf.mxu1 }
  0xaf   :  { %v757_v5 = vmax.f32 %v301_v60, %v635_v61 }
  0xb0   :  { %v1524_v1 = vmax.f32 %v1140_v59, %v1400_v56 }
  0xb1   :  { %340 = vmatmul.bf16.gmra.mxu0 %v2230_v57  ;;  %674 = vmatmul.bf16.gmra.mxu1 %v2255_v58 }
  0xb2   :  { %v1578_v2 = vadd.f32 %v2642_v53, %v1524_v1  ;;  %1058 = vmatmul.bf16.gmra.mxu2 %v2280_v62  ;;  %1442 = vmatmul.bf16.gmra.mxu3 %v2305_v63  ;;  %v2233_v63 = vld [vmem:[%s2967_s0 + $0x60] sm:$0xff] }
  0xb4   :  { %v1628_v4 = vmax.f32 %v1578_v2, 0.0 }
  0xb5   :  { %v1019_v6 = vpop.f32.mrf.mxu2  ;;  %v1403_v7 = vpop.f32.mrf.mxu3 }
  0xb6   :  { %v2324_v8 = vpack.c.bf16 %v1628_v4, %v1627_v3  ;;  %v303_v9 = vpop.f32.mrf.mxu0  ;;  %v637_v10 = vpop.f32.mrf.mxu1  ;;  %v1141_v11 = vmax.f32 %v757_v5, %v1019_v6  ;;  %v2283_v4 = vld [vmem:[%s2969_s2 + $0x60] sm:$0xff] }
  0xb7   :  { %v758_v13 = vmax.f32 %v303_v9, %v637_v10  ;;  %v2308_v5 = vld [vmem:[%s2970_s3 + $0x60] sm:$0xff] }
  0xb8   :  { %2325 = vst [vmem:[%s2972_s6] sm:$0xff] %v2324_v8   ;;  %v1525_v12 = vmax.f32 %v1141_v11, %v1403_v7 }
  0xba   :  { %v1579_v23 = vadd.f32 %v2642_v53, %v1525_v12 }
  0xbc   :  { %v1629_v26 = vmax.f32 %v1579_v23, 0.0  ;;  %v2259_v23 = vld [vmem:[%s2968_s1 + $0x68] sm:$0xff] }
  0xbd   :  { %v1021_v14 = vpop.f32.mrf.mxu2  ;;  %v1405_v15 = vpop.f32.mrf.mxu3 }
  0xbe   :  { %v1142_v18 = vmax.f32 %v758_v13, %v1021_v14  ;;  %v306_v19 = vpop.f32.mrf.mxu0  ;;  %v640_v20 = vpop.f32.mrf.mxu1 }
  0xbf   :  { %v759_v28 = vmax.f32 %v306_v19, %v640_v20 }
  0xc0   :  { %v1526_v24 = vmax.f32 %v1142_v18, %v1405_v15 }
  0xc1   :  { %345 = vmatmul.bf16.gmra.mxu0 %v2231_v16  ;;  %679 = vmatmul.bf16.gmra.mxu1 %v2256_v17 }
  0xc2   :  { %v1580_v25 = vadd.f32 %v2642_v53, %v1526_v24  ;;  %1063 = vmatmul.bf16.gmra.mxu2 %v2281_v21  ;;  %1447 = vmatmul.bf16.gmra.mxu3 %v2306_v22  ;;  %v2234_v22 = vld [vmem:[%s2967_s0 + $0x68] sm:$0xff] }
  0xc4   :  { %v1630_v27 = vmax.f32 %v1580_v25, 0.0 }
  0xc5   :  { %v1024_v29 = vpop.f32.mrf.mxu2  ;;  %v1408_v30 = vpop.f32.mrf.mxu3 }
  0xc6   :  { %v2329_v31 = vpack.c.bf16 %v1630_v27, %v1629_v26  ;;  %v308_v32 = vpop.f32.mrf.mxu0  ;;  %v642_v33 = vpop.f32.mrf.mxu1  ;;  %v1143_v34 = vmax.f32 %v759_v28, %v1024_v29  ;;  %v2284_v27 = vld [vmem:[%s2969_s2 + $0x68] sm:$0xff] }
  0xc7   :  { %v760_v36 = vmax.f32 %v308_v32, %v642_v33  ;;  %v2309_v28 = vld [vmem:[%s2970_s3 + $0x68] sm:$0xff] }
  0xc8   :  { %2446 = vst [vmem:[%s2972_s6 + $0x8] sm:$0xff] %v2329_v31   ;;  %v1527_v35 = vmax.f32 %v1143_v34, %v1408_v30 }
  0xca   :  { %v1581_v46 = vadd.f32 %v2642_v53, %v1527_v35 }
  0xcc   :  { %v1631_v49 = vmax.f32 %v1581_v46, 0.0  ;;  %v2260_v46 = vld [vmem:[%s2968_s1 + $0x70] sm:$0xff] }
  0xcd   :  { %v1026_v37 = vpop.f32.mrf.mxu2  ;;  %v1410_v38 = vpop.f32.mrf.mxu3 }
  0xce   :  { %v1144_v41 = vmax.f32 %v760_v36, %v1026_v37  ;;  %v311_v42 = vpop.f32.mrf.mxu0  ;;  %v645_v43 = vpop.f32.mrf.mxu1 }
  0xcf   :  { %v761_v51 = vmax.f32 %v311_v42, %v645_v43 }
  0xd0   :  { %v1528_v47 = vmax.f32 %v1144_v41, %v1410_v38 }
  0xd1   :  { %350 = vmatmul.bf16.gmra.mxu0 %v2232_v39  ;;  %684 = vmatmul.bf16.gmra.mxu1 %v2257_v40 }
  0xd2   :  { %v1582_v48 = vadd.f32 %v2642_v53, %v1528_v47  ;;  %1068 = vmatmul.bf16.gmra.mxu2 %v2282_v44  ;;  %1452 = vmatmul.bf16.gmra.mxu3 %v2307_v45  ;;  %v2235_v45 = vld [vmem:[%s2967_s0 + $0x70] sm:$0xff] }
  0xd4   :  { %v1632_v50 = vmax.f32 %v1582_v48, 0.0 }
  0xd5   :  { %v1029_v52 = vpop.f32.mrf.mxu2  ;;  %v1413_v54 = vpop.f32.mrf.mxu3 }
  0xd6   :  { %v2334_v55 = vpack.c.bf16 %v1632_v50, %v1631_v49  ;;  %v313_v56 = vpop.f32.mrf.mxu0  ;;  %v647_v57 = vpop.f32.mrf.mxu1  ;;  %v1145_v58 = vmax.f32 %v761_v51, %v1029_v52  ;;  %v2285_v50 = vld [vmem:[%s2969_s2 + $0x70] sm:$0xff] }
  0xd7   :  { %v762_v60 = vmax.f32 %v313_v56, %v647_v57  ;;  %v2310_v51 = vld [vmem:[%s2970_s3 + $0x70] sm:$0xff] }
  0xd8   :  { %2447 = vst [vmem:[%s2972_s6 + $0x10] sm:$0xff] %v2334_v55   ;;  %v1529_v59 = vmax.f32 %v1145_v58, %v1413_v54 }
  0xda   :  { %v1583_v6 = vadd.f32 %v2642_v53, %v1529_v59 }
  0xdc   :  { %v1633_v9 = vmax.f32 %v1583_v6, 0.0  ;;  %v2261_v6 = vld [vmem:[%s2968_s1 + $0x78] sm:$0xff] }
  0xdd   :  { %v1031_v61 = vpop.f32.mrf.mxu2  ;;  %v1415_v62 = vpop.f32.mrf.mxu3 }
  0xde   :  { %v1146_v1 = vmax.f32 %v762_v60, %v1031_v61  ;;  %v316_v2 = vpop.f32.mrf.mxu0  ;;  %v650_v3 = vpop.f32.mrf.mxu1 }
  0xdf   :  { %v763_v11 = vmax.f32 %v316_v2, %v650_v3 }
  0xe0   :  { %v1530_v7 = vmax.f32 %v1146_v1, %v1415_v62 }
  0xe1   :  { %355 = vmatmul.bf16.gmra.mxu0 %v2233_v63  ;;  %689 = vmatmul.bf16.gmra.mxu1 %v2258_v0 }
  0xe2   :  { %v1584_v8 = vadd.f32 %v2642_v53, %v1530_v7  ;;  %1073 = vmatmul.bf16.gmra.mxu2 %v2283_v4  ;;  %1457 = vmatmul.bf16.gmra.mxu3 %v2308_v5  ;;  %v2236_v5 = vld [vmem:[%s2967_s0 + $0x78] sm:$0xff] }
  0xe4   :  { %v1634_v10 = vmax.f32 %v1584_v8, 0.0 }
  0xe5   :  { %v1034_v12 = vpop.f32.mrf.mxu2  ;;  %v1418_v13 = vpop.f32.mrf.mxu3 }
  0xe6   :  { %v2339_v14 = vpack.c.bf16 %v1634_v10, %v1633_v9  ;;  %v318_v15 = vpop.f32.mrf.mxu0  ;;  %v652_v16 = vpop.f32.mrf.mxu1  ;;  %v1147_v17 = vmax.f32 %v763_v11, %v1034_v12  ;;  %v2286_v10 = vld [vmem:[%s2969_s2 + $0x78] sm:$0xff] }
  0xe7   :  { %v764_v19 = vmax.f32 %v318_v15, %v652_v16  ;;  %v2311_v11 = vld [vmem:[%s2970_s3 + $0x78] sm:$0xff] }
  0xe8   :  { %2448 = vst [vmem:[%s2972_s6 + $0x18] sm:$0xff] %v2339_v14   ;;  %v1531_v18 = vmax.f32 %v1147_v17, %v1418_v13 }
  0xea   :  { %v1585_v29 = vadd.f32 %v2642_v53, %v1531_v18 }
  0xec   :  { %v1635_v32 = vmax.f32 %v1585_v29, 0.0  ;;  %v2262_v29 = vld [vmem:[%s2968_s1 + $0x80] sm:$0xff] }
  0xed   :  { %v1036_v20 = vpop.f32.mrf.mxu2  ;;  %v1420_v21 = vpop.f32.mrf.mxu3 }
  0xee   :  { %v1148_v24 = vmax.f32 %v764_v19, %v1036_v20  ;;  %v321_v25 = vpop.f32.mrf.mxu0  ;;  %v655_v26 = vpop.f32.mrf.mxu1 }
  0xef   :  { %v765_v34 = vmax.f32 %v321_v25, %v655_v26 }
  0xf0   :  { %v1532_v30 = vmax.f32 %v1148_v24, %v1420_v21 }
  0xf1   :  { %360 = vmatmul.bf16.gmra.mxu0 %v2234_v22  ;;  %694 = vmatmul.bf16.gmra.mxu1 %v2259_v23 }
  0xf2   :  { %v1586_v31 = vadd.f32 %v2642_v53, %v1532_v30  ;;  %1078 = vmatmul.bf16.gmra.mxu2 %v2284_v27  ;;  %1462 = vmatmul.bf16.gmra.mxu3 %v2309_v28  ;;  %v2237_v28 = vld [vmem:[%s2967_s0 + $0x80] sm:$0xff] }
  0xf4   :  { %v1636_v33 = vmax.f32 %v1586_v31, 0.0 }
  0xf5   :  { %v1039_v35 = vpop.f32.mrf.mxu2  ;;  %v1423_v36 = vpop.f32.mrf.mxu3 }
  0xf6   :  { %v2344_v37 = vpack.c.bf16 %v1636_v33, %v1635_v32  ;;  %v323_v38 = vpop.f32.mrf.mxu0  ;;  %v657_v39 = vpop.f32.mrf.mxu1  ;;  %v1149_v40 = vmax.f32 %v765_v34, %v1039_v35  ;;  %v2287_v33 = vld [vmem:[%s2969_s2 + $0x80] sm:$0xff] }
  0xf7   :  { %v766_v42 = vmax.f32 %v323_v38, %v657_v39  ;;  %v2312_v34 = vld [vmem:[%s2970_s3 + $0x80] sm:$0xff] }
  0xf8   :  { %2449 = vst [vmem:[%s2972_s6 + $0x20] sm:$0xff] %v2344_v37   ;;  %v1533_v41 = vmax.f32 %v1149_v40, %v1423_v36 }
  0xfa   :  { %v1587_v52 = vadd.f32 %v2642_v53, %v1533_v41 }
  0xfc   :  { %v1637_v56 = vmax.f32 %v1587_v52, 0.0  ;;  %v2263_v52 = vld [vmem:[%s2968_s1 + $0x88] sm:$0xff] }
  0xfd   :  { %v1041_v43 = vpop.f32.mrf.mxu2  ;;  %v1425_v44 = vpop.f32.mrf.mxu3 }
  0xfe   :  { %v1150_v47 = vmax.f32 %v766_v42, %v1041_v43  ;;  %v326_v48 = vpop.f32.mrf.mxu0  ;;  %v660_v49 = vpop.f32.mrf.mxu1 }
  0xff   :  { %v767_v58 = vmax.f32 %v326_v48, %v660_v49 }
 0x100   :  { %v1534_v54 = vmax.f32 %v1150_v47, %v1425_v44 }
 0x101   :  { %365 = vmatmul.bf16.gmra.mxu0 %v2235_v45  ;;  %699 = vmatmul.bf16.gmra.mxu1 %v2260_v46 }
 0x102   :  { %v1588_v55 = vadd.f32 %v2642_v53, %v1534_v54  ;;  %1083 = vmatmul.bf16.gmra.mxu2 %v2285_v50  ;;  %1467 = vmatmul.bf16.gmra.mxu3 %v2310_v51  ;;  %v2238_v51 = vld [vmem:[%s2967_s0 + $0x88] sm:$0xff] }
 0x104   :  { %v1638_v57 = vmax.f32 %v1588_v55, 0.0 }
 0x105   :  { %v1044_v59 = vpop.f32.mrf.mxu2  ;;  %v1428_v60 = vpop.f32.mrf.mxu3 }
 0x106   :  { %v2349_v61 = vpack.c.bf16 %v1638_v57, %v1637_v56  ;;  %v328_v62 = vpop.f32.mrf.mxu0  ;;  %v662_v63 = vpop.f32.mrf.mxu1  ;;  %v1151_v0 = vmax.f32 %v767_v58, %v1044_v59  ;;  %v2288_v57 = vld [vmem:[%s2969_s2 + $0x88] sm:$0xff] }
 0x107   :  { %v768_v2 = vmax.f32 %v328_v62, %v662_v63  ;;  %v2313_v58 = vld [vmem:[%s2970_s3 + $0x88] sm:$0xff] }
 0x108   :  { %2450 = vst [vmem:[%s2972_s6 + $0x28] sm:$0xff] %v2349_v61   ;;  %v1535_v1 = vmax.f32 %v1151_v0, %v1428_v60 }
 0x10a   :  { %v1589_v12 = vadd.f32 %v2642_v53, %v1535_v1 }
 0x10c   :  { %v1639_v15 = vmax.f32 %v1589_v12, 0.0  ;;  %v2264_v12 = vld [vmem:[%s2968_s1 + $0x90] sm:$0xff] }
 0x10d   :  { %v1046_v3 = vpop.f32.mrf.mxu2  ;;  %v1430_v4 = vpop.f32.mrf.mxu3 }
 0x10e   :  { %v1152_v7 = vmax.f32 %v768_v2, %v1046_v3  ;;  %v331_v8 = vpop.f32.mrf.mxu0  ;;  %v665_v9 = vpop.f32.mrf.mxu1 }
 0x10f   :  { %v769_v17 = vmax.f32 %v331_v8, %v665_v9 }
 0x110   :  { %v1536_v13 = vmax.f32 %v1152_v7, %v1430_v4 }
 0x111   :  { %370 = vmatmul.bf16.gmra.mxu0 %v2236_v5  ;;  %704 = vmatmul.bf16.gmra.mxu1 %v2261_v6 }
 0x112   :  { %v1590_v14 = vadd.f32 %v2642_v53, %v1536_v13  ;;  %1088 = vmatmul.bf16.gmra.mxu2 %v2286_v10  ;;  %1472 = vmatmul.bf16.gmra.mxu3 %v2311_v11  ;;  %v2239_v11 = vld [vmem:[%s2967_s0 + $0x90] sm:$0xff] }
 0x114   :  { %v1640_v16 = vmax.f32 %v1590_v14, 0.0 }
 0x115   :  { %v1049_v18 = vpop.f32.mrf.mxu2  ;;  %v1433_v19 = vpop.f32.mrf.mxu3 }
 0x116   :  { %v2354_v20 = vpack.c.bf16 %v1640_v16, %v1639_v15  ;;  %v333_v21 = vpop.f32.mrf.mxu0  ;;  %v667_v22 = vpop.f32.mrf.mxu1  ;;  %v1153_v23 = vmax.f32 %v769_v17, %v1049_v18  ;;  %v2289_v16 = vld [vmem:[%s2969_s2 + $0x90] sm:$0xff] }
 0x117   :  { %v770_v25 = vmax.f32 %v333_v21, %v667_v22  ;;  %v2314_v17 = vld [vmem:[%s2970_s3 + $0x90] sm:$0xff] }
 0x118   :  { %2451 = vst [vmem:[%s2972_s6 + $0x30] sm:$0xff] %v2354_v20   ;;  %v1537_v24 = vmax.f32 %v1153_v23, %v1433_v19 }
 0x11a   :  { %v1591_v35 = vadd.f32 %v2642_v53, %v1537_v24 }
 0x11c   :  { %v1641_v38 = vmax.f32 %v1591_v35, 0.0  ;;  %v2265_v35 = vld [vmem:[%s2968_s1 + $0x98] sm:$0xff] }
 0x11d   :  { %v1051_v26 = vpop.f32.mrf.mxu2  ;;  %v1435_v27 = vpop.f32.mrf.mxu3 }
 0x11e   :  { %v1154_v30 = vmax.f32 %v770_v25, %v1051_v26  ;;  %v336_v31 = vpop.f32.mrf.mxu0  ;;  %v670_v32 = vpop.f32.mrf.mxu1 }
 0x11f   :  { %v771_v40 = vmax.f32 %v336_v31, %v670_v32 }
 0x120   :  { %v1538_v36 = vmax.f32 %v1154_v30, %v1435_v27 }
 0x121   :  { %375 = vmatmul.bf16.gmra.mxu0 %v2237_v28  ;;  %709 = vmatmul.bf16.gmra.mxu1 %v2262_v29 }
 0x122   :  { %v1592_v37 = vadd.f32 %v2642_v53, %v1538_v36  ;;  %1093 = vmatmul.bf16.gmra.mxu2 %v2287_v33  ;;  %1477 = vmatmul.bf16.gmra.mxu3 %v2312_v34  ;;  %v2240_v34 = vld [vmem:[%s2967_s0 + $0x98] sm:$0xff] }
 0x124   :  { %v1642_v39 = vmax.f32 %v1592_v37, 0.0 }
 0x125   :  { %v1054_v41 = vpop.f32.mrf.mxu2  ;;  %v1438_v42 = vpop.f32.mrf.mxu3 }
 0x126   :  { %v2359_v43 = vpack.c.bf16 %v1642_v39, %v1641_v38  ;;  %v338_v44 = vpop.f32.mrf.mxu0  ;;  %v672_v45 = vpop.f32.mrf.mxu1  ;;  %v1155_v46 = vmax.f32 %v771_v40, %v1054_v41  ;;  %v2290_v39 = vld [vmem:[%s2969_s2 + $0x98] sm:$0xff] }
 0x127   :  { %v772_v48 = vmax.f32 %v338_v44, %v672_v45  ;;  %v2315_v40 = vld [vmem:[%s2970_s3 + $0x98] sm:$0xff] }
 0x128   :  { %2452 = vst [vmem:[%s2972_s6 + $0x38] sm:$0xff] %v2359_v43   ;;  %v1539_v47 = vmax.f32 %v1155_v46, %v1438_v42 }
 0x12a   :  { %v1593_v59 = vadd.f32 %v2642_v53, %v1539_v47 }
 0x12c   :  { %v1643_v62 = vmax.f32 %v1593_v59, 0.0  ;;  %v2266_v59 = vld [vmem:[%s2968_s1 + $0xa0] sm:$0xff] }
 0x12d   :  { %v1056_v49 = vpop.f32.mrf.mxu2  ;;  %v1440_v50 = vpop.f32.mrf.mxu3 }
 0x12e   :  { %v1156_v54 = vmax.f32 %v772_v48, %v1056_v49  ;;  %v341_v55 = vpop.f32.mrf.mxu0  ;;  %v675_v56 = vpop.f32.mrf.mxu1 }
 0x12f   :  { %v773_v0 = vmax.f32 %v341_v55, %v675_v56 }
 0x130   :  { %v1540_v60 = vmax.f32 %v1156_v54, %v1440_v50 }
 0x131   :  { %380 = vmatmul.bf16.gmra.mxu0 %v2238_v51  ;;  %714 = vmatmul.bf16.gmra.mxu1 %v2263_v52 }
 0x132   :  { %v1594_v61 = vadd.f32 %v2642_v53, %v1540_v60  ;;  %1098 = vmatmul.bf16.gmra.mxu2 %v2288_v57  ;;  %1482 = vmatmul.bf16.gmra.mxu3 %v2313_v58  ;;  %v2241_v58 = vld [vmem:[%s2967_s0 + $0xa0] sm:$0xff] }
 0x134   :  { %v1644_v63 = vmax.f32 %v1594_v61, 0.0 }
 0x135   :  { %v1059_v1 = vpop.f32.mrf.mxu2  ;;  %v1443_v2 = vpop.f32.mrf.mxu3 }
 0x136   :  { %v2364_v3 = vpack.c.bf16 %v1644_v63, %v1643_v62  ;;  %v343_v4 = vpop.f32.mrf.mxu0  ;;  %v677_v5 = vpop.f32.mrf.mxu1  ;;  %v1157_v6 = vmax.f32 %v773_v0, %v1059_v1  ;;  %v2291_v63 = vld [vmem:[%s2969_s2 + $0xa0] sm:$0xff] }
 0x137   :  { %v774_v8 = vmax.f32 %v343_v4, %v677_v5  ;;  %v2316_v0 = vld [vmem:[%s2970_s3 + $0xa0] sm:$0xff] }
 0x138   :  { %2453 = vst [vmem:[%s2972_s6 + $0x40] sm:$0xff] %v2364_v3   ;;  %v1541_v7 = vmax.f32 %v1157_v6, %v1443_v2 }
 0x13a   :  { %v1595_v18 = vadd.f32 %v2642_v53, %v1541_v7 }
 0x13c   :  { %v1645_v21 = vmax.f32 %v1595_v18, 0.0  ;;  %v2267_v18 = vld [vmem:[%s2968_s1 + $0xa8] sm:$0xff] }
 0x13d   :  { %v1061_v9 = vpop.f32.mrf.mxu2  ;;  %v1445_v10 = vpop.f32.mrf.mxu3 }
 0x13e   :  { %v1158_v13 = vmax.f32 %v774_v8, %v1061_v9  ;;  %v346_v14 = vpop.f32.mrf.mxu0  ;;  %v680_v15 = vpop.f32.mrf.mxu1 }
 0x13f   :  { %v775_v23 = vmax.f32 %v346_v14, %v680_v15 }
 0x140   :  { %v1542_v19 = vmax.f32 %v1158_v13, %v1445_v10 }
 0x141   :  { %385 = vmatmul.bf16.gmra.mxu0 %v2239_v11  ;;  %719 = vmatmul.bf16.gmra.mxu1 %v2264_v12 }
 0x142   :  { %v1596_v20 = vadd.f32 %v2642_v53, %v1542_v19  ;;  %1103 = vmatmul.bf16.gmra.mxu2 %v2289_v16  ;;  %1487 = vmatmul.bf16.gmra.mxu3 %v2314_v17  ;;  %v2242_v17 = vld [vmem:[%s2967_s0 + $0xa8] sm:$0xff] }
 0x144   :  { %v1646_v22 = vmax.f32 %v1596_v20, 0.0 }
 0x145   :  { %v1064_v24 = vpop.f32.mrf.mxu2  ;;  %v1448_v25 = vpop.f32.mrf.mxu3 }
 0x146   :  { %v2369_v26 = vpack.c.bf16 %v1646_v22, %v1645_v21  ;;  %v348_v27 = vpop.f32.mrf.mxu0  ;;  %v682_v28 = vpop.f32.mrf.mxu1  ;;  %v1159_v29 = vmax.f32 %v775_v23, %v1064_v24  ;;  %v2292_v22 = vld [vmem:[%s2969_s2 + $0xa8] sm:$0xff] }
 0x147   :  { %v776_v31 = vmax.f32 %v348_v27, %v682_v28  ;;  %v2317_v23 = vld [vmem:[%s2970_s3 + $0xa8] sm:$0xff] }
 0x148   :  { %2454 = vst [vmem:[%s2972_s6 + $0x48] sm:$0xff] %v2369_v26   ;;  %v1543_v30 = vmax.f32 %v1159_v29, %v1448_v25 }
 0x14a   :  { %v1597_v41 = vadd.f32 %v2642_v53, %v1543_v30 }
 0x14c   :  { %v1647_v44 = vmax.f32 %v1597_v41, 0.0  ;;  %v2268_v41 = vld [vmem:[%s2968_s1 + $0xb0] sm:$0xff] }
 0x14d   :  { %v1066_v32 = vpop.f32.mrf.mxu2  ;;  %v1450_v33 = vpop.f32.mrf.mxu3 }
 0x14e   :  { %v1160_v36 = vmax.f32 %v776_v31, %v1066_v32  ;;  %v351_v37 = vpop.f32.mrf.mxu0  ;;  %v685_v38 = vpop.f32.mrf.mxu1 }
 0x14f   :  { %v777_v46 = vmax.f32 %v351_v37, %v685_v38 }
 0x150   :  { %v1544_v42 = vmax.f32 %v1160_v36, %v1450_v33 }
 0x151   :  { %390 = vmatmul.bf16.gmra.mxu0 %v2240_v34  ;;  %724 = vmatmul.bf16.gmra.mxu1 %v2265_v35 }
 0x152   :  { %v1598_v43 = vadd.f32 %v2642_v53, %v1544_v42  ;;  %1108 = vmatmul.bf16.gmra.mxu2 %v2290_v39  ;;  %1492 = vmatmul.bf16.gmra.mxu3 %v2315_v40  ;;  %v2243_v40 = vld [vmem:[%s2967_s0 + $0xb0] sm:$0xff] }
 0x154   :  { %v1648_v45 = vmax.f32 %v1598_v43, 0.0 }
 0x155   :  { %v1069_v47 = vpop.f32.mrf.mxu2  ;;  %v1453_v48 = vpop.f32.mrf.mxu3 }
 0x156   :  { %v2374_v49 = vpack.c.bf16 %v1648_v45, %v1647_v44  ;;  %v353_v50 = vpop.f32.mrf.mxu0  ;;  %v687_v51 = vpop.f32.mrf.mxu1  ;;  %v1161_v52 = vmax.f32 %v777_v46, %v1069_v47  ;;  %v2293_v45 = vld [vmem:[%s2969_s2 + $0xb0] sm:$0xff] }
 0x157   :  { %v778_v55 = vmax.f32 %v353_v50, %v687_v51  ;;  %v2318_v46 = vld [vmem:[%s2970_s3 + $0xb0] sm:$0xff] }
 0x158   :  { %2455 = vst [vmem:[%s2972_s6 + $0x50] sm:$0xff] %v2374_v49   ;;  %v1545_v54 = vmax.f32 %v1161_v52, %v1453_v48 }
 0x15a   :  { %v1599_v1 = vadd.f32 %v2642_v53, %v1545_v54 }
 0x15c   :  { %v1649_v4 = vmax.f32 %v1599_v1, 0.0  ;;  %v2269_v1 = vld [vmem:[%s2968_s1 + $0xb8] sm:$0xff] }
 0x15d   :  { %v1071_v56 = vpop.f32.mrf.mxu2  ;;  %v1455_v57 = vpop.f32.mrf.mxu3 }
 0x15e   :  { %v1162_v60 = vmax.f32 %v778_v55, %v1071_v56  ;;  %v356_v61 = vpop.f32.mrf.mxu0  ;;  %v690_v62 = vpop.f32.mrf.mxu1 }
 0x15f   :  { %v779_v6 = vmax.f32 %v356_v61, %v690_v62 }
 0x160   :  { %v1546_v2 = vmax.f32 %v1162_v60, %v1455_v57 }
 0x161   :  { %395 = vmatmul.bf16.gmra.mxu0 %v2241_v58  ;;  %729 = vmatmul.bf16.gmra.mxu1 %v2266_v59 }
 0x162   :  { %v1600_v3 = vadd.f32 %v2642_v53, %v1546_v2  ;;  %1113 = vmatmul.bf16.gmra.mxu2 %v2291_v63  ;;  %1497 = vmatmul.bf16.gmra.mxu3 %v2316_v0  ;;  %v2244_v0 = vld [vmem:[%s2967_s0 + $0xb8] sm:$0xff] }
 0x164   :  { %v1650_v5 = vmax.f32 %v1600_v3, 0.0 }
 0x165   :  { %v1074_v7 = vpop.f32.mrf.mxu2  ;;  %v1458_v8 = vpop.f32.mrf.mxu3 }
 0x166   :  { %v2379_v9 = vpack.c.bf16 %v1650_v5, %v1649_v4  ;;  %v358_v10 = vpop.f32.mrf.mxu0  ;;  %v692_v11 = vpop.f32.mrf.mxu1  ;;  %v1163_v12 = vmax.f32 %v779_v6, %v1074_v7  ;;  %v2294_v5 = vld [vmem:[%s2969_s2 + $0xb8] sm:$0xff] }
 0x167   :  { %v780_v14 = vmax.f32 %v358_v10, %v692_v11  ;;  %v2319_v6 = vld [vmem:[%s2970_s3 + $0xb8] sm:$0xff] }
 0x168   :  { %2456 = vst [vmem:[%s2972_s6 + $0x58] sm:$0xff] %v2379_v9   ;;  %v1547_v13 = vmax.f32 %v1163_v12, %v1458_v8 }
 0x16a   :  { %v1601_v24 = vadd.f32 %v2642_v53, %v1547_v13 }
 0x16c   :  { %v1651_v27 = vmax.f32 %v1601_v24, 0.0  ;;  %v2270_v24 = vld [vmem:[%s2968_s1 + $0xc0] sm:$0xff] }
 0x16d   :  { %v1076_v15 = vpop.f32.mrf.mxu2  ;;  %v1460_v16 = vpop.f32.mrf.mxu3 }
 0x16e   :  { %v1164_v19 = vmax.f32 %v780_v14, %v1076_v15  ;;  %v361_v20 = vpop.f32.mrf.mxu0  ;;  %v695_v21 = vpop.f32.mrf.mxu1 }
 0x16f   :  { %v781_v29 = vmax.f32 %v361_v20, %v695_v21 }
 0x170   :  { %v1548_v25 = vmax.f32 %v1164_v19, %v1460_v16 }
 0x171   :  { %400 = vmatmul.bf16.gmra.mxu0 %v2242_v17  ;;  %734 = vmatmul.bf16.gmra.mxu1 %v2267_v18 }
 0x172   :  { %v1602_v26 = vadd.f32 %v2642_v53, %v1548_v25  ;;  %1118 = vmatmul.bf16.gmra.mxu2 %v2292_v22  ;;  %1502 = vmatmul.bf16.gmra.mxu3 %v2317_v23  ;;  %v2245_v23 = vld [vmem:[%s2967_s0 + $0xc0] sm:$0xff] }
 0x174   :  { %v1652_v28 = vmax.f32 %v1602_v26, 0.0 }
 0x175   :  { %v1079_v30 = vpop.f32.mrf.mxu2  ;;  %v1463_v31 = vpop.f32.mrf.mxu3 }
 0x176   :  { %v2384_v32 = vpack.c.bf16 %v1652_v28, %v1651_v27  ;;  %v363_v33 = vpop.f32.mrf.mxu0  ;;  %v697_v34 = vpop.f32.mrf.mxu1  ;;  %v1165_v35 = vmax.f32 %v781_v29, %v1079_v30  ;;  %v2295_v28 = vld [vmem:[%s2969_s2 + $0xc0] sm:$0xff] }
 0x177   :  { %v782_v37 = vmax.f32 %v363_v33, %v697_v34  ;;  %v2320_v29 = vld [vmem:[%s2970_s3 + $0xc0] sm:$0xff] }
 0x178   :  { %2457 = vst [vmem:[%s2972_s6 + $0x60] sm:$0xff] %v2384_v32   ;;  %v1549_v36 = vmax.f32 %v1165_v35, %v1463_v31 }
 0x17a   :  { %v1603_v47 = vadd.f32 %v2642_v53, %v1549_v36 }
 0x17c   :  { %v1653_v50 = vmax.f32 %v1603_v47, 0.0 }
 0x17d   :  { %v1081_v38 = vpop.f32.mrf.mxu2  ;;  %v1465_v39 = vpop.f32.mrf.mxu3 }
 0x17e   :  { %v1166_v42 = vmax.f32 %v782_v37, %v1081_v38  ;;  %v366_v43 = vpop.f32.mrf.mxu0  ;;  %v700_v44 = vpop.f32.mrf.mxu1 }
 0x17f   :  { %v783_v52 = vmax.f32 %v366_v43, %v700_v44 }
 0x180   :  { %v1550_v48 = vmax.f32 %v1166_v42, %v1465_v39 }
 0x181   :  { %405 = vmatmul.bf16.gmra.mxu0 %v2243_v40  ;;  %739 = vmatmul.bf16.gmra.mxu1 %v2268_v41 }
 0x182   :  { %v1604_v49 = vadd.f32 %v2642_v53, %v1550_v48  ;;  %1123 = vmatmul.bf16.gmra.mxu2 %v2293_v45  ;;  %1507 = vmatmul.bf16.gmra.mxu3 %v2318_v46 }
 0x184   :  { %v1654_v51 = vmax.f32 %v1604_v49, 0.0 }
 0x185   :  { %v1084_v54 = vpop.f32.mrf.mxu2  ;;  %v1468_v55 = vpop.f32.mrf.mxu3 }
 0x186   :  { %v2389_v56 = vpack.c.bf16 %v1654_v51, %v1653_v50  ;;  %v368_v57 = vpop.f32.mrf.mxu0  ;;  %v702_v58 = vpop.f32.mrf.mxu1  ;;  %v1167_v59 = vmax.f32 %v783_v52, %v1084_v54 }
 0x187   :  { %v784_v61 = vmax.f32 %v368_v57, %v702_v58 }
 0x188   :  { %2458 = vst [vmem:[%s2972_s6 + $0x68] sm:$0xff] %v2389_v56   ;;  %v1551_v60 = vmax.f32 %v1167_v59, %v1468_v55 }
 0x18a   :  { %v1605_v7 = vadd.f32 %v2642_v53, %v1551_v60 }
 0x18c   :  { %v1655_v10 = vmax.f32 %v1605_v7, 0.0 }
 0x18d   :  { %v1086_v62 = vpop.f32.mrf.mxu2  ;;  %v1470_v63 = vpop.f32.mrf.mxu3 }
 0x18e   :  { %v1168_v2 = vmax.f32 %v784_v61, %v1086_v62  ;;  %v371_v3 = vpop.f32.mrf.mxu0  ;;  %v705_v4 = vpop.f32.mrf.mxu1 }
 0x18f   :  { %v785_v12 = vmax.f32 %v371_v3, %v705_v4 }
 0x190   :  { %v1552_v8 = vmax.f32 %v1168_v2, %v1470_v63 }
 0x191   :  { %410 = vmatmul.bf16.gmra.mxu0 %v2244_v0  ;;  %744 = vmatmul.bf16.gmra.mxu1 %v2269_v1 }
 0x192   :  { %v1606_v9 = vadd.f32 %v2642_v53, %v1552_v8  ;;  %1128 = vmatmul.bf16.gmra.mxu2 %v2294_v5  ;;  %1512 = vmatmul.bf16.gmra.mxu3 %v2319_v6 }
 0x194   :  { %v1656_v11 = vmax.f32 %v1606_v9, 0.0 }
 0x195   :  { %v1089_v13 = vpop.f32.mrf.mxu2  ;;  %v1473_v14 = vpop.f32.mrf.mxu3 }
 0x196   :  { %v2394_v15 = vpack.c.bf16 %v1656_v11, %v1655_v10  ;;  %v373_v16 = vpop.f32.mrf.mxu0  ;;  %v707_v17 = vpop.f32.mrf.mxu1  ;;  %v1169_v18 = vmax.f32 %v785_v12, %v1089_v13 }
 0x197   :  { %v786_v20 = vmax.f32 %v373_v16, %v707_v17 }
 0x198   :  { %2459 = vst [vmem:[%s2972_s6 + $0x70] sm:$0xff] %v2394_v15   ;;  %v1553_v19 = vmax.f32 %v1169_v18, %v1473_v14 }
 0x19a   :  { %v1607_v30 = vadd.f32 %v2642_v53, %v1553_v19 }
 0x19c   :  { %v1657_v33 = vmax.f32 %v1607_v30, 0.0 }
 0x19d   :  { %v1091_v21 = vpop.f32.mrf.mxu2  ;;  %v1475_v22 = vpop.f32.mrf.mxu3 }
 0x19e   :  { %v1170_v25 = vmax.f32 %v786_v20, %v1091_v21  ;;  %v376_v26 = vpop.f32.mrf.mxu0  ;;  %v710_v27 = vpop.f32.mrf.mxu1 }
 0x19f   :  { %v787_v35 = vmax.f32 %v376_v26, %v710_v27 }
 0x1a0   :  { %v1554_v31 = vmax.f32 %v1170_v25, %v1475_v22 }
 0x1a1   :  { %415 = vmatmul.bf16.gmra.mxu0 %v2245_v23  ;;  %749 = vmatmul.bf16.gmra.mxu1 %v2270_v24 }
 0x1a2   :  { %v1608_v32 = vadd.f32 %v2642_v53, %v1554_v31  ;;  %1133 = vmatmul.bf16.gmra.mxu2 %v2295_v28  ;;  %1517 = vmatmul.bf16.gmra.mxu3 %v2320_v29 }
 0x1a4   :  { %v1658_v34 = vmax.f32 %v1608_v32, 0.0 }
 0x1a5   :  { %v1094_v36 = vpop.f32.mrf.mxu2  ;;  %v1478_v37 = vpop.f32.mrf.mxu3 }
 0x1a6   :  { %v2399_v38 = vpack.c.bf16 %v1658_v34, %v1657_v33  ;;  %v378_v39 = vpop.f32.mrf.mxu0  ;;  %v712_v40 = vpop.f32.mrf.mxu1  ;;  %v1171_v41 = vmax.f32 %v787_v35, %v1094_v36 }
 0x1a7   :  { %v788_v43 = vmax.f32 %v378_v39, %v712_v40 }
 0x1a8   :  { %2460 = vst [vmem:[%s2972_s6 + $0x78] sm:$0xff] %v2399_v38   ;;  %v1555_v42 = vmax.f32 %v1171_v41, %v1478_v37 }
 0x1aa   :  { %v1609_v49 = vadd.f32 %v2642_v53, %v1555_v42  ;;  %v2934_v42 = vld [vmem:[%s2971_s5] ss:$0 sm:$0xff] }
 0x1ac   :  { %v1659_v52 = vmax.f32 %v1609_v49, 0.0 }
 0x1ad   :  { %v1096_v44 = vpop.f32.mrf.mxu2  ;;  %v1480_v45 = vpop.f32.mrf.mxu3 }
 0x1ae   :  { %v1172_v46 = vmax.f32 %v788_v43, %v1096_v44  ;;  %v381_v47 = vpop.f32.mrf.mxu0  ;;  %v715_v48 = vpop.f32.mrf.mxu1 }
 0x1af   :  { %v789_v55 = vmax.f32 %v381_v47, %v715_v48 }
 0x1b0   :  { %v1556_v50 = vmax.f32 %v1172_v46, %v1480_v45 }
 0x1b2   :  { %v1610_v51 = vadd.f32 %v2642_v53, %v1556_v50 }
 0x1b4   :  { %v1660_v54 = vmax.f32 %v1610_v51, 0.0 }
 0x1b5   :  { %v1099_v56 = vpop.f32.mrf.mxu2  ;;  %v1483_v57 = vpop.f32.mrf.mxu3 }
 0x1b6   :  { %v2404_v58 = vpack.c.bf16 %v1660_v54, %v1659_v52  ;;  %v383_v59 = vpop.f32.mrf.mxu0  ;;  %v717_v60 = vpop.f32.mrf.mxu1  ;;  %v1173_v61 = vmax.f32 %v789_v55, %v1099_v56 }
 0x1b7   :  { %v790_v63 = vmax.f32 %v383_v59, %v717_v60 }
 0x1b8   :  { %2461 = vst [vmem:[%s2972_s6 + $0x80] sm:$0xff] %v2404_v58   ;;  %v1557_v62 = vmax.f32 %v1173_v61, %v1483_v57 }
 0x1ba   :  { %v1611_v5 = vadd.f32 %v2642_v53, %v1557_v62 }
 0x1bc   :  { %v1661_v8 = vmax.f32 %v1611_v5, 0.0 }
 0x1bd   :  { %v1101_v0 = vpop.f32.mrf.mxu2  ;;  %v1485_v1 = vpop.f32.mrf.mxu3 }
 0x1be   :  { %v1174_v2 = vmax.f32 %v790_v63, %v1101_v0  ;;  %v386_v3 = vpop.f32.mrf.mxu0  ;;  %v720_v4 = vpop.f32.mrf.mxu1 }
 0x1bf   :  { %v791_v10 = vmax.f32 %v386_v3, %v720_v4 }
 0x1c0   :  { %v1558_v6 = vmax.f32 %v1174_v2, %v1485_v1 }
 0x1c2   :  { %v1612_v7 = vadd.f32 %v2642_v53, %v1558_v6 }
 0x1c4   :  { %v1662_v9 = vmax.f32 %v1612_v7, 0.0 }
 0x1c5   :  { %v1104_v11 = vpop.f32.mrf.mxu2  ;;  %v1488_v12 = vpop.f32.mrf.mxu3 }
 0x1c6   :  { %v2409_v13 = vpack.c.bf16 %v1662_v9, %v1661_v8  ;;  %v388_v14 = vpop.f32.mrf.mxu0  ;;  %v722_v15 = vpop.f32.mrf.mxu1  ;;  %v1175_v16 = vmax.f32 %v791_v10, %v1104_v11 }
 0x1c7   :  { %v792_v18 = vmax.f32 %v388_v14, %v722_v15 }
 0x1c8   :  { %2462 = vst [vmem:[%s2972_s6 + $0x88] sm:$0xff] %v2409_v13   ;;  %v1559_v17 = vmax.f32 %v1175_v16, %v1488_v12 }
 0x1ca   :  { %v1613_v24 = vadd.f32 %v2642_v53, %v1559_v17 }
 0x1cc   :  { %v1663_v27 = vmax.f32 %v1613_v24, 0.0 }
 0x1cd   :  { %v1106_v19 = vpop.f32.mrf.mxu2  ;;  %v1490_v20 = vpop.f32.mrf.mxu3 }
 0x1ce   :  { %v1176_v21 = vmax.f32 %v792_v18, %v1106_v19  ;;  %v391_v22 = vpop.f32.mrf.mxu0  ;;  %v725_v23 = vpop.f32.mrf.mxu1 }
 0x1cf   :  { %v793_v29 = vmax.f32 %v391_v22, %v725_v23 }
 0x1d0   :  { %v1560_v25 = vmax.f32 %v1176_v21, %v1490_v20 }
 0x1d2   :  { %v1614_v26 = vadd.f32 %v2642_v53, %v1560_v25 }
 0x1d4   :  { %v1664_v28 = vmax.f32 %v1614_v26, 0.0 }
 0x1d5   :  { %v1109_v30 = vpop.f32.mrf.mxu2  ;;  %v1493_v31 = vpop.f32.mrf.mxu3 }
 0x1d6   :  { %v2414_v32 = vpack.c.bf16 %v1664_v28, %v1663_v27  ;;  %v393_v33 = vpop.f32.mrf.mxu0  ;;  %v727_v34 = vpop.f32.mrf.mxu1  ;;  %v1177_v35 = vmax.f32 %v793_v29, %v1109_v30 }
 0x1d7   :  { %v794_v37 = vmax.f32 %v393_v33, %v727_v34 }
 0x1d8   :  { %2463 = vst [vmem:[%s2972_s6 + $0x90] sm:$0xff] %v2414_v32   ;;  %v1561_v36 = vmax.f32 %v1177_v35, %v1493_v31 }
 0x1da   :  { %v1615_v43 = vadd.f32 %v2934_v42, %v1561_v36 }
 0x1dc   :  { %v1665_v46 = vmax.f32 %v1615_v43, 0.0 }
 0x1dd   :  { %v1111_v38 = vpop.f32.mrf.mxu2  ;;  %v1495_v39 = vpop.f32.mrf.mxu3 }
 0x1de   :  { %v1178_v40 = vmax.f32 %v794_v37, %v1111_v38  ;;  %v396_v41 = vpop.f32.mrf.mxu0  ;;  %v730_v53 = vpop.f32.mrf.mxu1 }
 0x1df   :  { %v795_v48 = vmax.f32 %v396_v41, %v730_v53 }
 0x1e0   :  { %v1562_v44 = vmax.f32 %v1178_v40, %v1495_v39 }
 0x1e2   :  { %v1616_v45 = vadd.f32 %v2934_v42, %v1562_v44 }
 0x1e4   :  { %v1666_v47 = vmax.f32 %v1616_v45, 0.0 }
 0x1e5   :  { %v1114_v49 = vpop.f32.mrf.mxu2  ;;  %v1498_v50 = vpop.f32.mrf.mxu3 }
 0x1e6   :  { %v2419_v51 = vpack.c.bf16 %v1666_v47, %v1665_v46  ;;  %v398_v52 = vpop.f32.mrf.mxu0  ;;  %v732_v54 = vpop.f32.mrf.mxu1  ;;  %v1179_v55 = vmax.f32 %v795_v48, %v1114_v49 }
 0x1e7   :  { %v796_v57 = vmax.f32 %v398_v52, %v732_v54 }
 0x1e8   :  { %2464 = vst [vmem:[%s2972_s6 + $0x98] sm:$0xff] %v2419_v51   ;;  %v1563_v56 = vmax.f32 %v1179_v55, %v1498_v50 }
 0x1ea   :  { %v1617_v63 = vadd.f32 %v2934_v42, %v1563_v56 }
 0x1ec   :  { %v1667_v2 = vmax.f32 %v1617_v63, 0.0 }
 0x1ed   :  { %v1116_v58 = vpop.f32.mrf.mxu2  ;;  %v1500_v59 = vpop.f32.mrf.mxu3 }
 0x1ee   :  { %v1180_v60 = vmax.f32 %v796_v57, %v1116_v58  ;;  %v401_v61 = vpop.f32.mrf.mxu0  ;;  %v735_v62 = vpop.f32.mrf.mxu1 }
 0x1ef   :  { %v797_v4 = vmax.f32 %v401_v61, %v735_v62 }
 0x1f0   :  { %v1564_v0 = vmax.f32 %v1180_v60, %v1500_v59 }
 0x1f2   :  { %v1618_v1 = vadd.f32 %v2934_v42, %v1564_v0 }
 0x1f4   :  { %v1668_v3 = vmax.f32 %v1618_v1, 0.0 }
 0x1f5   :  { %v1119_v5 = vpop.f32.mrf.mxu2  ;;  %v1503_v6 = vpop.f32.mrf.mxu3 }
 0x1f6   :  { %v2424_v7 = vpack.c.bf16 %v1668_v3, %v1667_v2  ;;  %v403_v8 = vpop.f32.mrf.mxu0  ;;  %v737_v9 = vpop.f32.mrf.mxu1  ;;  %v1181_v10 = vmax.f32 %v797_v4, %v1119_v5 }
 0x1f7   :  { %v798_v12 = vmax.f32 %v403_v8, %v737_v9 }
 0x1f8   :  { %2465 = vst [vmem:[%s2972_s6 + $0xa0] sm:$0xff] %v2424_v7   ;;  %v1565_v11 = vmax.f32 %v1181_v10, %v1503_v6 }
 0x1fa   :  { %v1619_v18 = vadd.f32 %v2934_v42, %v1565_v11 }
 0x1fc   :  { %v1669_v21 = vmax.f32 %v1619_v18, 0.0 }
 0x1fd   :  { %v1121_v13 = vpop.f32.mrf.mxu2  ;;  %v1505_v14 = vpop.f32.mrf.mxu3 }
 0x1fe   :  { %v1182_v15 = vmax.f32 %v798_v12, %v1121_v13  ;;  %v406_v16 = vpop.f32.mrf.mxu0  ;;  %v740_v17 = vpop.f32.mrf.mxu1 }
 0x1ff   :  { %v799_v23 = vmax.f32 %v406_v16, %v740_v17 }
 0x200   :  { %v1566_v19 = vmax.f32 %v1182_v15, %v1505_v14 }
 0x202   :  { %v1620_v20 = vadd.f32 %v2934_v42, %v1566_v19 }
 0x204   :  { %v1670_v22 = vmax.f32 %v1620_v20, 0.0 }
 0x205   :  { %v1124_v24 = vpop.f32.mrf.mxu2  ;;  %v1508_v25 = vpop.f32.mrf.mxu3 }
 0x206   :  { %v2429_v26 = vpack.c.bf16 %v1670_v22, %v1669_v21  ;;  %v408_v27 = vpop.f32.mrf.mxu0  ;;  %v742_v28 = vpop.f32.mrf.mxu1  ;;  %v1183_v29 = vmax.f32 %v799_v23, %v1124_v24 }
 0x207   :  { %v800_v31 = vmax.f32 %v408_v27, %v742_v28 }
 0x208   :  { %2466 = vst [vmem:[%s2972_s6 + $0xa8] sm:$0xff] %v2429_v26   ;;  %v1567_v30 = vmax.f32 %v1183_v29, %v1508_v25 }
 0x20a   :  { %v1621_v37 = vadd.f32 %v2934_v42, %v1567_v30 }
 0x20c   :  { %v1671_v40 = vmax.f32 %v1621_v37, 0.0 }
 0x20d   :  { %v1126_v32 = vpop.f32.mrf.mxu2  ;;  %v1510_v33 = vpop.f32.mrf.mxu3 }
 0x20e   :  { %v1184_v34 = vmax.f32 %v800_v31, %v1126_v32  ;;  %v411_v35 = vpop.f32.mrf.mxu0  ;;  %v745_v36 = vpop.f32.mrf.mxu1 }
 0x20f   :  { %v801_v53 = vmax.f32 %v411_v35, %v745_v36 }
 0x210   :  { %v1568_v38 = vmax.f32 %v1184_v34, %v1510_v33 }
 0x212   :  { %v1622_v39 = vadd.f32 %v2934_v42, %v1568_v38 }
 0x214   :  { %v1672_v41 = vmax.f32 %v1622_v39, 0.0 }
 0x215   :  { %v1129_v43 = vpop.f32.mrf.mxu2  ;;  %v1513_v44 = vpop.f32.mrf.mxu3 }
 0x216   :  { %v2434_v45 = vpack.c.bf16 %v1672_v41, %v1671_v40  ;;  %v413_v46 = vpop.f32.mrf.mxu0  ;;  %v747_v47 = vpop.f32.mrf.mxu1  ;;  %v1185_v48 = vmax.f32 %v801_v53, %v1129_v43 }
 0x217   :  { %v802_v50 = vmax.f32 %v413_v46, %v747_v47 }
 0x218   :  { %2467 = vst [vmem:[%s2972_s6 + $0xb0] sm:$0xff] %v2434_v45   ;;  %v1569_v49 = vmax.f32 %v1185_v48, %v1513_v44 }
 0x21a   :  { %v1623_v57 = vadd.f32 %v2934_v42, %v1569_v49 }
 0x21c   :  { %v1673_v60 = vmax.f32 %v1623_v57, 0.0 }
 0x21d   :  { %v1131_v51 = vpop.f32.mrf.mxu2  ;;  %v1515_v52 = vpop.f32.mrf.mxu3 }
 0x21e   :  { %v1186_v54 = vmax.f32 %v802_v50, %v1131_v51  ;;  %v416_v55 = vpop.f32.mrf.mxu0  ;;  %v750_v56 = vpop.f32.mrf.mxu1 }
 0x21f   :  { %v803_v62 = vmax.f32 %v416_v55, %v750_v56 }
 0x220   :  { %v1570_v58 = vmax.f32 %v1186_v54, %v1515_v52 }
 0x222   :  { %v1624_v59 = vadd.f32 %v2934_v42, %v1570_v58 }
 0x224   :  { %v1674_v61 = vmax.f32 %v1624_v59, 0.0 }
 0x225   :  { %v1134_v63 = vpop.f32.mrf.mxu2  ;;  %v1518_v0 = vpop.f32.mrf.mxu3 }
 0x226   :  { %v2439_v1 = vpack.c.bf16 %v1674_v61, %v1673_v60  ;;  %v1187_v2 = vmax.f32 %v803_v62, %v1134_v63  ;;  %v418_v3 = vpop.f32.mrf.mxu0  ;;  %v752_v4 = vpop.f32.mrf.mxu1 }
 0x227   :  { %v804_v6 = vmax.f32 %v418_v3, %v752_v4 }
 0x228   :  { %2468 = vst [vmem:[%s2972_s6 + $0xb8] sm:$0xff] %v2439_v1   ;;  %v1571_v5 = vmax.f32 %v1187_v2, %v1518_v0 }
 0x22a   :  { %v1625_v10 = vadd.f32 %v2934_v42, %v1571_v5 }
 0x22c   :  { %v1675_v13 = vmax.f32 %v1625_v10, 0.0 }
 0x22d   :  { %v1136_v7 = vpop.f32.mrf.mxu2  ;;  %v1520_v9 = vpop.f32.mrf.mxu3 }
 0x22e   :  { %v1188_v8 = vmax.f32 %v804_v6, %v1136_v7 }
 0x230   :  { %v1572_v11 = vmax.f32 %v1188_v8, %v1520_v9 }
 0x232   :  { %v1626_v12 = vadd.f32 %v2934_v42, %v1572_v11 }
 0x234   :  { %v1676_v14 = vmax.f32 %v1626_v12, 0.0 }
 0x236   :  { %v2444_v15 = vpack.c.bf16 %v1676_v14, %v1675_v13 }
 0x238   :  { %2469 = vst [vmem:[%s2972_s6 + $0xc0] sm:$0xff] %v2444_v15  }

// kernel: net_forward.4
= control target key start
LH: loop header
LB: loop body
LE: loop exit
PB: predicated region body
PF: predicated region fallthrough
CT: control target
= control target key end

     0   :  { %s1350_s4 = inlined_call_operand.vmem [shape: bf16[256,128], index: 4, kind: input, shape index: {}]   ;;  %s1351_s0 = inlined_call_operand.vmem [shape: bf16[64,256], index: 0, kind: input, shape index: {}]   ;;  %s1352_s1 = inlined_call_operand.vmem [shape: bf16[64,256], index: 1, kind: input, shape index: {}]   ;;  %s1353_s2 = inlined_call_operand.vmem [shape: bf16[64,256], index: 2, kind: input, shape index: {}]   ;;  %s1354_s3 = inlined_call_operand.vmem [shape: bf16[64,256], index: 3, kind: input, shape index: {}]   ;;  %s1355_s5 = inlined_call_operand.vmem [shape: f32[1,128], index: 5, kind: input, shape index: {}]   ;;  %s1356_s6 = inlined_call_operand.vmem [shape: bf16[64,128], index: 6, kind: output, shape index: {}]  }
   0x1   :  { %v941_v0 = vld [vmem:[%s1350_s4 + $0x38] sm:$0xff]  ;;  %v953_v2 = vld [vmem:[%s1350_s4 + $0x30] sm:$0xff]  ;;  %v967_v4 = vld [vmem:[%s1350_s4 + $0x28] sm:$0xff] }
   0x2   :  { %v946_v1 = vld [vmem:[%s1350_s4 + $0x78] sm:$0xff]  ;;  %199 = vmatpush.bf16.msra.mxu0 %v941_v0  ;;  %v958_v3 = vld [vmem:[%s1350_s4 + $0x70] sm:$0xff]  ;;  %305 = vmatpush.bf16.msra.mxu2 %v941_v0  ;;  %v972_v5 = vld [vmem:[%s1350_s4 + $0x68] sm:$0xff] }
   0x3   :  { %228 = vmatpush.bf16.msra.mxu1 %v946_v1  ;;  %334 = vmatpush.bf16.msra.mxu3 %v946_v1  ;;  %v981_v6 = vld [vmem:[%s1350_s4 + $0x20] sm:$0xff]  ;;  %v995_v8 = vld [vmem:[%s1350_s4 + $0x18] sm:$0xff]  ;;  %v1009_v10 = vld [vmem:[%s1350_s4 + $0x10] sm:$0xff] }
   0x4   :  { %v986_v7 = vld [vmem:[%s1350_s4 + $0x60] sm:$0xff]  ;;  %v1000_v9 = vld [vmem:[%s1350_s4 + $0x58] sm:$0xff]  ;;  %v1014_v11 = vld [vmem:[%s1350_s4 + $0x50] sm:$0xff] }
   0x5   :  { %v1023_v12 = vld [vmem:[%s1350_s4 + $0x8] sm:$0xff]  ;;  %v1035_v14 = vld [vmem:[%s1350_s4] sm:$0xff]  ;;  %v649_v28 = vld [vmem:[%s1351_s0 + $0x10] sm:$0xf] }
   0x6   :  { %200 = vmatpush.bf16.msra.mxu0 %v953_v2  ;;  %306 = vmatpush.bf16.msra.mxu2 %v953_v2  ;;  %v1028_v13 = vld [vmem:[%s1350_s4 + $0x48] sm:$0xff]  ;;  %v1040_v15 = vld [vmem:[%s1350_s4 + $0x40] sm:$0xff]  ;;  %v850_v29 = vld [vmem:[%s1351_s0 + $0x14] sm:$0xf0] }
   0x7   :  { %229 = vmatpush.bf16.msra.mxu1 %v958_v3  ;;  %335 = vmatpush.bf16.msra.mxu3 %v958_v3  ;;  %v641_v16 = vld [vmem:[%s1351_s0] sm:$0xf]  ;;  %v848_v17 = vld [vmem:[%s1351_s0 + $0x4] sm:$0xf0]  ;;  %v847_v18 = vld [vmem:[%s1351_s0 + $0x4] sm:$0xf]  ;;  %v650_v36 = vor.u32 %v850_v29, %v649_v28 }
   0x8   :  { %v643_v19 = vld [vmem:[%s1351_s0 + $0x8] sm:$0xf0]  ;;  %v737_v20 = vld [vmem:[%s1352_s1] sm:$0xf]  ;;  %v856_v21 = vld [vmem:[%s1352_s1 + $0x4] sm:$0xf0]  ;;  %v642_v24 = vor.u32 %v848_v17, %v641_v16 }
   0x9   :  { %v855_v22 = vld [vmem:[%s1352_s1 + $0x4] sm:$0xf]  ;;  %v739_v23 = vld [vmem:[%s1352_s1 + $0x8] sm:$0xf0]  ;;  %v646_v25 = vor.u32 %v847_v18, %v643_v19  ;;  %v738_v26 = vor.u32 %v856_v21, %v737_v20  ;;  %v849_v30 = vld [vmem:[%s1351_s0 + $0x14] sm:$0xf] }
   0xa   :  { %201 = vmatpush.bf16.msra.mxu0 %v967_v4  ;;  %307 = vmatpush.bf16.msra.mxu2 %v967_v4  ;;  %v742_v27 = vor.u32 %v855_v22, %v739_v23  ;;  %v651_v31 = vld [vmem:[%s1351_s0 + $0x18] sm:$0xf0]  ;;  %v745_v32 = vld [vmem:[%s1352_s1 + $0x10] sm:$0xf]  ;;  %v858_v33 = vld [vmem:[%s1352_s1 + $0x14] sm:$0xf0] }
   0xb   :  { %230 = vmatpush.bf16.msra.mxu1 %v972_v5  ;;  %336 = vmatpush.bf16.msra.mxu3 %v972_v5  ;;  %v857_v34 = vld [vmem:[%s1352_s1 + $0x14] sm:$0xf]  ;;  %v747_v35 = vld [vmem:[%s1352_s1 + $0x18] sm:$0xf0]  ;;  %v654_v37 = vor.u32 %v849_v30, %v651_v31  ;;  %v746_v38 = vor.u32 %v858_v33, %v745_v32  ;;  %v657_v40 = vld [vmem:[%s1351_s0 + $0x20] sm:$0xf] }
   0xc   :  { %v750_v39 = vor.u32 %v857_v34, %v747_v35  ;;  %v852_v41 = vld [vmem:[%s1351_s0 + $0x24] sm:$0xf0]  ;;  %v851_v42 = vld [vmem:[%s1351_s0 + $0x24] sm:$0xf]  ;;  %v659_v43 = vld [vmem:[%s1351_s0 + $0x28] sm:$0xf0] }
   0xd   :  { %v753_v44 = vld [vmem:[%s1352_s1 + $0x20] sm:$0xf]  ;;  %v860_v45 = vld [vmem:[%s1352_s1 + $0x24] sm:$0xf0]  ;;  %v859_v46 = vld [vmem:[%s1352_s1 + $0x24] sm:$0xf]  ;;  %v658_v48 = vor.u32 %v852_v41, %v657_v40  ;;  %v662_v49 = vor.u32 %v851_v42, %v659_v43 }
   0xe   :  { %202 = vmatpush.bf16.msra.mxu0 %v981_v6  ;;  %308 = vmatpush.bf16.msra.mxu2 %v981_v6  ;;  %v755_v47 = vld [vmem:[%s1352_s1 + $0x28] sm:$0xf0]  ;;  %v754_v50 = vor.u32 %v860_v45, %v753_v44  ;;  %v665_v52 = vld [vmem:[%s1351_s0 + $0x30] sm:$0xf]  ;;  %v854_v53 = vld [vmem:[%s1351_s0 + $0x34] sm:$0xf0] }
   0xf   :  { %231 = vmatpush.bf16.msra.mxu1 %v986_v7  ;;  %337 = vmatpush.bf16.msra.mxu3 %v986_v7  ;;  %v758_v51 = vor.u32 %v859_v46, %v755_v47  ;;  %v853_v54 = vld [vmem:[%s1351_s0 + $0x34] sm:$0xf]  ;;  %v667_v55 = vld [vmem:[%s1351_s0 + $0x38] sm:$0xf0]  ;;  %v761_v56 = vld [vmem:[%s1352_s1 + $0x30] sm:$0xf]  ;;  %v666_v60 = vor.u32 %v854_v53, %v665_v52 }
  0x10   :  { %v862_v57 = vld [vmem:[%s1352_s1 + $0x34] sm:$0xf0]  ;;  %v861_v58 = vld [vmem:[%s1352_s1 + $0x34] sm:$0xf]  ;;  %v763_v59 = vld [vmem:[%s1352_s1 + $0x38] sm:$0xf0]  ;;  %v670_v61 = vor.u32 %v853_v54, %v667_v55 }
  0x11   :  { %v762_v62 = vor.u32 %v862_v57, %v761_v56  ;;  %v766_v63 = vor.u32 %v861_v58, %v763_v59  ;;  %v809_v16 = vld [vmem:[%s1354_s3 + $0x10] sm:$0xf]  ;;  %v874_v17 = vld [vmem:[%s1354_s3 + $0x14] sm:$0xf0]  ;;  %v873_v18 = vld [vmem:[%s1354_s3 + $0x14] sm:$0xf] }
  0x12   :  { %203 = vmatpush.bf16.msra.mxu0 %v995_v8  ;;  %309 = vmatpush.bf16.msra.mxu2 %v995_v8  ;;  %v811_v19 = vld [vmem:[%s1354_s3 + $0x18] sm:$0xf0]  ;;  %v810_v22 = vor.u32 %v874_v17, %v809_v16  ;;  %v817_v28 = vld [vmem:[%s1354_s3 + $0x20] sm:$0xf]  ;;  %v876_v29 = vld [vmem:[%s1354_s3 + $0x24] sm:$0xf0] }
  0x13   :  { %232 = vmatpush.bf16.msra.mxu1 %v1000_v9  ;;  %338 = vmatpush.bf16.msra.mxu3 %v1000_v9  ;;  %v814_v23 = vor.u32 %v873_v18, %v811_v19  ;;  %v875_v30 = vld [vmem:[%s1354_s3 + $0x24] sm:$0xf]  ;;  %v819_v31 = vld [vmem:[%s1354_s3 + $0x28] sm:$0xf0]  ;;  %v818_v34 = vor.u32 %v876_v29, %v817_v28  ;;  %v825_v40 = vld [vmem:[%s1354_s3 + $0x30] sm:$0xf] }
  0x14   :  { %v822_v35 = vor.u32 %v875_v30, %v819_v31  ;;  %v878_v41 = vld [vmem:[%s1354_s3 + $0x34] sm:$0xf0]  ;;  %v877_v42 = vld [vmem:[%s1354_s3 + $0x34] sm:$0xf]  ;;  %v827_v43 = vld [vmem:[%s1354_s3 + $0x38] sm:$0xf0] }
  0x15   :  { %v826_v46 = vor.u32 %v878_v41, %v825_v40  ;;  %v830_v47 = vor.u32 %v877_v42, %v827_v43  ;;  %v1313_v42 = vld [vmem:[%s1355_s5] ss:$0 sm:$0xff] }
  0x16   :  { %204 = vmatpush.bf16.msra.mxu0 %v1009_v10  ;;  %310 = vmatpush.bf16.msra.mxu2 %v1009_v10 }
  0x17   :  { %233 = vmatpush.bf16.msra.mxu1 %v1014_v11  ;;  %339 = vmatpush.bf16.msra.mxu3 %v1014_v11 }
  0x1a   :  { %205 = vmatpush.bf16.msra.mxu0 %v1023_v12  ;;  %311 = vmatpush.bf16.msra.mxu2 %v1023_v12 }
  0x1b   :  { %234 = vmatpush.bf16.msra.mxu1 %v1028_v13  ;;  %340 = vmatpush.bf16.msra.mxu3 %v1028_v13 }
  0x1e   :  { %206 = vmatpush.bf16.msra.mxu0 %v1035_v14  ;;  %312 = vmatpush.bf16.msra.mxu2 %v1035_v14 }
  0x1f   :  { %235 = vmatpush.bf16.msra.mxu1 %v1040_v15  ;;  %341 = vmatpush.bf16.msra.mxu3 %v1040_v15 }
  0x21   :  { %207 = vmatmul.bf16.vlgmr.msra.gmra.mxu0 %v642_v24  ;;  %313 = vmatmul.bf16.vlgmr.msra.gmra.mxu2 %v738_v26  ;;  %v785_v24 = vld [vmem:[%s1353_s2 + $0x20] sm:$0xf]  ;;  %v867_v26 = vld [vmem:[%s1353_s2 + $0x24] sm:$0xf] }
  0x22   :  { %533 = vmatpush.bf16.msrb.mxu2 %v941_v0  ;;  %236 = vmatmul.bf16.vlgmr.msra.gmra.mxu1 %v646_v25  ;;  %v868_v25 = vld [vmem:[%s1353_s2 + $0x24] sm:$0xf0] }
  0x23   :  { %562 = vmatpush.bf16.msrb.mxu3 %v946_v1  ;;  %419 = vmatpush.bf16.msrb.mxu0 %v941_v0  ;;  %v769_v0 = vld [vmem:[%s1353_s2] sm:$0xf]  ;;  %v786_v32 = vor.u32 %v868_v25, %v785_v24 }
  0x24   :  { %342 = vmatmul.bf16.vlgmr.msra.gmra.mxu3 %v742_v27  ;;  %448 = vmatpush.bf16.msrb.mxu1 %v946_v1  ;;  %v864_v1 = vld [vmem:[%s1353_s2 + $0x4] sm:$0xf0]  ;;  %v787_v27 = vld [vmem:[%s1353_s2 + $0x28] sm:$0xf0] }
  0x25   :  { %v790_v33 = vor.u32 %v867_v26, %v787_v27 }
  0x26   :  { %534 = vmatpush.bf16.msrb.mxu2 %v953_v2 }
  0x27   :  { %563 = vmatpush.bf16.msrb.mxu3 %v958_v3  ;;  %420 = vmatpush.bf16.msrb.mxu0 %v953_v2  ;;  %v863_v2 = vld [vmem:[%s1353_s2 + $0x4] sm:$0xf] }
  0x28   :  { %449 = vmatpush.bf16.msrb.mxu1 %v958_v3  ;;  %v771_v3 = vld [vmem:[%s1353_s2 + $0x8] sm:$0xf0] }
  0x2a   :  { %535 = vmatpush.bf16.msrb.mxu2 %v967_v4 }
  0x2b   :  { %564 = vmatpush.bf16.msrb.mxu3 %v972_v5  ;;  %421 = vmatpush.bf16.msrb.mxu0 %v967_v4  ;;  %v801_v4 = vld [vmem:[%s1354_s3] sm:$0xf] }
  0x2c   :  { %450 = vmatpush.bf16.msrb.mxu1 %v972_v5  ;;  %v872_v5 = vld [vmem:[%s1354_s3 + $0x4] sm:$0xf0] }
  0x2e   :  { %536 = vmatpush.bf16.msrb.mxu2 %v981_v6 }
  0x2f   :  { %565 = vmatpush.bf16.msrb.mxu3 %v986_v7  ;;  %422 = vmatpush.bf16.msrb.mxu0 %v981_v6  ;;  %v871_v6 = vld [vmem:[%s1354_s3 + $0x4] sm:$0xf] }
  0x30   :  { %451 = vmatpush.bf16.msrb.mxu1 %v986_v7  ;;  %v803_v7 = vld [vmem:[%s1354_s3 + $0x8] sm:$0xf0] }
  0x31   :  { %212 = vmatmul.bf16.gmra.mxu0 %v650_v36  ;;  %318 = vmatmul.bf16.gmra.mxu2 %v746_v38  ;;  %v793_v36 = vld [vmem:[%s1353_s2 + $0x30] sm:$0xf]  ;;  %v869_v38 = vld [vmem:[%s1353_s2 + $0x34] sm:$0xf] }
  0x32   :  { %537 = vmatpush.bf16.msrb.mxu2 %v995_v8  ;;  %241 = vmatmul.bf16.gmra.mxu1 %v654_v37  ;;  %v870_v37 = vld [vmem:[%s1353_s2 + $0x34] sm:$0xf0] }
  0x33   :  { %566 = vmatpush.bf16.msrb.mxu3 %v1000_v9  ;;  %423 = vmatpush.bf16.msrb.mxu0 %v995_v8  ;;  %v770_v8 = vor.u32 %v864_v1, %v769_v0  ;;  %v794_v44 = vor.u32 %v870_v37, %v793_v36 }
  0x34   :  { %347 = vmatmul.bf16.gmra.mxu3 %v750_v39  ;;  %452 = vmatpush.bf16.msrb.mxu1 %v1000_v9  ;;  %v774_v9 = vor.u32 %v863_v2, %v771_v3  ;;  %v795_v39 = vld [vmem:[%s1353_s2 + $0x38] sm:$0xf0] }
  0x35   :  { %v798_v45 = vor.u32 %v869_v38, %v795_v39 }
  0x36   :  { %538 = vmatpush.bf16.msrb.mxu2 %v1009_v10 }
  0x37   :  { %567 = vmatpush.bf16.msrb.mxu3 %v1014_v11  ;;  %424 = vmatpush.bf16.msrb.mxu0 %v1009_v10  ;;  %v802_v10 = vor.u32 %v872_v5, %v801_v4 }
  0x38   :  { %453 = vmatpush.bf16.msrb.mxu1 %v1014_v11  ;;  %v806_v11 = vor.u32 %v871_v6, %v803_v7 }
  0x3a   :  { %539 = vmatpush.bf16.msrb.mxu2 %v1023_v12 }
  0x3b   :  { %568 = vmatpush.bf16.msrb.mxu3 %v1028_v13  ;;  %425 = vmatpush.bf16.msrb.mxu0 %v1023_v12  ;;  %v777_v12 = vld [vmem:[%s1353_s2 + $0x10] sm:$0xf] }
  0x3c   :  { %454 = vmatpush.bf16.msrb.mxu1 %v1028_v13  ;;  %v866_v13 = vld [vmem:[%s1353_s2 + $0x14] sm:$0xf0] }
  0x3d   :  { %v778_v20 = vor.u32 %v866_v13, %v777_v12 }
  0x3e   :  { %540 = vmatpush.bf16.msrb.mxu2 %v1035_v14 }
  0x3f   :  { %569 = vmatpush.bf16.msrb.mxu3 %v1040_v15  ;;  %426 = vmatpush.bf16.msrb.mxu0 %v1035_v14  ;;  %v865_v14 = vld [vmem:[%s1353_s2 + $0x14] sm:$0xf] }
  0x40   :  { %455 = vmatpush.bf16.msrb.mxu1 %v1040_v15  ;;  %v779_v15 = vld [vmem:[%s1353_s2 + $0x18] sm:$0xf0] }
  0x41   :  { %217 = vmatmul.bf16.gmra.mxu0 %v658_v48  ;;  %323 = vmatmul.bf16.gmra.mxu2 %v754_v50  ;;  %v782_v21 = vor.u32 %v865_v14, %v779_v15 }
  0x42   :  { %246 = vmatmul.bf16.gmra.mxu1 %v662_v49 }
  0x44   :  { %352 = vmatmul.bf16.gmra.mxu3 %v758_v51 }
  0x51   :  { %222 = vmatmul.bf16.gmra.mxu0 %v666_v60  ;;  %328 = vmatmul.bf16.gmra.mxu2 %v762_v62 }
  0x52   :  { %251 = vmatmul.bf16.gmra.mxu1 %v670_v61 }
  0x54   :  { %357 = vmatmul.bf16.gmra.mxu3 %v766_v63 }
  0x61   :  { %427 = vmatmul.bf16.vlgmr.msrb.gmra.mxu0 %v770_v8  ;;  %541 = vmatmul.bf16.vlgmr.msrb.gmra.mxu2 %v802_v10 }
  0x62   :  { %456 = vmatmul.bf16.vlgmr.msrb.gmra.mxu1 %v774_v9 }
  0x64   :  { %570 = vmatmul.bf16.vlgmr.msrb.gmra.mxu3 %v806_v11 }
  0x71   :  { %432 = vmatmul.bf16.gmra.mxu0 %v778_v20  ;;  %546 = vmatmul.bf16.gmra.mxu2 %v810_v22 }
  0x72   :  { %461 = vmatmul.bf16.gmra.mxu1 %v782_v21 }
  0x74   :  { %575 = vmatmul.bf16.gmra.mxu3 %v814_v23 }
  0x81   :  { %437 = vmatmul.bf16.gmra.mxu0 %v786_v32  ;;  %551 = vmatmul.bf16.gmra.mxu2 %v818_v34 }
  0x82   :  { %466 = vmatmul.bf16.gmra.mxu1 %v790_v33 }
  0x84   :  { %580 = vmatmul.bf16.gmra.mxu3 %v822_v35 }
  0x91   :  { %442 = vmatmul.bf16.gmra.mxu0 %v794_v44  ;;  %556 = vmatmul.bf16.gmra.mxu2 %v826_v46 }
  0x92   :  { %471 = vmatmul.bf16.gmra.mxu1 %v798_v45 }
  0x94   :  { %585 = vmatmul.bf16.gmra.mxu3 %v830_v47 }
  0x9e   :  { %v208_v48 = vpop.f32.mrf.mxu0 }
  0x9f   :  { %v237_v49 = vpop.f32.mrf.mxu1 }
  0xa0   :  { %v238_v50 = vadd.f32 %v237_v49, %v208_v48 }
  0xa4   :  { %v314_v51 = vpop.f32.mrf.mxu2 }
  0xa6   :  { %v210_v54 = vpop.f32.mrf.mxu0 }
  0xa7   :  { %v343_v52 = vpop.f32.mrf.mxu3  ;;  %v239_v55 = vpop.f32.mrf.mxu1 }
  0xa8   :  { %v344_v53 = vadd.f32 %v343_v52, %v314_v51  ;;  %v240_v37 = vadd.f32 %v239_v55, %v210_v54 }
  0xaa   :  { %v363_v56 = vmax.f32 %v238_v50, %v344_v53 }
  0xac   :  { %v316_v57 = vpop.f32.mrf.mxu2 }
  0xae   :  { %v213_v59 = vpop.f32.mrf.mxu0 }
  0xaf   :  { %v345_v58 = vpop.f32.mrf.mxu3  ;;  %v242_v60 = vpop.f32.mrf.mxu1 }
  0xb0   :  { %v1274_v61 = vadd.f32 %v242_v60, %v213_v59  ;;  %v346_v35 = vadd.f32 %v345_v58, %v316_v57 }
  0xb2   :  { %v364_v40 = vmax.f32 %v240_v37, %v346_v35 }
  0xb4   :  { %v319_v62 = vpop.f32.mrf.mxu2 }
  0xb6   :  { %v1278_v1 = vpop.f32.mrf.mxu0 }
  0xb7   :  { %v348_v63 = vpop.f32.mrf.mxu3  ;;  %v244_v2 = vpop.f32.mrf.mxu1 }
  0xb8   :  { %v1276_v0 = vadd.f32 %v348_v63, %v319_v62  ;;  %v245_v62 = vadd.f32 %v244_v2, %v1278_v1 }
  0xba   :  { %v365_v3 = vmax.f32 %v1274_v61, %v1276_v0 }
  0xbc   :  { %v321_v4 = vpop.f32.mrf.mxu2 }
  0xbe   :  { %v218_v6 = vpop.f32.mrf.mxu0 }
  0xbf   :  { %v350_v5 = vpop.f32.mrf.mxu3  ;;  %v247_v7 = vpop.f32.mrf.mxu1 }
  0xc0   :  { %v1282_v8 = vadd.f32 %v247_v7, %v218_v6  ;;  %v351_v60 = vadd.f32 %v350_v5, %v321_v4 }
  0xc2   :  { %v366_v6 = vmax.f32 %v245_v62, %v351_v60 }
  0xc4   :  { %v324_v9 = vpop.f32.mrf.mxu2 }
  0xc6   :  { %v1286_v12 = vpop.f32.mrf.mxu0 }
  0xc7   :  { %v353_v10 = vpop.f32.mrf.mxu3  ;;  %v1288_v13 = vpop.f32.mrf.mxu1 }
  0xc8   :  { %v1284_v11 = vadd.f32 %v353_v10, %v324_v9 }
  0xca   :  { %v367_v14 = vmax.f32 %v1282_v8, %v1284_v11 }
  0xcc   :  { %v1292_v15 = vpop.f32.mrf.mxu2 }
  0xce   :  { %v223_v17 = vpop.f32.mrf.mxu0 }
  0xcf   :  { %v1294_v16 = vpop.f32.mrf.mxu3  ;;  %v252_v18 = vpop.f32.mrf.mxu1 }
  0xd0   :  { %v1296_v19 = vadd.f32 %v252_v18, %v223_v17 }
  0xd4   :  { %v329_v20 = vpop.f32.mrf.mxu2 }
  0xd6   :  { %v1300_v23 = vpop.f32.mrf.mxu0 }
  0xd7   :  { %v358_v21 = vpop.f32.mrf.mxu3  ;;  %v1302_v24 = vpop.f32.mrf.mxu1 }
  0xd8   :  { %v1298_v22 = vadd.f32 %v358_v21, %v329_v20 }
  0xda   :  { %v369_v25 = vmax.f32 %v1296_v19, %v1298_v22 }
  0xdc   :  { %v1306_v26 = vpop.f32.mrf.mxu2 }
  0xde   :  { %v428_v28 = vpop.f32.mrf.mxu0 }
  0xdf   :  { %v1308_v27 = vpop.f32.mrf.mxu3  ;;  %v457_v29 = vpop.f32.mrf.mxu1 }
  0xe0   :  { %v458_v32 = vadd.f32 %v457_v29, %v428_v28 }
  0xe2   :  { %v477_v38 = vmax.f32 %v363_v56, %v458_v32 }
  0xe4   :  { %v542_v30 = vpop.f32.mrf.mxu2 }
  0xe6   :  { %v430_v33 = vpop.f32.mrf.mxu0 }
  0xe7   :  { %v571_v31 = vpop.f32.mrf.mxu3  ;;  %v459_v34 = vpop.f32.mrf.mxu1 }
  0xe8   :  { %v572_v36 = vadd.f32 %v571_v31, %v542_v30  ;;  %v460_v39 = vadd.f32 %v459_v34, %v430_v33  ;;  %v356_v34 = vadd.f32 %v1294_v16, %v1292_v15 }
  0xea   :  { %v591_v41 = vmax.f32 %v477_v38, %v572_v36  ;;  %v478_v45 = vmax.f32 %v364_v40, %v460_v39  ;;  %v250_v36 = vadd.f32 %v1288_v13, %v1286_v12 }
  0xec   :  { %v544_v43 = vpop.f32.mrf.mxu2  ;;  %v603_v49 = vadd.f32 %v1313_v42, %v591_v41  ;;  %v368_v39 = vmax.f32 %v250_v36, %v356_v34 }
  0xee   :  { %v433_v47 = vpop.f32.mrf.mxu0  ;;  %v611_v52 = vmax.f32 %v603_v49, 0.0 }
  0xef   :  { %v573_v44 = vpop.f32.mrf.mxu3  ;;  %v462_v48 = vpop.f32.mrf.mxu1 }
  0xf0   :  { %v574_v46 = vadd.f32 %v573_v44, %v544_v43  ;;  %v463_v57 = vadd.f32 %v462_v48, %v433_v47 }
  0xf2   :  { %v592_v50 = vmax.f32 %v478_v45, %v574_v46  ;;  %v479_v63 = vmax.f32 %v365_v3, %v463_v57 }
  0xf4   :  { %v604_v51 = vadd.f32 %v1313_v42, %v592_v50  ;;  %v547_v54 = vpop.f32.mrf.mxu2 }
  0xf6   :  { %v612_v53 = vmax.f32 %v604_v51, 0.0  ;;  %v435_v58 = vpop.f32.mrf.mxu0 }
  0xf7   :  { %v576_v55 = vpop.f32.mrf.mxu3  ;;  %v464_v59 = vpop.f32.mrf.mxu1 }
  0xf8   :  { %v882_v56 = vpack.c.bf16 %v612_v53, %v611_v52  ;;  %v577_v61 = vadd.f32 %v576_v55, %v547_v54  ;;  %v465_v0 = vadd.f32 %v464_v59, %v435_v58  ;;  %v361_v52 = vadd.f32 %v1308_v27, %v1306_v26 }
  0xf9   :  { %v255_v54 = vadd.f32 %v1302_v24, %v1300_v23 }
  0xfa   :  { %883 = vst [vmem:[%s1356_s6] sm:$0xff] %v882_v56   ;;  %v593_v7 = vmax.f32 %v479_v63, %v577_v61  ;;  %v480_v17 = vmax.f32 %v366_v6, %v465_v0 }
  0xfb   :  { %v370_v57 = vmax.f32 %v255_v54, %v361_v52 }
  0xfc   :  { %v549_v9 = vpop.f32.mrf.mxu2  ;;  %v605_v28 = vadd.f32 %v1313_v42, %v593_v7 }
  0xfe   :  { %v438_v20 = vpop.f32.mrf.mxu0  ;;  %v613_v29 = vmax.f32 %v605_v28, 0.0 }
  0xff   :  { %v578_v10 = vpop.f32.mrf.mxu3  ;;  %v467_v21 = vpop.f32.mrf.mxu1 }
 0x100   :  { %v579_v18 = vadd.f32 %v578_v10, %v549_v9  ;;  %v468_v2 = vadd.f32 %v467_v21, %v438_v20 }
 0x102   :  { %v594_v4 = vmax.f32 %v480_v17, %v579_v18  ;;  %v481_v37 = vmax.f32 %v367_v14, %v468_v2 }
 0x104   :  { %v606_v5 = vadd.f32 %v1313_v42, %v594_v4  ;;  %v552_v31 = vpop.f32.mrf.mxu2 }
 0x106   :  { %v614_v30 = vmax.f32 %v606_v5, 0.0  ;;  %v440_v3 = vpop.f32.mrf.mxu0 }
 0x107   :  { %v581_v32 = vpop.f32.mrf.mxu3  ;;  %v469_v33 = vpop.f32.mrf.mxu1 }
 0x108   :  { %v887_v1 = vpack.c.bf16 %v614_v30, %v613_v29  ;;  %v582_v35 = vadd.f32 %v581_v32, %v552_v31  ;;  %v470_v38 = vadd.f32 %v469_v33, %v440_v3 }
 0x10a   :  { %899 = vst [vmem:[%s1356_s6 + $0x8] sm:$0xff] %v887_v1   ;;  %v595_v40 = vmax.f32 %v481_v37, %v582_v35  ;;  %v482_v44 = vmax.f32 %v368_v39, %v470_v38 }
 0x10c   :  { %v554_v41 = vpop.f32.mrf.mxu2  ;;  %v607_v46 = vadd.f32 %v1313_v42, %v595_v40 }
 0x10e   :  { %v443_v15 = vpop.f32.mrf.mxu0  ;;  %v615_v49 = vmax.f32 %v607_v46, 0.0 }
 0x10f   :  { %v583_v43 = vpop.f32.mrf.mxu3  ;;  %v472_v16 = vpop.f32.mrf.mxu1 }
 0x110   :  { %v584_v45 = vadd.f32 %v583_v43, %v554_v41  ;;  %v473_v11 = vadd.f32 %v472_v16, %v443_v15 }
 0x112   :  { %v596_v47 = vmax.f32 %v482_v44, %v584_v45  ;;  %v483_v55 = vmax.f32 %v369_v25, %v473_v11 }
 0x114   :  { %v608_v48 = vadd.f32 %v1313_v42, %v596_v47  ;;  %v557_v13 = vpop.f32.mrf.mxu2 }
 0x116   :  { %v616_v12 = vmax.f32 %v608_v48, 0.0  ;;  %v445_v14 = vpop.f32.mrf.mxu0 }
 0x117   :  { %v586_v50 = vpop.f32.mrf.mxu3  ;;  %v474_v51 = vpop.f32.mrf.mxu1 }
 0x118   :  { %v892_v8 = vpack.c.bf16 %v616_v12, %v615_v49  ;;  %v587_v53 = vadd.f32 %v586_v50, %v557_v13  ;;  %v475_v56 = vadd.f32 %v474_v51, %v445_v14 }
 0x11a   :  { %900 = vst [vmem:[%s1356_s6 + $0x10] sm:$0xff] %v892_v8   ;;  %v597_v58 = vmax.f32 %v483_v55, %v587_v53  ;;  %v484_v61 = vmax.f32 %v370_v57, %v475_v56 }
 0x11c   :  { %v559_v59 = vpop.f32.mrf.mxu2  ;;  %v609_v26 = vadd.f32 %v1313_v42, %v597_v58 }
 0x11e   :  { %v617_v0 = vmax.f32 %v609_v26, 0.0 }
 0x11f   :  { %v588_v60 = vpop.f32.mrf.mxu3 }
 0x120   :  { %v589_v62 = vadd.f32 %v588_v60, %v559_v59 }
 0x122   :  { %v598_v27 = vmax.f32 %v484_v61, %v589_v62 }
 0x124   :  { %v610_v63 = vadd.f32 %v1313_v42, %v598_v27 }
 0x126   :  { %v618_v6 = vmax.f32 %v610_v63, 0.0 }
 0x128   :  { %v897_v7 = vpack.c.bf16 %v618_v6, %v617_v0 }
 0x12a   :  { %901 = vst [vmem:[%s1356_s6 + $0x18] sm:$0xff] %v897_v7  }

// kernel: net_forward.5
= control target key start
LH: loop header
LB: loop body
LE: loop exit
PB: predicated region body
PF: predicated region fallthrough
CT: control target
= control target key end

     0   :  { %s4369_s1 = inlined_call_operand.vmem [shape: bf16[3200,128], index: 1, kind: input, shape index: {}]   ;;  %s4370_s0 = inlined_call_operand.vmem [shape: bf16[16,3200], index: 0, kind: input, shape index: {}]   ;;  %s4371_s2 = inlined_call_operand.vmem [shape: f32[1,128], index: 2, kind: input, shape index: {}]   ;;  %s4372_s4 = inlined_call_operand.vmem [shape: f32[1,128], index: 4, kind: input, shape index: {}]   ;;  %s4373_s3 = inlined_call_operand.vmem [shape: bf16[128,128], index: 3, kind: input, shape index: {}]   ;;  %s4374_s5 = inlined_call_operand.vmem [shape: bf16[128,128], index: 5, kind: input, shape index: {}]   ;;  %s4375_s6 = inlined_call_operand.vmem [shape: f32[1,128], index: 6, kind: input, shape index: {}]   ;;  %s4376_s7 = inlined_call_operand.vmem [shape: f32[16,128], index: 7, kind: output, shape index: {}]  }
   0x1   :  { %v3304_v0 = vld [vmem:[%s4369_s1 + $0x38] sm:$0xff]  ;;  %v3303_v4 = vld [vmem:[%s4369_s1 + $0x30] sm:$0xff]  ;;  %v3302_v8 = vld [vmem:[%s4369_s1 + $0x28] sm:$0xff] }
   0x2   :  { %v3320_v1 = vld [vmem:[%s4369_s1 + $0xb8] sm:$0xff]  ;;  %1782 = vmatpush.bf16.msra.mxu0 %v3304_v0  ;;  %v3319_v5 = vld [vmem:[%s4369_s1 + $0xb0] sm:$0xff]  ;;  %v3318_v9 = vld [vmem:[%s4369_s1 + $0xa8] sm:$0xff] }
   0x3   :  { %v3312_v2 = vld [vmem:[%s4369_s1 + $0x78] sm:$0xff]  ;;  %1810 = vmatpush.bf16.msra.mxu2 %v3320_v1  ;;  %v3311_v6 = vld [vmem:[%s4369_s1 + $0x70] sm:$0xff]  ;;  %v3310_v10 = vld [vmem:[%s4369_s1 + $0x68] sm:$0xff] }
   0x4   :  { %v3328_v3 = vld [vmem:[%s4369_s1 + $0xf8] sm:$0xff]  ;;  %1796 = vmatpush.bf16.msra.mxu1 %v3312_v2  ;;  %v3327_v7 = vld [vmem:[%s4369_s1 + $0xf0] sm:$0xff]  ;;  %v3326_v11 = vld [vmem:[%s4369_s1 + $0xe8] sm:$0xff] }
   0x5   :  { %1824 = vmatpush.bf16.msra.mxu3 %v3328_v3  ;;  %v3301_v12 = vld [vmem:[%s4369_s1 + $0x20] sm:$0xff]  ;;  %v3300_v16 = vld [vmem:[%s4369_s1 + $0x18] sm:$0xff]  ;;  %v3299_v20 = vld [vmem:[%s4369_s1 + $0x10] sm:$0xff] }
   0x6   :  { %1783 = vmatpush.bf16.msra.mxu0 %v3303_v4  ;;  %v3317_v13 = vld [vmem:[%s4369_s1 + $0xa0] sm:$0xff]  ;;  %v3316_v17 = vld [vmem:[%s4369_s1 + $0x98] sm:$0xff]  ;;  %v3315_v21 = vld [vmem:[%s4369_s1 + $0x90] sm:$0xff] }
   0x7   :  { %1811 = vmatpush.bf16.msra.mxu2 %v3319_v5  ;;  %v3309_v14 = vld [vmem:[%s4369_s1 + $0x60] sm:$0xff]  ;;  %v3308_v18 = vld [vmem:[%s4369_s1 + $0x58] sm:$0xff]  ;;  %v3307_v22 = vld [vmem:[%s4369_s1 + $0x50] sm:$0xff] }
   0x8   :  { %1797 = vmatpush.bf16.msra.mxu1 %v3311_v6  ;;  %v3325_v15 = vld [vmem:[%s4369_s1 + $0xe0] sm:$0xff]  ;;  %v3324_v19 = vld [vmem:[%s4369_s1 + $0xd8] sm:$0xff]  ;;  %v3323_v23 = vld [vmem:[%s4369_s1 + $0xd0] sm:$0xff] }
   0x9   :  { %1825 = vmatpush.bf16.msra.mxu3 %v3327_v7  ;;  %v3298_v24 = vld [vmem:[%s4369_s1 + $0x8] sm:$0xff]  ;;  %v3297_v28 = vld [vmem:[%s4369_s1] sm:$0xff]  ;;  %v3336_v30 = vld [vmem:[%s4369_s1 + $0x138] sm:$0xff] }
   0xa   :  { %1784 = vmatpush.bf16.msra.mxu0 %v3302_v8  ;;  %v3314_v25 = vld [vmem:[%s4369_s1 + $0x88] sm:$0xff]  ;;  %v3313_v29 = vld [vmem:[%s4369_s1 + $0x80] sm:$0xff]  ;;  %v3352_v31 = vld [vmem:[%s4369_s1 + $0x1b8] sm:$0xff] }
   0xb   :  { %1812 = vmatpush.bf16.msra.mxu2 %v3318_v9  ;;  %v3306_v26 = vld [vmem:[%s4369_s1 + $0x48] sm:$0xff]  ;;  %v3305_v32 = vld [vmem:[%s4369_s1 + $0x40] sm:$0xff]  ;;  %v3344_v38 = vld [vmem:[%s4369_s1 + $0x178] sm:$0xff] }
   0xc   :  { %1798 = vmatpush.bf16.msra.mxu1 %v3310_v10  ;;  %v3322_v27 = vld [vmem:[%s4369_s1 + $0xc8] sm:$0xff]  ;;  %v3321_v33 = vld [vmem:[%s4369_s1 + $0xc0] sm:$0xff]  ;;  %v3360_v39 = vld [vmem:[%s4369_s1 + $0x1f8] sm:$0xff] }
   0xd   :  { %1826 = vmatpush.bf16.msra.mxu3 %v3326_v11  ;;  %v2310_v34 = vld [vmem:[%s4370_s0] sm:$0xf]  ;;  %v3284_v35 = vld [vmem:[%s4370_s0 + $0x60] sm:$0xf0]  ;;  %v2318_v36 = vld [vmem:[%s4370_s0 + $0x8] sm:$0xf] }
   0xe   :  { %1785 = vmatpush.bf16.msra.mxu0 %v3301_v12  ;;  %v3285_v37 = vld [vmem:[%s4370_s0 + $0x68] sm:$0xf0]  ;;  %v3272_v40 = vld [vmem:[%s4370_s0 + $0x4] sm:$0xf]  ;;  %v2312_v41 = vld [vmem:[%s4370_s0 + $0x64] sm:$0xf0]  ;;  %v2311_v44 = vor.u32 %v3284_v35, %v2310_v34 }
   0xf   :  { %1813 = vmatpush.bf16.msra.mxu2 %v3317_v13  ;;  %v3273_v42 = vld [vmem:[%s4370_s0 + $0xc] sm:$0xf]  ;;  %v2320_v43 = vld [vmem:[%s4370_s0 + $0x6c] sm:$0xf0]  ;;  %v2319_v45 = vor.u32 %v3285_v37, %v2318_v36  ;;  %v2315_v48 = vor.u32 %v3272_v40, %v2312_v41  ;;  %v3333_v56 = vld [vmem:[%s4369_s1 + $0x120] sm:$0xff] }
  0x10   :  { %1799 = vmatpush.bf16.msra.mxu1 %v3309_v14  ;;  %v3335_v46 = vld [vmem:[%s4369_s1 + $0x130] sm:$0xff]  ;;  %v2323_v49 = vor.u32 %v3273_v42, %v2320_v43  ;;  %v3334_v52 = vld [vmem:[%s4369_s1 + $0x128] sm:$0xff]  ;;  %v3349_v57 = vld [vmem:[%s4369_s1 + $0x1a0] sm:$0xff] }
  0x11   :  { %1827 = vmatpush.bf16.msra.mxu3 %v3325_v15  ;;  %v3351_v47 = vld [vmem:[%s4369_s1 + $0x1b0] sm:$0xff]  ;;  %v3350_v53 = vld [vmem:[%s4369_s1 + $0x1a8] sm:$0xff]  ;;  %v3341_v58 = vld [vmem:[%s4369_s1 + $0x160] sm:$0xff] }
  0x12   :  { %1786 = vmatpush.bf16.msra.mxu0 %v3300_v16  ;;  %v3343_v50 = vld [vmem:[%s4369_s1 + $0x170] sm:$0xff]  ;;  %v3342_v54 = vld [vmem:[%s4369_s1 + $0x168] sm:$0xff]  ;;  %v3357_v59 = vld [vmem:[%s4369_s1 + $0x1e0] sm:$0xff] }
  0x13   :  { %1814 = vmatpush.bf16.msra.mxu2 %v3316_v17  ;;  %v3359_v51 = vld [vmem:[%s4369_s1 + $0x1f0] sm:$0xff]  ;;  %v3358_v55 = vld [vmem:[%s4369_s1 + $0x1e8] sm:$0xff]  ;;  %v3332_v60 = vld [vmem:[%s4369_s1 + $0x118] sm:$0xff] }
  0x14   :  { %1800 = vmatpush.bf16.msra.mxu1 %v3308_v18  ;;  %v3348_v61 = vld [vmem:[%s4369_s1 + $0x198] sm:$0xff]  ;;  %v3331_v0 = vld [vmem:[%s4369_s1 + $0x110] sm:$0xff]  ;;  %v3330_v4 = vld [vmem:[%s4369_s1 + $0x108] sm:$0xff] }
  0x15   :  { %1828 = vmatpush.bf16.msra.mxu3 %v3324_v19  ;;  %v3340_v62 = vld [vmem:[%s4369_s1 + $0x158] sm:$0xff]  ;;  %v3347_v1 = vld [vmem:[%s4369_s1 + $0x190] sm:$0xff]  ;;  %v3346_v5 = vld [vmem:[%s4369_s1 + $0x188] sm:$0xff] }
  0x16   :  { %1787 = vmatpush.bf16.msra.mxu0 %v3299_v20  ;;  %v3356_v63 = vld [vmem:[%s4369_s1 + $0x1d8] sm:$0xff]  ;;  %v3339_v2 = vld [vmem:[%s4369_s1 + $0x150] sm:$0xff]  ;;  %v3338_v6 = vld [vmem:[%s4369_s1 + $0x148] sm:$0xff] }
  0x17   :  { %1815 = vmatpush.bf16.msra.mxu2 %v3315_v21  ;;  %v3355_v3 = vld [vmem:[%s4369_s1 + $0x1d0] sm:$0xff]  ;;  %v3354_v7 = vld [vmem:[%s4369_s1 + $0x1c8] sm:$0xff]  ;;  %v3329_v8 = vld [vmem:[%s4369_s1 + $0x100] sm:$0xff] }
  0x18   :  { %1801 = vmatpush.bf16.msra.mxu1 %v3307_v22  ;;  %v3345_v9 = vld [vmem:[%s4369_s1 + $0x180] sm:$0xff]  ;;  %v3368_v10 = vld [vmem:[%s4369_s1 + $0x238] sm:$0xff]  ;;  %v2326_v12 = vld [vmem:[%s4370_s0 + $0x10] sm:$0xf] }
  0x19   :  { %1829 = vmatpush.bf16.msra.mxu3 %v3323_v23  ;;  %v3384_v11 = vld [vmem:[%s4369_s1 + $0x2b8] sm:$0xff]  ;;  %v3286_v13 = vld [vmem:[%s4370_s0 + $0x70] sm:$0xf0]  ;;  %v3337_v16 = vld [vmem:[%s4369_s1 + $0x140] sm:$0xff] }
  0x1a   :  { %1788 = vmatpush.bf16.msra.mxu0 %v3298_v24  ;;  %v2334_v14 = vld [vmem:[%s4370_s0 + $0x18] sm:$0xf]  ;;  %v3287_v15 = vld [vmem:[%s4370_s0 + $0x78] sm:$0xf0]  ;;  %v3353_v17 = vld [vmem:[%s4369_s1 + $0x1c0] sm:$0xff]  ;;  %v2327_v22 = vor.u32 %v3286_v13, %v2326_v12 }
  0x1b   :  { %1816 = vmatpush.bf16.msra.mxu2 %v3314_v25  ;;  %v3274_v18 = vld [vmem:[%s4370_s0 + $0x14] sm:$0xf]  ;;  %v2328_v19 = vld [vmem:[%s4370_s0 + $0x74] sm:$0xf0]  ;;  %v3275_v20 = vld [vmem:[%s4370_s0 + $0x1c] sm:$0xf]  ;;  %v2335_v23 = vor.u32 %v3287_v15, %v2334_v14 }
  0x1c   :  { %1802 = vmatpush.bf16.msra.mxu1 %v3306_v26  ;;  %v2336_v21 = vld [vmem:[%s4370_s0 + $0x7c] sm:$0xf0]  ;;  %v3376_v24 = vld [vmem:[%s4369_s1 + $0x278] sm:$0xff]  ;;  %v2331_v26 = vor.u32 %v3274_v18, %v2328_v19  ;;  %v3374_v34 = vld [vmem:[%s4369_s1 + $0x268] sm:$0xff] }
  0x1d   :  { %1830 = vmatpush.bf16.msra.mxu3 %v3322_v27  ;;  %v3392_v25 = vld [vmem:[%s4369_s1 + $0x2f8] sm:$0xff]  ;;  %v2339_v27 = vor.u32 %v3275_v20, %v2336_v21  ;;  %v3390_v35 = vld [vmem:[%s4369_s1 + $0x2e8] sm:$0xff]  ;;  %v3365_v36 = vld [vmem:[%s4369_s1 + $0x220] sm:$0xff] }
  0x1e   :  { %1789 = vmatpush.bf16.msra.mxu0 %v3297_v28  ;;  %v3367_v28 = vld [vmem:[%s4369_s1 + $0x230] sm:$0xff]  ;;  %v3381_v37 = vld [vmem:[%s4369_s1 + $0x2a0] sm:$0xff]  ;;  %v3364_v40 = vld [vmem:[%s4369_s1 + $0x218] sm:$0xff] }
  0x1f   :  { %1817 = vmatpush.bf16.msra.mxu2 %v3313_v29  ;;  %v3383_v29 = vld [vmem:[%s4369_s1 + $0x2b0] sm:$0xff]  ;;  %v3380_v41 = vld [vmem:[%s4369_s1 + $0x298] sm:$0xff]  ;;  %v3398_v12 = vld [vmem:[%s4369_s1 + $0x328] sm:$0xff] }
  0x20   :  { %1803 = vmatpush.bf16.msra.mxu1 %v3305_v32  ;;  %v3366_v32 = vld [vmem:[%s4369_s1 + $0x228] sm:$0xff]  ;;  %v3372_v42 = vld [vmem:[%s4369_s1 + $0x258] sm:$0xff]  ;;  %v3405_v18 = vld [vmem:[%s4369_s1 + $0x360] sm:$0xff] }
  0x21   :  { %1831 = vmatpush.bf16.msra.mxu3 %v3321_v33  ;;  %1790 = vmatmul.bf16.vlgmr.msra.gmra.mxu0 %v2311_v44  ;;  %v3382_v33 = vld [vmem:[%s4369_s1 + $0x2a8] sm:$0xff]  ;;  %v3388_v43 = vld [vmem:[%s4369_s1 + $0x2d8] sm:$0xff]  ;;  %v3363_v44 = vld [vmem:[%s4369_s1 + $0x210] sm:$0xff] }
  0x22   :  { %1838 = vmatpush.bf16.msrb.mxu0 %v3336_v30  ;;  %1818 = vmatmul.bf16.vlgmr.msra.gmra.mxu2 %v2319_v45  ;;  %v3375_v30 = vld [vmem:[%s4369_s1 + $0x270] sm:$0xff]  ;;  %v3414_v13 = vld [vmem:[%s4369_s1 + $0x3a8] sm:$0xff]  ;;  %v3421_v19 = vld [vmem:[%s4369_s1 + $0x3e0] sm:$0xff] }
  0x23   :  { %1866 = vmatpush.bf16.msrb.mxu2 %v3352_v31  ;;  %1804 = vmatmul.bf16.vlgmr.msra.gmra.mxu1 %v2315_v48  ;;  %v3391_v31 = vld [vmem:[%s4369_s1 + $0x2f0] sm:$0xff]  ;;  %v3362_v48 = vld [vmem:[%s4369_s1 + $0x208] sm:$0xff]  ;;  %v3396_v20 = vld [vmem:[%s4369_s1 + $0x318] sm:$0xff] }
  0x24   :  { %1852 = vmatpush.bf16.msrb.mxu1 %v3344_v38  ;;  %1832 = vmatmul.bf16.vlgmr.msra.gmra.mxu3 %v2323_v49  ;;  %v3373_v38 = vld [vmem:[%s4369_s1 + $0x260] sm:$0xff]  ;;  %v3379_v45 = vld [vmem:[%s4369_s1 + $0x290] sm:$0xff]  ;;  %v3378_v49 = vld [vmem:[%s4369_s1 + $0x288] sm:$0xff] }
  0x25   :  { %1880 = vmatpush.bf16.msrb.mxu3 %v3360_v39  ;;  %v3389_v39 = vld [vmem:[%s4369_s1 + $0x2e0] sm:$0xff]  ;;  %v3406_v14 = vld [vmem:[%s4369_s1 + $0x368] sm:$0xff]  ;;  %v3412_v21 = vld [vmem:[%s4369_s1 + $0x398] sm:$0xff] }
  0x26   :  { %1839 = vmatpush.bf16.msrb.mxu0 %v3335_v46  ;;  %v3371_v46 = vld [vmem:[%s4369_s1 + $0x250] sm:$0xff]  ;;  %v3422_v15 = vld [vmem:[%s4369_s1 + $0x3e8] sm:$0xff] }
  0x27   :  { %1867 = vmatpush.bf16.msrb.mxu2 %v3351_v47  ;;  %v3387_v47 = vld [vmem:[%s4369_s1 + $0x2d0] sm:$0xff] }
  0x28   :  { %1853 = vmatpush.bf16.msrb.mxu1 %v3343_v50  ;;  %v3370_v50 = vld [vmem:[%s4369_s1 + $0x248] sm:$0xff] }
  0x29   :  { %1881 = vmatpush.bf16.msrb.mxu3 %v3359_v51  ;;  %v3386_v51 = vld [vmem:[%s4369_s1 + $0x2c8] sm:$0xff] }
  0x2a   :  { %1840 = vmatpush.bf16.msrb.mxu0 %v3334_v52  ;;  %v3361_v52 = vld [vmem:[%s4369_s1 + $0x200] sm:$0xff] }
  0x2b   :  { %1868 = vmatpush.bf16.msrb.mxu2 %v3350_v53  ;;  %v3377_v53 = vld [vmem:[%s4369_s1 + $0x280] sm:$0xff] }
  0x2c   :  { %1854 = vmatpush.bf16.msrb.mxu1 %v3342_v54  ;;  %v3400_v54 = vld [vmem:[%s4369_s1 + $0x338] sm:$0xff] }
  0x2d   :  { %1882 = vmatpush.bf16.msrb.mxu3 %v3358_v55  ;;  %v3416_v55 = vld [vmem:[%s4369_s1 + $0x3b8] sm:$0xff] }
  0x2e   :  { %1841 = vmatpush.bf16.msrb.mxu0 %v3333_v56  ;;  %v2342_v56 = vld [vmem:[%s4370_s0 + $0x20] sm:$0xf] }
  0x2f   :  { %1869 = vmatpush.bf16.msrb.mxu2 %v3349_v57  ;;  %v3288_v57 = vld [vmem:[%s4370_s0 + $0x80] sm:$0xf0] }
  0x30   :  { %1855 = vmatpush.bf16.msrb.mxu1 %v3341_v58  ;;  %v2350_v58 = vld [vmem:[%s4370_s0 + $0x28] sm:$0xf] }
  0x31   :  { %1883 = vmatpush.bf16.msrb.mxu3 %v3357_v59  ;;  %v3289_v59 = vld [vmem:[%s4370_s0 + $0x88] sm:$0xf0] }
  0x32   :  { %1842 = vmatpush.bf16.msrb.mxu0 %v3332_v60  ;;  %v3369_v60 = vld [vmem:[%s4369_s1 + $0x240] sm:$0xff] }
  0x33   :  { %1870 = vmatpush.bf16.msrb.mxu2 %v3348_v61  ;;  %v3385_v61 = vld [vmem:[%s4369_s1 + $0x2c0] sm:$0xff] }
  0x34   :  { %1856 = vmatpush.bf16.msrb.mxu1 %v3340_v62  ;;  %v3276_v62 = vld [vmem:[%s4370_s0 + $0x24] sm:$0xf] }
  0x35   :  { %1884 = vmatpush.bf16.msrb.mxu3 %v3356_v63  ;;  %v2344_v63 = vld [vmem:[%s4370_s0 + $0x84] sm:$0xf0] }
  0x36   :  { %1843 = vmatpush.bf16.msrb.mxu0 %v3331_v0  ;;  %v3277_v0 = vld [vmem:[%s4370_s0 + $0x2c] sm:$0xf] }
  0x37   :  { %1871 = vmatpush.bf16.msrb.mxu2 %v3347_v1  ;;  %v2352_v1 = vld [vmem:[%s4370_s0 + $0x8c] sm:$0xf0] }
  0x38   :  { %1857 = vmatpush.bf16.msrb.mxu1 %v3339_v2  ;;  %v2343_v2 = vor.u32 %v3288_v57, %v2342_v56  ;;  %v3430_v56 = vld [vmem:[%s4369_s1 + $0x428] sm:$0xff] }
  0x39   :  { %1885 = vmatpush.bf16.msrb.mxu3 %v3355_v3  ;;  %v2351_v3 = vor.u32 %v3289_v59, %v2350_v58  ;;  %v3446_v57 = vld [vmem:[%s4369_s1 + $0x4a8] sm:$0xff] }
  0x3a   :  { %1844 = vmatpush.bf16.msrb.mxu0 %v3330_v4  ;;  %v3408_v4 = vld [vmem:[%s4369_s1 + $0x378] sm:$0xff]  ;;  %v3438_v58 = vld [vmem:[%s4369_s1 + $0x468] sm:$0xff] }
  0x3b   :  { %1872 = vmatpush.bf16.msrb.mxu2 %v3346_v5  ;;  %v3424_v5 = vld [vmem:[%s4369_s1 + $0x3f8] sm:$0xff]  ;;  %v3454_v59 = vld [vmem:[%s4369_s1 + $0x4e8] sm:$0xff] }
  0x3c   :  { %1858 = vmatpush.bf16.msrb.mxu1 %v3338_v6  ;;  %v2347_v6 = vor.u32 %v3276_v62, %v2344_v63  ;;  %v3437_v62 = vld [vmem:[%s4369_s1 + $0x460] sm:$0xff] }
  0x3d   :  { %1886 = vmatpush.bf16.msrb.mxu3 %v3354_v7  ;;  %v2355_v7 = vor.u32 %v3277_v0, %v2352_v1  ;;  %v3453_v63 = vld [vmem:[%s4369_s1 + $0x4e0] sm:$0xff]  ;;  %v3428_v0 = vld [vmem:[%s4369_s1 + $0x418] sm:$0xff] }
  0x3e   :  { %1845 = vmatpush.bf16.msrb.mxu0 %v3329_v8  ;;  %v3399_v8 = vld [vmem:[%s4369_s1 + $0x330] sm:$0xff]  ;;  %v3444_v1 = vld [vmem:[%s4369_s1 + $0x498] sm:$0xff] }
  0x3f   :  { %1873 = vmatpush.bf16.msrb.mxu2 %v3345_v9  ;;  %v3415_v9 = vld [vmem:[%s4369_s1 + $0x3b0] sm:$0xff] }
  0x40   :  { %1859 = vmatpush.bf16.msrb.mxu1 %v3337_v16  ;;  %v3397_v16 = vld [vmem:[%s4369_s1 + $0x320] sm:$0xff] }
  0x41   :  { %1887 = vmatpush.bf16.msrb.mxu3 %v3353_v17  ;;  %1846 = vmatmul.bf16.vlgmr.msrb.gmra.mxu0 %v2327_v22  ;;  %v3413_v17 = vld [vmem:[%s4369_s1 + $0x3a0] sm:$0xff]  ;;  %v3404_v22 = vld [vmem:[%s4369_s1 + $0x358] sm:$0xff] }
  0x42   :  { %1894 = vmatpush.bf16.msra.mxu0 %v3368_v10  ;;  %1874 = vmatmul.bf16.vlgmr.msrb.gmra.mxu2 %v2335_v23  ;;  %v3407_v10 = vld [vmem:[%s4369_s1 + $0x370] sm:$0xff]  ;;  %v3420_v23 = vld [vmem:[%s4369_s1 + $0x3d8] sm:$0xff] }
  0x43   :  { %1922 = vmatpush.bf16.msra.mxu2 %v3384_v11  ;;  %1860 = vmatmul.bf16.vlgmr.msrb.gmra.mxu1 %v2331_v26  ;;  %v3423_v11 = vld [vmem:[%s4369_s1 + $0x3f0] sm:$0xff] }
  0x44   :  { %1908 = vmatpush.bf16.msra.mxu1 %v3376_v24  ;;  %1888 = vmatmul.bf16.vlgmr.msrb.gmra.mxu3 %v2339_v27  ;;  %v3395_v24 = vld [vmem:[%s4369_s1 + $0x310] sm:$0xff] }
  0x45   :  { %1936 = vmatpush.bf16.msra.mxu3 %v3392_v25  ;;  %v3411_v25 = vld [vmem:[%s4369_s1 + $0x390] sm:$0xff] }
  0x46   :  { %1895 = vmatpush.bf16.msra.mxu0 %v3367_v28  ;;  %v3403_v26 = vld [vmem:[%s4369_s1 + $0x350] sm:$0xff]  ;;  %v3394_v28 = vld [vmem:[%s4369_s1 + $0x308] sm:$0xff] }
  0x47   :  { %1923 = vmatpush.bf16.msra.mxu2 %v3383_v29  ;;  %v3419_v27 = vld [vmem:[%s4369_s1 + $0x3d0] sm:$0xff]  ;;  %v3410_v29 = vld [vmem:[%s4369_s1 + $0x388] sm:$0xff] }
  0x48   :  { %1909 = vmatpush.bf16.msra.mxu1 %v3375_v30  ;;  %v3402_v30 = vld [vmem:[%s4369_s1 + $0x348] sm:$0xff] }
  0x49   :  { %1937 = vmatpush.bf16.msra.mxu3 %v3391_v31  ;;  %v3418_v31 = vld [vmem:[%s4369_s1 + $0x3c8] sm:$0xff] }
  0x4a   :  { %1896 = vmatpush.bf16.msra.mxu0 %v3366_v32  ;;  %v3393_v32 = vld [vmem:[%s4369_s1 + $0x300] sm:$0xff] }
  0x4b   :  { %1924 = vmatpush.bf16.msra.mxu2 %v3382_v33  ;;  %v3409_v33 = vld [vmem:[%s4369_s1 + $0x380] sm:$0xff] }
  0x4c   :  { %1910 = vmatpush.bf16.msra.mxu1 %v3374_v34  ;;  %v3432_v34 = vld [vmem:[%s4369_s1 + $0x438] sm:$0xff] }
  0x4d   :  { %1938 = vmatpush.bf16.msra.mxu3 %v3390_v35  ;;  %v3448_v35 = vld [vmem:[%s4369_s1 + $0x4b8] sm:$0xff] }
  0x4e   :  { %1897 = vmatpush.bf16.msra.mxu0 %v3365_v36  ;;  %v2358_v36 = vld [vmem:[%s4370_s0 + $0x30] sm:$0xf] }
  0x4f   :  { %1925 = vmatpush.bf16.msra.mxu2 %v3381_v37  ;;  %v3290_v37 = vld [vmem:[%s4370_s0 + $0x90] sm:$0xf0] }
  0x50   :  { %1911 = vmatpush.bf16.msra.mxu1 %v3373_v38  ;;  %v2366_v38 = vld [vmem:[%s4370_s0 + $0x38] sm:$0xf] }
  0x51   :  { %1939 = vmatpush.bf16.msra.mxu3 %v3389_v39  ;;  %v3291_v39 = vld [vmem:[%s4370_s0 + $0x98] sm:$0xf0] }
  0x52   :  { %1898 = vmatpush.bf16.msra.mxu0 %v3364_v40  ;;  %v3401_v40 = vld [vmem:[%s4369_s1 + $0x340] sm:$0xff] }
  0x53   :  { %1926 = vmatpush.bf16.msra.mxu2 %v3380_v41  ;;  %v3417_v41 = vld [vmem:[%s4369_s1 + $0x3c0] sm:$0xff] }
  0x54   :  { %1912 = vmatpush.bf16.msra.mxu1 %v3372_v42  ;;  %v3278_v42 = vld [vmem:[%s4370_s0 + $0x34] sm:$0xf] }
  0x55   :  { %1940 = vmatpush.bf16.msra.mxu3 %v3388_v43  ;;  %v2360_v43 = vld [vmem:[%s4370_s0 + $0x94] sm:$0xf0] }
  0x56   :  { %1899 = vmatpush.bf16.msra.mxu0 %v3363_v44  ;;  %v3279_v44 = vld [vmem:[%s4370_s0 + $0x3c] sm:$0xf] }
  0x57   :  { %1927 = vmatpush.bf16.msra.mxu2 %v3379_v45  ;;  %v2368_v45 = vld [vmem:[%s4370_s0 + $0x9c] sm:$0xf0] }
  0x58   :  { %1913 = vmatpush.bf16.msra.mxu1 %v3371_v46  ;;  %v2359_v46 = vor.u32 %v3290_v37, %v2358_v36  ;;  %v3462_v36 = vld [vmem:[%s4369_s1 + $0x528] sm:$0xff] }
  0x59   :  { %1941 = vmatpush.bf16.msra.mxu3 %v3387_v47  ;;  %v2367_v47 = vor.u32 %v3291_v39, %v2366_v38  ;;  %v3478_v37 = vld [vmem:[%s4369_s1 + $0x5a8] sm:$0xff] }
  0x5a   :  { %1900 = vmatpush.bf16.msra.mxu0 %v3362_v48  ;;  %v3440_v48 = vld [vmem:[%s4369_s1 + $0x478] sm:$0xff]  ;;  %v3470_v38 = vld [vmem:[%s4369_s1 + $0x568] sm:$0xff] }
  0x5b   :  { %1928 = vmatpush.bf16.msra.mxu2 %v3378_v49  ;;  %v3456_v49 = vld [vmem:[%s4369_s1 + $0x4f8] sm:$0xff]  ;;  %v3486_v39 = vld [vmem:[%s4369_s1 + $0x5e8] sm:$0xff] }
  0x5c   :  { %1914 = vmatpush.bf16.msra.mxu1 %v3370_v50  ;;  %v2363_v50 = vor.u32 %v3278_v42, %v2360_v43  ;;  %v3469_v42 = vld [vmem:[%s4369_s1 + $0x560] sm:$0xff] }
  0x5d   :  { %1942 = vmatpush.bf16.msra.mxu3 %v3386_v51  ;;  %v2371_v51 = vor.u32 %v3279_v44, %v2368_v45  ;;  %v3485_v43 = vld [vmem:[%s4369_s1 + $0x5e0] sm:$0xff]  ;;  %v3460_v44 = vld [vmem:[%s4369_s1 + $0x518] sm:$0xff] }
  0x5e   :  { %1901 = vmatpush.bf16.msra.mxu0 %v3361_v52  ;;  %v3431_v52 = vld [vmem:[%s4369_s1 + $0x430] sm:$0xff]  ;;  %v3476_v45 = vld [vmem:[%s4369_s1 + $0x598] sm:$0xff] }
  0x5f   :  { %1929 = vmatpush.bf16.msra.mxu2 %v3377_v53  ;;  %v3447_v53 = vld [vmem:[%s4369_s1 + $0x4b0] sm:$0xff] }
  0x60   :  { %1915 = vmatpush.bf16.msra.mxu1 %v3369_v60  ;;  %v3429_v60 = vld [vmem:[%s4369_s1 + $0x420] sm:$0xff] }
  0x61   :  { %1943 = vmatpush.bf16.msra.mxu3 %v3385_v61  ;;  %1902 = vmatmul.bf16.vlgmr.msra.gmra.mxu0 %v2343_v2  ;;  %v3445_v61 = vld [vmem:[%s4369_s1 + $0x4a0] sm:$0xff]  ;;  %v3436_v2 = vld [vmem:[%s4369_s1 + $0x458] sm:$0xff] }
  0x62   :  { %1950 = vmatpush.bf16.msrb.mxu0 %v3400_v54  ;;  %1930 = vmatmul.bf16.vlgmr.msra.gmra.mxu2 %v2351_v3  ;;  %v3439_v54 = vld [vmem:[%s4369_s1 + $0x470] sm:$0xff]  ;;  %v3452_v3 = vld [vmem:[%s4369_s1 + $0x4d8] sm:$0xff] }
  0x63   :  { %1978 = vmatpush.bf16.msrb.mxu2 %v3416_v55  ;;  %1916 = vmatmul.bf16.vlgmr.msra.gmra.mxu1 %v2347_v6  ;;  %v3455_v55 = vld [vmem:[%s4369_s1 + $0x4f0] sm:$0xff] }
  0x64   :  { %1964 = vmatpush.bf16.msrb.mxu1 %v3408_v4  ;;  %1944 = vmatmul.bf16.vlgmr.msra.gmra.mxu3 %v2355_v7  ;;  %v3427_v4 = vld [vmem:[%s4369_s1 + $0x410] sm:$0xff] }
  0x65   :  { %1992 = vmatpush.bf16.msrb.mxu3 %v3424_v5  ;;  %v3443_v5 = vld [vmem:[%s4369_s1 + $0x490] sm:$0xff] }
  0x66   :  { %1951 = vmatpush.bf16.msrb.mxu0 %v3399_v8  ;;  %v3435_v6 = vld [vmem:[%s4369_s1 + $0x450] sm:$0xff]  ;;  %v3426_v8 = vld [vmem:[%s4369_s1 + $0x408] sm:$0xff] }
  0x67   :  { %1979 = vmatpush.bf16.msrb.mxu2 %v3415_v9  ;;  %v3451_v7 = vld [vmem:[%s4369_s1 + $0x4d0] sm:$0xff]  ;;  %v3442_v9 = vld [vmem:[%s4369_s1 + $0x488] sm:$0xff] }
  0x68   :  { %1965 = vmatpush.bf16.msrb.mxu1 %v3407_v10  ;;  %v3434_v10 = vld [vmem:[%s4369_s1 + $0x448] sm:$0xff] }
  0x69   :  { %1993 = vmatpush.bf16.msrb.mxu3 %v3423_v11  ;;  %v3450_v11 = vld [vmem:[%s4369_s1 + $0x4c8] sm:$0xff] }
  0x6a   :  { %1952 = vmatpush.bf16.msrb.mxu0 %v3398_v12  ;;  %v3425_v12 = vld [vmem:[%s4369_s1 + $0x400] sm:$0xff] }
  0x6b   :  { %1980 = vmatpush.bf16.msrb.mxu2 %v3414_v13  ;;  %v3441_v13 = vld [vmem:[%s4369_s1 + $0x480] sm:$0xff] }
  0x6c   :  { %1966 = vmatpush.bf16.msrb.mxu1 %v3406_v14  ;;  %v3464_v14 = vld [vmem:[%s4369_s1 + $0x538] sm:$0xff] }
  0x6d   :  { %1994 = vmatpush.bf16.msrb.mxu3 %v3422_v15  ;;  %v3480_v15 = vld [vmem:[%s4369_s1 + $0x5b8] sm:$0xff] }
  0x6e   :  { %1953 = vmatpush.bf16.msrb.mxu0 %v3397_v16  ;;  %v2374_v16 = vld [vmem:[%s4370_s0 + $0x40] sm:$0xf] }
  0x6f   :  { %1981 = vmatpush.bf16.msrb.mxu2 %v3413_v17  ;;  %v3292_v17 = vld [vmem:[%s4370_s0 + $0xa0] sm:$0xf0] }
  0x70   :  { %1967 = vmatpush.bf16.msrb.mxu1 %v3405_v18  ;;  %v2382_v18 = vld [vmem:[%s4370_s0 + $0x48] sm:$0xf] }
  0x71   :  { %1995 = vmatpush.bf16.msrb.mxu3 %v3421_v19  ;;  %v3293_v19 = vld [vmem:[%s4370_s0 + $0xa8] sm:$0xf0] }
  0x72   :  { %1954 = vmatpush.bf16.msrb.mxu0 %v3396_v20  ;;  %v3433_v20 = vld [vmem:[%s4369_s1 + $0x440] sm:$0xff] }
  0x73   :  { %1982 = vmatpush.bf16.msrb.mxu2 %v3412_v21  ;;  %v3449_v21 = vld [vmem:[%s4369_s1 + $0x4c0] sm:$0xff] }
  0x74   :  { %1968 = vmatpush.bf16.msrb.mxu1 %v3404_v22  ;;  %v3280_v22 = vld [vmem:[%s4370_s0 + $0x44] sm:$0xf] }
  0x75   :  { %1996 = vmatpush.bf16.msrb.mxu3 %v3420_v23  ;;  %v2376_v23 = vld [vmem:[%s4370_s0 + $0xa4] sm:$0xf0] }
  0x76   :  { %1955 = vmatpush.bf16.msrb.mxu0 %v3395_v24  ;;  %v3281_v24 = vld [vmem:[%s4370_s0 + $0x4c] sm:$0xf] }
  0x77   :  { %1983 = vmatpush.bf16.msrb.mxu2 %v3411_v25  ;;  %v2384_v25 = vld [vmem:[%s4370_s0 + $0xac] sm:$0xf0] }
  0x78   :  { %1969 = vmatpush.bf16.msrb.mxu1 %v3403_v26  ;;  %v2375_v26 = vor.u32 %v3292_v17, %v2374_v16  ;;  %v2406_v16 = vld [vmem:[%s4370_s0 + $0x60] sm:$0xf]  ;;  %v3296_v17 = vld [vmem:[%s4370_s0 + $0xc0] sm:$0xf0] }
  0x79   :  { %1997 = vmatpush.bf16.msrb.mxu3 %v3419_v27  ;;  %v2383_v27 = vor.u32 %v3293_v19, %v2382_v18  ;;  %v2407_v18 = vor.u32 %v3296_v17, %v2406_v16 }
  0x7a   :  { %1956 = vmatpush.bf16.msrb.mxu0 %v3394_v28  ;;  %v3472_v28 = vld [vmem:[%s4369_s1 + $0x578] sm:$0xff] }
  0x7b   :  { %1984 = vmatpush.bf16.msrb.mxu2 %v3410_v29  ;;  %v3488_v29 = vld [vmem:[%s4369_s1 + $0x5f8] sm:$0xff] }
  0x7c   :  { %1970 = vmatpush.bf16.msrb.mxu1 %v3402_v30  ;;  %v2379_v30 = vor.u32 %v3280_v22, %v2376_v23 }
  0x7d   :  { %1998 = vmatpush.bf16.msrb.mxu3 %v3418_v31  ;;  %v2387_v31 = vor.u32 %v3281_v24, %v2384_v25 }
  0x7e   :  { %1957 = vmatpush.bf16.msrb.mxu0 %v3393_v32  ;;  %v3463_v32 = vld [vmem:[%s4369_s1 + $0x530] sm:$0xff] }
  0x7f   :  { %1985 = vmatpush.bf16.msrb.mxu2 %v3409_v33  ;;  %v3479_v33 = vld [vmem:[%s4369_s1 + $0x5b0] sm:$0xff] }
  0x80   :  { %1971 = vmatpush.bf16.msrb.mxu1 %v3401_v40  ;;  %v3461_v40 = vld [vmem:[%s4369_s1 + $0x520] sm:$0xff] }
  0x81   :  { %1999 = vmatpush.bf16.msrb.mxu3 %v3417_v41  ;;  %1958 = vmatmul.bf16.vlgmr.msrb.gmra.mxu0 %v2359_v46  ;;  %v3477_v41 = vld [vmem:[%s4369_s1 + $0x5a0] sm:$0xff]  ;;  %v3468_v46 = vld [vmem:[%s4369_s1 + $0x558] sm:$0xff] }
  0x82   :  { %2006 = vmatpush.bf16.msra.mxu0 %v3432_v34  ;;  %1986 = vmatmul.bf16.vlgmr.msrb.gmra.mxu2 %v2367_v47  ;;  %v3471_v34 = vld [vmem:[%s4369_s1 + $0x570] sm:$0xff]  ;;  %v3484_v47 = vld [vmem:[%s4369_s1 + $0x5d8] sm:$0xff] }
  0x83   :  { %2034 = vmatpush.bf16.msra.mxu2 %v3448_v35  ;;  %1972 = vmatmul.bf16.vlgmr.msrb.gmra.mxu1 %v2363_v50  ;;  %v3487_v35 = vld [vmem:[%s4369_s1 + $0x5f0] sm:$0xff] }
  0x84   :  { %2020 = vmatpush.bf16.msra.mxu1 %v3440_v48  ;;  %2000 = vmatmul.bf16.vlgmr.msrb.gmra.mxu3 %v2371_v51  ;;  %v3459_v48 = vld [vmem:[%s4369_s1 + $0x510] sm:$0xff] }
  0x85   :  { %2048 = vmatpush.bf16.msra.mxu3 %v3456_v49  ;;  %v3475_v49 = vld [vmem:[%s4369_s1 + $0x590] sm:$0xff] }
  0x86   :  { %2007 = vmatpush.bf16.msra.mxu0 %v3431_v52  ;;  %v3467_v50 = vld [vmem:[%s4369_s1 + $0x550] sm:$0xff]  ;;  %v3458_v52 = vld [vmem:[%s4369_s1 + $0x508] sm:$0xff] }
  0x87   :  { %2035 = vmatpush.bf16.msra.mxu2 %v3447_v53  ;;  %v3483_v51 = vld [vmem:[%s4369_s1 + $0x5d0] sm:$0xff]  ;;  %v3474_v53 = vld [vmem:[%s4369_s1 + $0x588] sm:$0xff] }
  0x88   :  { %2021 = vmatpush.bf16.msra.mxu1 %v3439_v54  ;;  %v3466_v54 = vld [vmem:[%s4369_s1 + $0x548] sm:$0xff] }
  0x89   :  { %2049 = vmatpush.bf16.msra.mxu3 %v3455_v55  ;;  %v3482_v55 = vld [vmem:[%s4369_s1 + $0x5c8] sm:$0xff] }
  0x8a   :  { %2008 = vmatpush.bf16.msra.mxu0 %v3430_v56  ;;  %v3457_v56 = vld [vmem:[%s4369_s1 + $0x500] sm:$0xff] }
  0x8b   :  { %2036 = vmatpush.bf16.msra.mxu2 %v3446_v57  ;;  %v3473_v57 = vld [vmem:[%s4369_s1 + $0x580] sm:$0xff] }
  0x8c   :  { %2022 = vmatpush.bf16.msra.mxu1 %v3438_v58  ;;  %v3496_v58 = vld [vmem:[%s4369_s1 + $0x638] sm:$0xff] }
  0x8d   :  { %2050 = vmatpush.bf16.msra.mxu3 %v3454_v59  ;;  %v2390_v59 = vld [vmem:[%s4370_s0 + $0x50] sm:$0xf] }
  0x8e   :  { %2009 = vmatpush.bf16.msra.mxu0 %v3429_v60  ;;  %v3294_v60 = vld [vmem:[%s4370_s0 + $0xb0] sm:$0xf0] }
  0x8f   :  { %2037 = vmatpush.bf16.msra.mxu2 %v3445_v61  ;;  %v2398_v61 = vld [vmem:[%s4370_s0 + $0x58] sm:$0xf] }
  0x90   :  { %2023 = vmatpush.bf16.msra.mxu1 %v3437_v62  ;;  %v3295_v62 = vld [vmem:[%s4370_s0 + $0xb8] sm:$0xf0] }
  0x91   :  { %2051 = vmatpush.bf16.msra.mxu3 %v3453_v63  ;;  %v3465_v63 = vld [vmem:[%s4369_s1 + $0x540] sm:$0xff] }
  0x92   :  { %2010 = vmatpush.bf16.msra.mxu0 %v3428_v0  ;;  %v3481_v0 = vld [vmem:[%s4369_s1 + $0x5c0] sm:$0xff] }
  0x93   :  { %2038 = vmatpush.bf16.msra.mxu2 %v3444_v1  ;;  %v3282_v1 = vld [vmem:[%s4370_s0 + $0x54] sm:$0xf] }
  0x94   :  { %2024 = vmatpush.bf16.msra.mxu1 %v3436_v2  ;;  %v2392_v2 = vld [vmem:[%s4370_s0 + $0xb4] sm:$0xf0] }
  0x95   :  { %2052 = vmatpush.bf16.msra.mxu3 %v3452_v3  ;;  %v3283_v3 = vld [vmem:[%s4370_s0 + $0x5c] sm:$0xf] }
  0x96   :  { %2011 = vmatpush.bf16.msra.mxu0 %v3427_v4  ;;  %v2400_v4 = vld [vmem:[%s4370_s0 + $0xbc] sm:$0xf0] }
  0x97   :  { %2039 = vmatpush.bf16.msra.mxu2 %v3443_v5  ;;  %v2391_v5 = vor.u32 %v3294_v60, %v2390_v59 }
  0x98   :  { %2025 = vmatpush.bf16.msra.mxu1 %v3435_v6  ;;  %v2399_v6 = vor.u32 %v3295_v62, %v2398_v61  ;;  %v3503_v61 = vld [vmem:[%s4373_s3 + $0x30] sm:$0xff] }
  0x99   :  { %2053 = vmatpush.bf16.msra.mxu3 %v3451_v7  ;;  %v2395_v7 = vor.u32 %v3282_v1, %v2392_v2 }
  0x9a   :  { %2012 = vmatpush.bf16.msra.mxu0 %v3426_v8  ;;  %v2403_v8 = vor.u32 %v3283_v3, %v2400_v4 }
  0x9b   :  { %2040 = vmatpush.bf16.msra.mxu2 %v3442_v9  ;;  %v3495_v9 = vld [vmem:[%s4369_s1 + $0x630] sm:$0xff] }
  0x9c   :  { %2026 = vmatpush.bf16.msra.mxu1 %v3434_v10  ;;  %v3494_v10 = vld [vmem:[%s4369_s1 + $0x628] sm:$0xff] }
  0x9d   :  { %2054 = vmatpush.bf16.msra.mxu3 %v3450_v11  ;;  %v3493_v11 = vld [vmem:[%s4369_s1 + $0x620] sm:$0xff] }
  0x9e   :  { %2013 = vmatpush.bf16.msra.mxu0 %v3425_v12  ;;  %v3492_v12 = vld [vmem:[%s4369_s1 + $0x618] sm:$0xff]  ;;  %v1791_v19 = vpop.f32.mrf.mxu0 }
  0x9f   :  { %2041 = vmatpush.bf16.msra.mxu2 %v3441_v13  ;;  %v3491_v13 = vld [vmem:[%s4369_s1 + $0x610] sm:$0xff] }
  0xa0   :  { %2027 = vmatpush.bf16.msra.mxu1 %v3433_v20  ;;  %v1805_v20 = vpop.f32.mrf.mxu1 }
  0xa1   :  { %2055 = vmatpush.bf16.msra.mxu3 %v3449_v21  ;;  %2014 = vmatmul.bf16.vlgmr.msra.gmra.mxu0 %v2375_v26 }
  0xa2   :  { %2062 = vmatpush.bf16.msrb.mxu0 %v3464_v14  ;;  %2042 = vmatmul.bf16.vlgmr.msra.gmra.mxu2 %v2383_v27  ;;  %v3490_v14 = vld [vmem:[%s4369_s1 + $0x608] sm:$0xff] }
  0xa3   :  { %2090 = vmatpush.bf16.msrb.mxu2 %v3480_v15  ;;  %2028 = vmatmul.bf16.vlgmr.msra.gmra.mxu1 %v2379_v30  ;;  %v3489_v15 = vld [vmem:[%s4369_s1 + $0x600] sm:$0xff] }
  0xa4   :  { %2076 = vmatpush.bf16.msrb.mxu1 %v3472_v28  ;;  %2056 = vmatmul.bf16.vlgmr.msra.gmra.mxu3 %v2387_v31 }
  0xa5   :  { %2104 = vmatpush.bf16.msrb.mxu3 %v3488_v29  ;;  %v1819_v21 = vpop.f32.mrf.mxu2 }
  0xa6   :  { %2063 = vmatpush.bf16.msrb.mxu0 %v3463_v32  ;;  %v1793_v22 = vpop.f32.mrf.mxu0  ;;  %v3513_v32 = vld [vmem:[%s4371_s2] ss:$0 sm:$0xff] }
  0xa7   :  { %2091 = vmatpush.bf16.msrb.mxu2 %v3479_v33  ;;  %v1833_v23 = vpop.f32.mrf.mxu3 }
  0xa8   :  { %2077 = vmatpush.bf16.msrb.mxu1 %v3471_v34  ;;  %v1807_v24 = vpop.f32.mrf.mxu1 }
  0xa9   :  { %2105 = vmatpush.bf16.msrb.mxu3 %v3487_v35 }
  0xaa   :  { %2064 = vmatpush.bf16.msrb.mxu0 %v3462_v36  ;;  %v1792_v36 = vadd.f32 %v3513_v32, %v1791_v19 }
  0xab   :  { %2092 = vmatpush.bf16.msrb.mxu2 %v3478_v37 }
  0xac   :  { %2078 = vmatpush.bf16.msrb.mxu1 %v3470_v38  ;;  %v1806_v38 = vadd.f32 %v1805_v20, %v1792_v36 }
  0xad   :  { %2106 = vmatpush.bf16.msrb.mxu3 %v3486_v39  ;;  %v1821_v25 = vpop.f32.mrf.mxu2 }
  0xae   :  { %2065 = vmatpush.bf16.msrb.mxu0 %v3461_v40  ;;  %v1794_v40 = vadd.f32 %v3513_v32, %v1793_v22 }
  0xaf   :  { %2093 = vmatpush.bf16.msrb.mxu2 %v3477_v41  ;;  %v1835_v27 = vpop.f32.mrf.mxu3 }
  0xb0   :  { %2079 = vmatpush.bf16.msrb.mxu1 %v3469_v42  ;;  %v1820_v42 = vadd.f32 %v1819_v21, %v1806_v38 }
  0xb1   :  { %2107 = vmatpush.bf16.msrb.mxu3 %v3485_v43 }
  0xb2   :  { %2066 = vmatpush.bf16.msrb.mxu0 %v3460_v44  ;;  %v1808_v44 = vadd.f32 %v1807_v24, %v1794_v40  ;;  %v3498_v24 = vld [vmem:[%s4373_s3 + $0x8] sm:$0xff] }
  0xb3   :  { %2094 = vmatpush.bf16.msrb.mxu2 %v3476_v45 }
  0xb4   :  { %2080 = vmatpush.bf16.msrb.mxu1 %v3468_v46  ;;  %v1834_v46 = vadd.f32 %v1833_v23, %v1820_v42 }
  0xb5   :  { %2108 = vmatpush.bf16.msrb.mxu3 %v3484_v47  ;;  %v1822_v47 = vadd.f32 %v1821_v25, %v1808_v44 }
  0xb6   :  { %2067 = vmatpush.bf16.msrb.mxu0 %v3459_v48 }
  0xb7   :  { %2095 = vmatpush.bf16.msrb.mxu2 %v3475_v49 }
  0xb8   :  { %2081 = vmatpush.bf16.msrb.mxu1 %v3467_v50 }
  0xb9   :  { %2109 = vmatpush.bf16.msrb.mxu3 %v3483_v51 }
  0xba   :  { %2068 = vmatpush.bf16.msrb.mxu0 %v3458_v52  ;;  %v1836_v52 = vadd.f32 %v1835_v27, %v1822_v47 }
  0xbb   :  { %2096 = vmatpush.bf16.msrb.mxu2 %v3474_v53 }
  0xbc   :  { %2082 = vmatpush.bf16.msrb.mxu1 %v3466_v54 }
  0xbd   :  { %2110 = vmatpush.bf16.msrb.mxu3 %v3482_v55  ;;  %v3504_v55 = vld [vmem:[%s4373_s3 + $0x38] sm:$0xff] }
  0xbe   :  { %2069 = vmatpush.bf16.msrb.mxu0 %v3457_v56  ;;  %v1847_v26 = vpop.f32.mrf.mxu0 }
  0xbf   :  { %2097 = vmatpush.bf16.msrb.mxu2 %v3473_v57  ;;  %v1848_v49 = vadd.f32 %v1847_v26, %v1834_v46 }
  0xc0   :  { %2083 = vmatpush.bf16.msrb.mxu1 %v3465_v63  ;;  %v1861_v28 = vpop.f32.mrf.mxu1 }
  0xc1   :  { %2111 = vmatpush.bf16.msrb.mxu3 %v3481_v0  ;;  %2070 = vmatmul.bf16.vlgmr.msrb.gmra.mxu0 %v2391_v5  ;;  %v1862_v53 = vadd.f32 %v1861_v28, %v1848_v49  ;;  %v3502_v0 = vld [vmem:[%s4373_s3 + $0x28] sm:$0xff]  ;;  %v3501_v5 = vld [vmem:[%s4373_s3 + $0x20] sm:$0xff] }
  0xc2   :  { %2118 = vmatpush.bf16.msra.mxu0 %v3496_v58  ;;  %2098 = vmatmul.bf16.vlgmr.msrb.gmra.mxu2 %v2399_v6 }
  0xc3   :  { %2084 = vmatmul.bf16.vlgmr.msrb.gmra.mxu1 %v2395_v7 }
  0xc4   :  { %2112 = vmatmul.bf16.vlgmr.msrb.gmra.mxu3 %v2403_v8  ;;  %2203 = vmatpush.bf16.msra.mxu1 %v3504_v55 }
  0xc5   :  { %v1875_v29 = vpop.f32.mrf.mxu2 }
  0xc6   :  { %2119 = vmatpush.bf16.msra.mxu0 %v3495_v9  ;;  %v1849_v30 = vpop.f32.mrf.mxu0  ;;  %v1876_v58 = vadd.f32 %v1875_v29, %v1862_v53  ;;  %v3497_v29 = vld [vmem:[%s4373_s3] sm:$0xff] }
  0xc7   :  { %v1889_v31 = vpop.f32.mrf.mxu3  ;;  %v1850_v54 = vadd.f32 %v1849_v30, %v1836_v52 }
  0xc8   :  { %v1863_v33 = vpop.f32.mrf.mxu1  ;;  %2204 = vmatpush.bf16.msra.mxu1 %v3503_v61  ;;  %v1890_v1 = vadd.f32 %v1889_v31, %v1876_v58 }
  0xc9   :  { %v1864_v59 = vadd.f32 %v1863_v33, %v1850_v54 }
  0xca   :  { %2120 = vmatpush.bf16.msra.mxu0 %v3494_v10 }
  0xcc   :  { %2205 = vmatpush.bf16.msra.mxu1 %v3502_v0 }
  0xcd   :  { %v1877_v34 = vpop.f32.mrf.mxu2 }
  0xce   :  { %2121 = vmatpush.bf16.msra.mxu0 %v3493_v11  ;;  %v1878_v62 = vadd.f32 %v1877_v34, %v1864_v59 }
  0xcf   :  { %v1891_v37 = vpop.f32.mrf.mxu3 }
  0xd0   :  { %v1892_v3 = vadd.f32 %v1891_v37, %v1878_v62  ;;  %2206 = vmatpush.bf16.msra.mxu1 %v3501_v5  ;;  %v3512_v37 = vld [vmem:[%s4374_s5 + $0x38] sm:$0xff] }
  0xd1   :  { %2288 = vmatpush.bf16.msra.mxu2 %v3512_v37 }
  0xd2   :  { %2122 = vmatpush.bf16.msra.mxu0 %v3492_v12 }
  0xd6   :  { %2123 = vmatpush.bf16.msra.mxu0 %v3491_v13  ;;  %v3500_v13 = vld [vmem:[%s4373_s3 + $0x18] sm:$0xff] }
  0xd7   :  { %2207 = vmatpush.bf16.msra.mxu1 %v3500_v13 }
  0xda   :  { %2124 = vmatpush.bf16.msra.mxu0 %v3490_v14 }
  0xde   :  { %2125 = vmatpush.bf16.msra.mxu0 %v3489_v15  ;;  %v1903_v35 = vpop.f32.mrf.mxu0 }
  0xdf   :  { %v1904_v4 = vadd.f32 %v1903_v35, %v1890_v1 }
  0xe0   :  { %v1917_v39 = vpop.f32.mrf.mxu1 }
  0xe1   :  { %2126 = vmatmul.bf16.vlgmr.msra.gmra.mxu0 %v2407_v18  ;;  %v1918_v8 = vadd.f32 %v1917_v39, %v1904_v4  ;;  %v3499_v18 = vld [vmem:[%s4373_s3 + $0x10] sm:$0xff] }
  0xe2   :  { %2208 = vmatpush.bf16.msra.mxu1 %v3499_v18  ;;  %v3511_v39 = vld [vmem:[%s4374_s5 + $0x30] sm:$0xff] }
  0xe3   :  { %2289 = vmatpush.bf16.msra.mxu2 %v3511_v39 }
  0xe5   :  { %v1931_v41 = vpop.f32.mrf.mxu2 }
  0xe6   :  { %v1905_v43 = vpop.f32.mrf.mxu0  ;;  %v1932_v11 = vadd.f32 %v1931_v41, %v1918_v8  ;;  %2209 = vmatpush.bf16.msra.mxu1 %v3498_v24  ;;  %v3507_v8 = vld [vmem:[%s4374_s5 + $0x10] sm:$0xff] }
  0xe7   :  { %v1945_v45 = vpop.f32.mrf.mxu3  ;;  %v1906_v6 = vadd.f32 %v1905_v43, %v1892_v3 }
  0xe8   :  { %v1919_v48 = vpop.f32.mrf.mxu1  ;;  %v1946_v16 = vadd.f32 %v1945_v45, %v1932_v11  ;;  %v3510_v45 = vld [vmem:[%s4374_s5 + $0x28] sm:$0xff] }
  0xe9   :  { %v1920_v12 = vadd.f32 %v1919_v48, %v1906_v6  ;;  %2290 = vmatpush.bf16.msra.mxu2 %v3510_v45 }
  0xea   :  { %2210 = vmatpush.bf16.msra.mxu1 %v3497_v29 }
  0xed   :  { %v1933_v50 = vpop.f32.mrf.mxu2 }
  0xee   :  { %v1934_v14 = vadd.f32 %v1933_v50, %v1920_v12  ;;  %v3509_v50 = vld [vmem:[%s4374_s5 + $0x20] sm:$0xff] }
  0xef   :  { %v1947_v56 = vpop.f32.mrf.mxu3  ;;  %2291 = vmatpush.bf16.msra.mxu2 %v3509_v50  ;;  %v3514_v12 = vld [vmem:[%s4372_s4] ss:$0 sm:$0xff] }
  0xf0   :  { %v1948_v19 = vadd.f32 %v1947_v56, %v1934_v14 }
  0xfe   :  { %v1959_v51 = vpop.f32.mrf.mxu0 }
  0xff   :  { %v1960_v20 = vadd.f32 %v1959_v51, %v1946_v16 }
 0x100   :  { %v1973_v57 = vpop.f32.mrf.mxu1 }
 0x101   :  { %v1974_v25 = vadd.f32 %v1973_v57, %v1960_v20 }
 0x105   :  { %v1987_v60 = vpop.f32.mrf.mxu2 }
 0x106   :  { %v1961_v63 = vpop.f32.mrf.mxu0  ;;  %v1988_v27 = vadd.f32 %v1987_v60, %v1974_v25 }
 0x107   :  { %v2001_v2 = vpop.f32.mrf.mxu3  ;;  %v1962_v22 = vadd.f32 %v1961_v63, %v1948_v19  ;;  %v3515_v19 = vld [vmem:[%s4375_s6] ss:$0 sm:$0xff] }
 0x108   :  { %v1975_v7 = vpop.f32.mrf.mxu1  ;;  %v2002_v32 = vadd.f32 %v2001_v2, %v1988_v27 }
 0x109   :  { %v1976_v28 = vadd.f32 %v1975_v7, %v1962_v22  ;;  %v3508_v7 = vld [vmem:[%s4374_s5 + $0x18] sm:$0xff] }
 0x10a   :  { %2292 = vmatpush.bf16.msra.mxu2 %v3508_v7 }
 0x10d   :  { %v1989_v9 = vpop.f32.mrf.mxu2 }
 0x10e   :  { %v1990_v30 = vadd.f32 %v1989_v9, %v1976_v28  ;;  %2293 = vmatpush.bf16.msra.mxu2 %v3507_v8  ;;  %v3506_v9 = vld [vmem:[%s4374_s5 + $0x8] sm:$0xff] }
 0x10f   :  { %v2003_v15 = vpop.f32.mrf.mxu3 }
 0x110   :  { %v2004_v35 = vadd.f32 %v2003_v15, %v1990_v30 }
 0x112   :  { %2294 = vmatpush.bf16.msra.mxu2 %v3506_v9 }
 0x11e   :  { %v2015_v10 = vpop.f32.mrf.mxu0 }
 0x11f   :  { %v2016_v36 = vadd.f32 %v2015_v10, %v2002_v32  ;;  %v3505_v10 = vld [vmem:[%s4374_s5] sm:$0xff] }
 0x120   :  { %v2029_v17 = vpop.f32.mrf.mxu1  ;;  %2295 = vmatpush.bf16.msra.mxu2 %v3505_v10 }
 0x121   :  { %v2030_v41 = vadd.f32 %v2029_v17, %v2016_v36 }
 0x125   :  { %v2043_v21 = vpop.f32.mrf.mxu2 }
 0x126   :  { %v2017_v23 = vpop.f32.mrf.mxu0  ;;  %v2044_v43 = vadd.f32 %v2043_v21, %v2030_v41 }
 0x127   :  { %v2057_v26 = vpop.f32.mrf.mxu3  ;;  %v2018_v38 = vadd.f32 %v2017_v23, %v2004_v35 }
 0x128   :  { %v2031_v31 = vpop.f32.mrf.mxu1  ;;  %v2058_v49 = vadd.f32 %v2057_v26, %v2044_v43 }
 0x129   :  { %v2032_v44 = vadd.f32 %v2031_v31, %v2018_v38 }
 0x12d   :  { %v2045_v33 = vpop.f32.mrf.mxu2 }
 0x12e   :  { %v2046_v47 = vadd.f32 %v2045_v33, %v2032_v44 }
 0x12f   :  { %v2059_v40 = vpop.f32.mrf.mxu3 }
 0x130   :  { %v2060_v52 = vadd.f32 %v2059_v40, %v2046_v47 }
 0x13e   :  { %v2071_v34 = vpop.f32.mrf.mxu0 }
 0x13f   :  { %v2072_v53 = vadd.f32 %v2071_v34, %v2058_v49 }
 0x140   :  { %v2085_v42 = vpop.f32.mrf.mxu1 }
 0x141   :  { %v2086_v56 = vadd.f32 %v2085_v42, %v2072_v53 }
 0x145   :  { %v2099_v46 = vpop.f32.mrf.mxu2 }
 0x146   :  { %v2073_v48 = vpop.f32.mrf.mxu0  ;;  %v2100_v59 = vadd.f32 %v2099_v46, %v2086_v56 }
 0x147   :  { %v2113_v51 = vpop.f32.mrf.mxu3  ;;  %v2074_v54 = vadd.f32 %v2073_v48, %v2060_v52 }
 0x148   :  { %v2087_v55 = vpop.f32.mrf.mxu1  ;;  %v2114_v63 = vadd.f32 %v2113_v51, %v2100_v59 }
 0x149   :  { %v2088_v60 = vadd.f32 %v2087_v55, %v2074_v54 }
 0x14d   :  { %v2101_v57 = vpop.f32.mrf.mxu2 }
 0x14e   :  { %v2102_v61 = vadd.f32 %v2101_v57, %v2088_v60 }
 0x14f   :  { %v2115_v62 = vpop.f32.mrf.mxu3 }
 0x150   :  { %v2116_v0 = vadd.f32 %v2115_v62, %v2102_v61 }
 0x15e   :  { %v2127_v58 = vpop.f32.mrf.mxu0 }
 0x15f   :  { %v2128_v1 = vadd.f32 %v2127_v58, %v2114_v63 }
 0x161   :  { %v2132_v4 = vmax.f32 %v2128_v1, 0.0 }
 0x166   :  { %v2129_v2 = vpop.f32.mrf.mxu0 }
 0x167   :  { %v2130_v3 = vadd.f32 %v2129_v2, %v2116_v0 }
 0x169   :  { %v2133_v5 = vmax.f32 %v2130_v3, 0.0 }
 0x16b   :  { %v2134_v6 = vpack.c.bf16 %v2133_v5, %v2132_v4 }
 0x16d   :  { %2211 = vmatmul.bf16.vlgmr.msra.gmra.mxu1 %v2134_v6 }
 0x1ea   :  { %v2212_v11 = vpop.f32.mrf.mxu1 }
 0x1eb   :  { %v2213_v13 = vadd.f32 %v3514_v12, %v2212_v11 }
 0x1ed   :  { %v2217_v16 = vmax.f32 %v2213_v13, 0.0 }
 0x1f2   :  { %v2214_v14 = vpop.f32.mrf.mxu1 }
 0x1f3   :  { %v2215_v15 = vadd.f32 %v3514_v12, %v2214_v14 }
 0x1f5   :  { %v2218_v17 = vmax.f32 %v2215_v15, 0.0 }
 0x1f7   :  { %v2219_v18 = vpack.c.bf16 %v2218_v17, %v2217_v16 }
 0x1f9   :  { %2296 = vmatmul.bf16.vlgmr.msra.gmra.mxu2 %v2219_v18 }
 0x27c   :  { %v2297_v20 = vpop.f32.mrf.mxu2 }
 0x27d   :  { %v2298_v21 = vadd.f32 %v3515_v19, %v2297_v20 }
 0x27f   :  { %2302 = vst [vmem:[%s4376_s7] sm:$0xff] %v2298_v21 }
 0x284   :  { %v2299_v22 = vpop.f32.mrf.mxu2 }
 0x285   :  { %v2300_v23 = vadd.f32 %v3515_v19, %v2299_v22 }
 0x287   :  { %2303 = vst [vmem:[%s4376_s7 + $0x8] sm:$0xff] %v2300_v23 }

</bundles_post_ra>
